<compile_context>
chip_gen: v5e
topology: v5e:2x2
jax: 0.10.0
libtpu: 0.0.40
codegen_flags: <defaults>
</compile_context>

<pallas_src>
import jax
import jax.numpy as jnp
from jax.experimental import pallas as pl
from jax.experimental.pallas import tpu as pltpu


def _round_up(x, m):
    return (x + m - 1) // m * m


def _balanced_m_tiling(M, tm_max, min_blocks=2):
    """Pick (num_tiles, tile_m, padded_M) with minimal padding and >=min_blocks
    tiles (v7x dual-TensorCore sharding) when M is large enough."""
    nt = pl.cdiv(M, tm_max)
    if M >= 16:
        nt = max(nt, min_blocks)
    tm = _round_up(pl.cdiv(M, nt), 8)
    return nt, tm, tm * nt


# ------------------------- single-k matmul + bias ----------------------------
# Reduction dims here are tiny (Cin*K*K = 36), so the whole K axis is one block:
# no reduction grid axis, no accumulator scratch.  The weight matrix (K, N) is
# VMEM-resident via a constant index_map; only A streams tile-by-tile.
# TODO(synk): add a k-grid + f32 VMEM accumulator variant for very large K.

def _mm_bias_kernel(a_ref, b_ref, bias_ref, o_ref):
    a = a_ref[...].astype(jnp.bfloat16)          # in-kernel cast, VPU slack under MXU
    acc = jnp.dot(a, b_ref[...], preferred_element_type=jnp.float32)
    o_ref[...] = (acc + bias_ref[...]).astype(o_ref.dtype)


def matmul_bias(a, b, bias=None, *, tm_max=512, out_dtype=jnp.float32):
    """a: (M, K) f32, b: (K, N) f32 weight, bias: (N,) or None -> (M, N)."""
    M, K = a.shape
    K2, N = b.shape
    assert K == K2
    nt, tm, Mp = _balanced_m_tiling(M, tm_max)
    a_p = a if Mp == M else jnp.pad(a, ((0, Mp - M), (0, 0)))
    b_bf = b.astype(jnp.bfloat16)                              # tiny weight, cast once
    bias_row = (jnp.zeros((1, N), jnp.float32) if bias is None
                else bias.astype(jnp.float32).reshape(1, N))

    out = pl.pallas_call(
        _mm_bias_kernel,
        out_shape=jax.ShapeDtypeStruct((Mp, N), out_dtype),
        grid=(nt,),
        in_specs=[
            pl.BlockSpec((tm, K), lambda i: (i, 0)),           # streamed activations
            pl.BlockSpec((K, N), lambda i: (0, 0)),            # VMEM-resident weight
            pl.BlockSpec((1, N), lambda i: (0, 0)),            # bias row
        ],
        out_specs=pl.BlockSpec((tm, N), lambda i: (i, 0)),
        compiler_params=pltpu.CompilerParams(
            dimension_semantics=("parallel",)),
    )(a_p, b_bf, bias_row)
    return out if Mp == M else out[:M]


# ------------------- two-pass BatchNorm + ReLU on NHWC (M, C) ----------------

def _bn_stats_kernel(x_ref, sum_ref, ssq_ref):
    @pl.when(pl.program_id(0) == 0)
    def _():
        sum_ref[...] = jnp.zeros_like(sum_ref)
        ssq_ref[...] = jnp.zeros_like(ssq_ref)
    x = x_ref[...].astype(jnp.float32)
    sum_ref[...] += jnp.sum(x, axis=0, keepdims=True)
    ssq_ref[...] += jnp.sum(x * x, axis=0, keepdims=True)


def _bn_apply_kernel(x_ref, scale_ref, shift_ref, o_ref):
    y = x_ref[...].astype(jnp.float32) * scale_ref[...] + shift_ref[...]
    o_ref[...] = jnp.maximum(y, 0.0).astype(o_ref.dtype)


def bn_relu_nhwc(x_mc, gamma, beta, *, tm_max=2048, eps=1e-5):
    """x_mc: (M, C) f32 in NHWC-flattened layout (channels on lanes).
    Training-mode BatchNorm over the M axis + ReLU; returns (M, C) f32."""
    M, C = x_mc.shape
    nt, tm, Mp = _balanced_m_tiling(M, tm_max)
    x_p = x_mc if Mp == M else jnp.pad(x_mc, ((0, Mp - M), (0, 0)))  # zero rows: exact sums

    sums, ssqs = pl.pallas_call(
        _bn_stats_kernel,
        out_shape=(jax.ShapeDtypeStruct((1, C), jnp.float32),
                   jax.ShapeDtypeStruct((1, C), jnp.float32)),
        grid=(nt,),
        in_specs=[pl.BlockSpec((tm, C), lambda i: (i, 0))],
        out_specs=(pl.BlockSpec((1, C), lambda i: (0, 0)),
                   pl.BlockSpec((1, C), lambda i: (0, 0))),
        compiler_params=pltpu.CompilerParams(
            dimension_semantics=("arbitrary",)),
    )(x_p)

    # Tiny per-channel affine precompute between the passes (apply = FMA + max).
    inv_m = 1.0 / float(M)
    mean = sums * inv_m
    var = ssqs * inv_m - mean * mean   # TODO(synk): shifted/Welford form if |mean| >> std
    scale = gamma.reshape(1, C).astype(jnp.float32) * jax.lax.rsqrt(var + eps)
    shift = beta.reshape(1, C).astype(jnp.float32) - mean * scale

    y = pl.pallas_call(
        _bn_apply_kernel,
        out_shape=jax.ShapeDtypeStruct((Mp, C), jnp.float32),
        grid=(nt,),
        in_specs=[pl.BlockSpec((tm, C), lambda i: (i, 0)),
                  pl.BlockSpec((1, C), lambda i: (0, 0)),
                  pl.BlockSpec((1, C), lambda i: (0, 0))],
        out_specs=pl.BlockSpec((tm, C), lambda i: (i, 0)),
        compiler_params=pltpu.CompilerParams(
            dimension_semantics=("parallel",)),
    )(x_p, scale, shift)
    return y if Mp == M else y[:M]


# --------------------------------- JAX glue ----------------------------------

def im2col(x_padded, K):
    """x_padded: (N, C, Hp, Wp) -> (N, Ho, Wo, C, K, K) sliding windows (stride 1)."""
    # TODO(synk): fold the K*K window loop into the matmul grid via shifted-window
    # BlockSpec index_maps to avoid materializing the 9x patch matrix in HBM.
    N, C, Hp, Wp = x_padded.shape
    Ho, Wo = Hp - K + 1, Wp - K + 1
    cols = []
    for kh in range(K):
        for kw in range(K):
            cols.append(x_padded[:, :, kh:kh + Ho, kw:kw + Wo])
    p = jnp.stack(cols, axis=2).reshape(N, C, K, K, Ho, Wo)
    return jnp.transpose(p, (0, 4, 5, 1, 2, 3))  # (N, Ho, Wo, C, K, K)


def deform_sample(x, dy, dx, K):
    """Bilinear sampling of torchvision DeformConv2d (stride=1, pad=1, dil=1).
    x: (N, C, H, W); dy, dx: (N, H, W, K*K).  Returns (N, H, W, C, K*K)."""
    # TODO(synk): the data-dependent bilinear gather stays in plain JAX; a Pallas
    # version would need scalar-prefetched corner indices / manual DMA gather.
    N, C, H, W = x.shape
    kk = jnp.arange(K * K)
    kh = (kk // K).astype(jnp.float32).reshape(1, 1, 1, K * K)
    kw = (kk % K).astype(jnp.float32).reshape(1, 1, 1, K * K)
    h_idx = jnp.arange(H, dtype=jnp.float32).reshape(1, H, 1, 1)
    w_idx = jnp.arange(W, dtype=jnp.float32).reshape(1, 1, W, 1)
    py = h_idx - 1.0 + kh + dy       # sampling row (pad=1, dilation=1)
    px = w_idx - 1.0 + kw + dx       # sampling col

    y0 = jnp.floor(py)
    x0 = jnp.floor(px)
    y1, x1 = y0 + 1.0, x0 + 1.0
    wy1, wx1 = py - y0, px - x0
    wy0, wx0 = 1.0 - wy1, 1.0 - wx1

    x_flat = x.reshape(N, C, H * W)

    def corner(yc, xc, wgt):
        valid = (yc >= 0) & (yc <= H - 1) & (xc >= 0) & (xc <= W - 1)
        yi = jnp.clip(yc, 0, H - 1).astype(jnp.int32)
        xi = jnp.clip(xc, 0, W - 1).astype(jnp.int32)
        idx = yi * W + xi                                   # (N, H, W, KK)

        def gather_b(xf_b, idx_b):
            return jnp.take(xf_b, idx_b.reshape(-1), axis=1).reshape(C, H, W, K * K)

        g = jax.vmap(gather_b)(x_flat, idx)                 # (N, C, H, W, KK)
        w = (wgt * valid.astype(jnp.float32))[:, None]      # (N, 1, H, W, KK)
        return g * w

    # Running-sum accumulation over the 4 bilinear corners.
    val = None
    for yc, xc, wgt in ((y0, x0, wy0 * wx0), (y0, x1, wy0 * wx1),
                        (y1, x0, wy1 * wx0), (y1, x1, wy1 * wx1)):
        c = corner(yc, xc, wgt)
        val = c if val is None else val + c
    return jnp.transpose(val, (0, 2, 3, 1, 4))              # (N, H, W, C, KK)


def col2im_phase(yv, stride):
    """Phase-decomposed col2im (no scatter-add).
    yv: (N, H, W, K, K, C)  ->  up: (N, Hup, Wup, C), Hup=(H-1)*stride+K."""
    N, H, W, K, _, C = yv.shape
    s = stride
    Hup = (H - 1) * s + K
    Wup = (W - 1) * s + K
    Hq = pl.cdiv(Hup, s)
    Wq = pl.cdiv(Wup, s)
    # out[n, s*h+kh, s*w+kw, c] += yv[n,h,w,kh,kw,c]
    # phase (kh%s, kw%s); phase-row i = h + kh//s; phase-col j = w + kw//s.
    phases = [[jnp.zeros((N, Hq, Wq, C), yv.dtype) for _ in range(s)] for _ in range(s)]
    for kh in range(K):
        ph, oh = kh % s, kh // s
        for kw in range(K):
            pw, ow = kw % s, kw // s
            pad = ((0, 0), (oh, Hq - H - oh), (ow, Wq - W - ow), (0, 0))
            phases[ph][pw] = phases[ph][pw] + jnp.pad(yv[:, :, :, kh, kw, :], pad)
    # Interleave the s*s phase slabs, then crop to the true output size.
    rows = [jnp.stack(prow, axis=3) for prow in phases]      # each (N, Hq, Wq, s, C)
    up = jnp.stack(rows, axis=2)                             # (N, Hq, s, Wq, s, C)
    up = up.reshape(N, Hq * s, Wq * s, C)[:, :Hup, :Wup, :]
    return up
    # TODO(synk): single-pass Pallas phase-scatter kernel writing lane-dense slabs.


# ------------------------------- UpConvolution -------------------------------

def up_convolution(x, params, K=3, stride=2):
    """Forward pass of UpConvolution. x: (N, Cin, H, W) f32 -> (N, Cout, H', W') f32."""
    N, Cin, H, W = x.shape
    Cout = params["w_def"].shape[0]
    M = N * H * W

    # --- offsets = offset_convolution(x): Conv2d(Cin, 2*K*K, K, stride=1, pad=1)
    x_pad = jnp.pad(x, ((0, 0), (0, 0), (1, 1), (1, 1)))
    pat = im2col(x_pad, K).reshape(M, Cin * K * K)
    w_off_mat = params["w_off"].reshape(2 * K * K, Cin * K * K).T
    off = matmul_bias(pat, w_off_mat, params["b_off"])         # (M, 2*K*K) f32
    off = off.reshape(N, H, W, K * K, 2)
    dy, dx = off[..., 0], off[..., 1]                          # torchvision (dh, dw) order

    # --- deformable bilinear sampling (data-dependent gather stays in JAX)
    sampled = deform_sample(x, dy, dx, K)                      # (N, H, W, Cin, K*K)
    sp = sampled.reshape(M, Cin * K * K)

    # --- fused DeformConv2d matmul + ConvTranspose2d matmul:
    #     yv = sp @ (W_def @ W_t) + b_def @ W_t        (single Pallas matmul)
    w_def_mat = params["w_def"].reshape(Cout, Cin * K * K).T                   # (CinKK, Cout)
    w_t_perm = jnp.transpose(params["w_t"], (0, 2, 3, 1)).reshape(Cout, K * K * Cout)
    w_comb = w_def_mat.astype(jnp.float32) @ w_t_perm.astype(jnp.float32)      # (CinKK, KK*Cout)
    b_comb = params["b_def"].astype(jnp.float32) @ w_t_perm.astype(jnp.float32)
    yv = matmul_bias(sp, w_comb, b_comb)                       # (M, K*K*Cout) f32
    yv = yv.reshape(N, H, W, K, K, Cout)

    # --- ConvTranspose2d spatial placement: phase-decomposed col2im (no scatter-add)
    up = col2im_phase(yv, stride)                              # (N, Hup, Wup, Cout) NHWC
    # NOTE: the ConvTranspose bias b_t cancels exactly under training-mode BatchNorm
    # (batch statistics), so it is intentionally not added here.

    # --- BatchNorm2d (batch stats) + ReLU directly on the NHWC layout (no transposes)
    Hup, Wup = up.shape[1], up.shape[2]
    y = bn_relu_nhwc(up.reshape(N * Hup * Wup, Cout), params["gamma"], params["beta"])
    y = y.reshape(N, Hup, Wup, Cout)
    return jnp.transpose(y, (0, 3, 1, 2))                      # final small NCHW transpose


# ----------------------------------- main ------------------------------------

if __name__ == "__main__":
    N, Cin, H, W = 2, 4, 16, 16
    Cout, K, stride = 8, 3, 2

    key = jax.random.PRNGKey(0)
    ks = jax.random.split(key, 9)
    params = {
        "w_off": 0.05 * jax.random.normal(ks[0], (2 * K * K, Cin, K, K), jnp.float32),
        "b_off": 0.05 * jax.random.normal(ks[1], (2 * K * K,), jnp.float32),
        "w_def": 0.10 * jax.random.normal(ks[2], (Cout, Cin, K, K), jnp.float32),
        "b_def": 0.10 * jax.random.normal(ks[3], (Cout,), jnp.float32),
        "w_t":   0.10 * jax.random.normal(ks[4], (Cout, Cout, K, K), jnp.float32),
        "b_t":   0.10 * jax.random.normal(ks[5], (Cout,), jnp.float32),
        "gamma": 1.0 + 0.10 * jax.random.normal(ks[6], (Cout,), jnp.float32),
        "beta":  0.10 * jax.random.normal(ks[7], (Cout,), jnp.float32),
    }
    x = jax.random.normal(ks[8], (N, Cin, H, W), jnp.float32)

    out = jax.jit(up_convolution, static_argnames=("K", "stride"))(x, params, K=K, stride=stride)
    out = jax.block_until_ready(out)

    assert out.shape == (N, Cout, (H - 1) * stride + K, (W - 1) * stride + K)
    assert out.dtype == jnp.float32
    assert bool(jnp.all(jnp.isfinite(out)))
    assert bool(jnp.all(out >= 0.0))          # ReLU output
    print("KERNEL_OK")
</pallas_src>

<mosaic_0001>
module attributes {stable_mosaic.version = 11 : i64} {
  func.func @_mm_bias_kernel(%arg0: i32, %arg1: memref<256x36xf32, #tpu.memory_space<vmem>>, %arg2: memref<36x18xbf16, #tpu.memory_space<vmem>>, %arg3: memref<1x18xf32, #tpu.memory_space<vmem>>, %arg4: memref<256x18xf32, #tpu.memory_space<vmem>>) attributes {dimension_semantics = [#tpu.dimension_semantics<parallel>], iteration_bounds = array<i64: 2>, scalar_prefetch = 0 : i64, scratch_operands = 0 : i64, tpu.core_type = #tpu.core_type<tc>, window_params = [{transform_indices = @transform_0, window_bounds = array<i64: 256, 36>}, {pipeline_mode = #tpu.pipeline_mode<synchronous>, transform_indices = @transform_1, window_bounds = array<i64: 36, 18>}, {pipeline_mode = #tpu.pipeline_mode<synchronous>, transform_indices = @transform_2, window_bounds = array<i64: 1, 18>}, {transform_indices = @transform_3, window_bounds = array<i64: 256, 18>}]} {
    %c0 = arith.constant 0 : index
    %c0_0 = arith.constant 0 : index
    %0 = vector.load %arg1[%c0, %c0_0] : memref<256x36xf32, #tpu.memory_space<vmem>>, vector<256x36xf32>
    %1 = arith.truncf %0 : vector<256x36xf32> to vector<256x36xbf16>
    %c0_1 = arith.constant 0 : index
    %c0_2 = arith.constant 0 : index
    %2 = vector.load %arg2[%c0_1, %c0_2] : memref<36x18xbf16, #tpu.memory_space<vmem>>, vector<36x18xbf16>
    %cst = arith.constant dense<0.000000e+00> : vector<256x18xf32>
    %3 = tpu.matmul %1, %2, %cst {dimension_numbers = #tpu.dot_dimension_numbers<[1], [0], [0], [1], [0, 0, 1, 1], [], []>} : vector<256x36xbf16>, vector<36x18xbf16>, vector<256x18xf32> -> vector<256x18xf32>
    %c0_3 = arith.constant 0 : index
    %c0_4 = arith.constant 0 : index
    %4 = vector.load %arg3[%c0_3, %c0_4] : memref<1x18xf32, #tpu.memory_space<vmem>>, vector<1x18xf32>
    %5 = vector.broadcast %4 : vector<1x18xf32> to vector<256x18xf32>
    %6 = arith.addf %3, %5 : vector<256x18xf32>
    %c0_5 = arith.constant 0 : index
    %c0_6 = arith.constant 0 : index
    %7 = vector.load %arg4[%c0_5, %c0_6] : memref<256x18xf32, #tpu.memory_space<vmem>>, vector<256x18xf32>
    tpu.vector_store %arg4[%c0_5, %c0_6], %6 {strides = array<i32>} : memref<256x18xf32, #tpu.memory_space<vmem>>, vector<256x18xf32>,
    return
  }
  func.func @transform_0(%arg0: i32) -> (i32, i32) {
    %c0_i32 = arith.constant 0 : i32
    %c0_i32_0 = arith.constant 0 : i32
    return %arg0, %c0_i32 : i32, i32
  }
  func.func @transform_1(%arg0: i32) -> (i32, i32) {
    %c0_i32 = arith.constant 0 : i32
    %c0_i32_0 = arith.constant 0 : i32
    %c0_i32_1 = arith.constant 0 : i32
    return %c0_i32, %c0_i32_0 : i32, i32
  }
  func.func @transform_2(%arg0: i32) -> (i32, i32) {
    %c0_i32 = arith.constant 0 : i32
    %c0_i32_0 = arith.constant 0 : i32
    %c0_i32_1 = arith.constant 0 : i32
    return %c0_i32, %c0_i32_0 : i32, i32
  }
  func.func @transform_3(%arg0: i32) -> (i32, i32) {
    %c0_i32 = arith.constant 0 : i32
    %c0_i32_0 = arith.constant 0 : i32
    return %arg0, %c0_i32 : i32, i32
  }
}

module attributes {stable_mosaic.version = 11 : i64} {
  func.func @_mm_bias_kernel(%arg0: i32, %arg1: memref<256x36xf32, #tpu.memory_space<vmem>>, %arg2: memref<36x72xbf16, #tpu.memory_space<vmem>>, %arg3: memref<1x72xf32, #tpu.memory_space<vmem>>, %arg4: memref<256x72xf32, #tpu.memory_space<vmem>>) attributes {dimension_semantics = [#tpu.dimension_semantics<parallel>], iteration_bounds = array<i64: 2>, scalar_prefetch = 0 : i64, scratch_operands = 0 : i64, tpu.core_type = #tpu.core_type<tc>, window_params = [{transform_indices = @transform_0, window_bounds = array<i64: 256, 36>}, {pipeline_mode = #tpu.pipeline_mode<synchronous>, transform_indices = @transform_1, window_bounds = array<i64: 36, 72>}, {pipeline_mode = #tpu.pipeline_mode<synchronous>, transform_indices = @transform_2, window_bounds = array<i64: 1, 72>}, {transform_indices = @transform_3, window_bounds = array<i64: 256, 72>}]} {
    %c0 = arith.constant 0 : index
    %c0_0 = arith.constant 0 : index
    %0 = vector.load %arg1[%c0, %c0_0] : memref<256x36xf32, #tpu.memory_space<vmem>>, vector<256x36xf32>
    %1 = arith.truncf %0 : vector<256x36xf32> to vector<256x36xbf16>
    %c0_1 = arith.constant 0 : index
    %c0_2 = arith.constant 0 : index
    %2 = vector.load %arg2[%c0_1, %c0_2] : memref<36x72xbf16, #tpu.memory_space<vmem>>, vector<36x72xbf16>
    %cst = arith.constant dense<0.000000e+00> : vector<256x72xf32>
    %3 = tpu.matmul %1, %2, %cst {dimension_numbers = #tpu.dot_dimension_numbers<[1], [0], [0], [1], [0, 0, 1, 1], [], []>} : vector<256x36xbf16>, vector<36x72xbf16>, vector<256x72xf32> -> vector<256x72xf32>
    %c0_3 = arith.constant 0 : index
    %c0_4 = arith.constant 0 : index
    %4 = vector.load %arg3[%c0_3, %c0_4] : memref<1x72xf32, #tpu.memory_space<vmem>>, vector<1x72xf32>
    %5 = vector.broadcast %4 : vector<1x72xf32> to vector<256x72xf32>
    %6 = arith.addf %3, %5 : vector<256x72xf32>
    %c0_5 = arith.constant 0 : index
    %c0_6 = arith.constant 0 : index
    %7 = vector.load %arg4[%c0_5, %c0_6] : memref<256x72xf32, #tpu.memory_space<vmem>>, vector<256x72xf32>
    tpu.vector_store %arg4[%c0_5, %c0_6], %6 {strides = array<i32>} : memref<256x72xf32, #tpu.memory_space<vmem>>, vector<256x72xf32>,
    return
  }
  func.func @transform_0(%arg0: i32) -> (i32, i32) {
    %c0_i32 = arith.constant 0 : i32
    %c0_i32_0 = arith.constant 0 : i32
    return %arg0, %c0_i32 : i32, i32
  }
  func.func @transform_1(%arg0: i32) -> (i32, i32) {
    %c0_i32 = arith.constant 0 : i32
    %c0_i32_0 = arith.constant 0 : i32
    %c0_i32_1 = arith.constant 0 : i32
    return %c0_i32, %c0_i32_0 : i32, i32
  }
  func.func @transform_2(%arg0: i32) -> (i32, i32) {
    %c0_i32 = arith.constant 0 : i32
    %c0_i32_0 = arith.constant 0 : i32
    %c0_i32_1 = arith.constant 0 : i32
    return %c0_i32, %c0_i32_0 : i32, i32
  }
  func.func @transform_3(%arg0: i32) -> (i32, i32) {
    %c0_i32 = arith.constant 0 : i32
    %c0_i32_0 = arith.constant 0 : i32
    return %arg0, %c0_i32 : i32, i32
  }
}

module attributes {stable_mosaic.version = 11 : i64} {
  func.func @_bn_stats_kernel(%arg0: i32, %arg1: memref<1096x8xf32, #tpu.memory_space<vmem>>, %arg2: memref<1x8xf32, #tpu.memory_space<vmem>>, %arg3: memref<1x8xf32, #tpu.memory_space<vmem>>) attributes {dimension_semantics = [#tpu.dimension_semantics<arbitrary>], iteration_bounds = array<i64: 2>, scalar_prefetch = 0 : i64, scratch_operands = 0 : i64, tpu.core_type = #tpu.core_type<tc>, window_params = [{transform_indices = @transform_0, window_bounds = array<i64: 1096, 8>}, {pipeline_mode = #tpu.pipeline_mode<synchronous>, transform_indices = @transform_1, window_bounds = array<i64: 1, 8>}, {pipeline_mode = #tpu.pipeline_mode<synchronous>, transform_indices = @transform_2, window_bounds = array<i64: 1, 8>}]} {
    %c0_i32 = arith.constant 0 : i32
    %0 = arith.cmpi eq, %arg0, %c0_i32 : i32
    %1 = arith.extui %0 : i1 to i32
    %c0_i32_0 = arith.constant 0 : i32
    %2 = arith.cmpi ne, %1, %c0_i32_0 : i32
    scf.if %2 {
      %cst_11 = arith.constant 0.000000e+00 : f32
      %15 = vector.broadcast %cst_11 : f32 to vector<1x8xf32>
      %c0_12 = arith.constant 0 : index
      %c0_13 = arith.constant 0 : index
      %16 = vector.load %arg2[%c0_12, %c0_13] : memref<1x8xf32, #tpu.memory_space<vmem>>, vector<1x8xf32>
      tpu.vector_store %arg2[%c0_12, %c0_13], %15 {strides = array<i32>} : memref<1x8xf32, #tpu.memory_space<vmem>>, vector<1x8xf32>,
      %cst_14 = arith.constant 0.000000e+00 : f32
      %17 = vector.broadcast %cst_14 : f32 to vector<1x8xf32>
      %c0_15 = arith.constant 0 : index
      %c0_16 = arith.constant 0 : index
      %18 = vector.load %arg3[%c0_15, %c0_16] : memref<1x8xf32, #tpu.memory_space<vmem>>, vector<1x8xf32>
      tpu.vector_store %arg3[%c0_15, %c0_16], %17 {strides = array<i32>} : memref<1x8xf32, #tpu.memory_space<vmem>>, vector<1x8xf32>,
    } else {
    }
    %c0 = arith.constant 0 : index
    %c0_1 = arith.constant 0 : index
    %3 = vector.load %arg1[%c0, %c0_1] : memref<1096x8xf32, #tpu.memory_space<vmem>>, vector<1096x8xf32>
    %c0_2 = arith.constant 0 : index
    %c0_3 = arith.constant 0 : index
    %4 = vector.load %arg2[%c0_2, %c0_3] : memref<1x8xf32, #tpu.memory_space<vmem>>, vector<1x8xf32>
    %cst = arith.constant dense<0.000000e+00> : vector<8xf32>
    %5 = vector.multi_reduction <add>, %3, %cst [0] : vector<1096x8xf32> to vector<8xf32>
    %6 = vector.shape_cast %5 : vector<8xf32> to vector<1x8xf32>
    %7 = arith.addf %4, %6 : vector<1x8xf32>
    %c0_4 = arith.constant 0 : index
    %c0_5 = arith.constant 0 : index
    %8 = vector.load %arg2[%c0_4, %c0_5] : memref<1x8xf32, #tpu.memory_space<vmem>>, vector<1x8xf32>
    tpu.vector_store %arg2[%c0_4, %c0_5], %7 {strides = array<i32>} : memref<1x8xf32, #tpu.memory_space<vmem>>, vector<1x8xf32>,
    %c0_6 = arith.constant 0 : index
    %c0_7 = arith.constant 0 : index
    %9 = vector.load %arg3[%c0_6, %c0_7] : memref<1x8xf32, #tpu.memory_space<vmem>>, vector<1x8xf32>
    %10 = arith.mulf %3, %3 : vector<1096x8xf32>
    %cst_8 = arith.constant dense<0.000000e+00> : vector<8xf32>
    %11 = vector.multi_reduction <add>, %10, %cst_8 [0] : vector<1096x8xf32> to vector<8xf32>
    %12 = vector.shape_cast %11 : vector<8xf32> to vector<1x8xf32>
    %13 = arith.addf %9, %12 : vector<1x8xf32>
    %c0_9 = arith.constant 0 : index
    %c0_10 = arith.constant 0 : index
    %14 = vector.load %arg3[%c0_9, %c0_10] : memref<1x8xf32, #tpu.memory_space<vmem>>, vector<1x8xf32>
    tpu.vector_store %arg3[%c0_9, %c0_10], %13 {strides = array<i32>} : memref<1x8xf32, #tpu.memory_space<vmem>>, vector<1x8xf32>,
    return
  }
  func.func @transform_0(%arg0: i32) -> (i32, i32) {
    %c0_i32 = arith.constant 0 : i32
    %c0_i32_0 = arith.constant 0 : i32
    return %arg0, %c0_i32 : i32, i32
  }
  func.func @transform_1(%arg0: i32) -> (i32, i32) {
    %c0_i32 = arith.constant 0 : i32
    %c0_i32_0 = arith.constant 0 : i32
    %c0_i32_1 = arith.constant 0 : i32
    return %c0_i32, %c0_i32_0 : i32, i32
  }
  func.func @transform_2(%arg0: i32) -> (i32, i32) {
    %c0_i32 = arith.constant 0 : i32
    %c0_i32_0 = arith.constant 0 : i32
    %c0_i32_1 = arith.constant 0 : i32
    return %c0_i32, %c0_i32_0 : i32, i32
  }
}

module attributes {stable_mosaic.version = 11 : i64} {
  func.func @_bn_apply_kernel(%arg0: i32, %arg1: memref<1096x8xf32, #tpu.memory_space<vmem>>, %arg2: memref<1x8xf32, #tpu.memory_space<vmem>>, %arg3: memref<1x8xf32, #tpu.memory_space<vmem>>, %arg4: memref<1096x8xf32, #tpu.memory_space<vmem>>) attributes {dimension_semantics = [#tpu.dimension_semantics<parallel>], iteration_bounds = array<i64: 2>, scalar_prefetch = 0 : i64, scratch_operands = 0 : i64, tpu.core_type = #tpu.core_type<tc>, window_params = [{transform_indices = @transform_0, window_bounds = array<i64: 1096, 8>}, {pipeline_mode = #tpu.pipeline_mode<synchronous>, transform_indices = @transform_1, window_bounds = array<i64: 1, 8>}, {pipeline_mode = #tpu.pipeline_mode<synchronous>, transform_indices = @transform_2, window_bounds = array<i64: 1, 8>}, {transform_indices = @transform_3, window_bounds = array<i64: 1096, 8>}]} {
    %c0 = arith.constant 0 : index
    %c0_0 = arith.constant 0 : index
    %0 = vector.load %arg1[%c0, %c0_0] : memref<1096x8xf32, #tpu.memory_space<vmem>>, vector<1096x8xf32>
    %c0_1 = arith.constant 0 : index
    %c0_2 = arith.constant 0 : index
    %1 = vector.load %arg2[%c0_1, %c0_2] : memref<1x8xf32, #tpu.memory_space<vmem>>, vector<1x8xf32>
    %2 = vector.broadcast %1 : vector<1x8xf32> to vector<1096x8xf32>
    %3 = arith.mulf %0, %2 : vector<1096x8xf32>
    %c0_3 = arith.constant 0 : index
    %c0_4 = arith.constant 0 : index
    %4 = vector.load %arg3[%c0_3, %c0_4] : memref<1x8xf32, #tpu.memory_space<vmem>>, vector<1x8xf32>
    %5 = vector.broadcast %4 : vector<1x8xf32> to vector<1096x8xf32>
    %6 = arith.addf %3, %5 : vector<1096x8xf32>
    %cst = arith.constant 0.000000e+00 : f32
    %7 = vector.broadcast %cst : f32 to vector<1096x8xf32>
    %8 = arith.maximumf %6, %7 : vector<1096x8xf32>
    %c0_5 = arith.constant 0 : index
    %c0_6 = arith.constant 0 : index
    %9 = vector.load %arg4[%c0_5, %c0_6] : memref<1096x8xf32, #tpu.memory_space<vmem>>, vector<1096x8xf32>
    tpu.vector_store %arg4[%c0_5, %c0_6], %8 {strides = array<i32>} : memref<1096x8xf32, #tpu.memory_space<vmem>>, vector<1096x8xf32>,
    return
  }
  func.func @transform_0(%arg0: i32) -> (i32, i32) {
    %c0_i32 = arith.constant 0 : i32
    %c0_i32_0 = arith.constant 0 : i32
    return %arg0, %c0_i32 : i32, i32
  }
  func.func @transform_1(%arg0: i32) -> (i32, i32) {
    %c0_i32 = arith.constant 0 : i32
    %c0_i32_0 = arith.constant 0 : i32
    %c0_i32_1 = arith.constant 0 : i32
    return %c0_i32, %c0_i32_0 : i32, i32
  }
  func.func @transform_2(%arg0: i32) -> (i32, i32) {
    %c0_i32 = arith.constant 0 : i32
    %c0_i32_0 = arith.constant 0 : i32
    %c0_i32_1 = arith.constant 0 : i32
    return %c0_i32, %c0_i32_0 : i32, i32
  }
  func.func @transform_3(%arg0: i32) -> (i32, i32) {
    %c0_i32 = arith.constant 0 : i32
    %c0_i32_0 = arith.constant 0 : i32
    return %arg0, %c0_i32 : i32, i32
  }
}

</mosaic_0001>

<bundles_post_ra>
// kernel: up_convolution.4
= control target key start
LH: loop header
LB: loop body
LE: loop exit
PB: predicated region body
PF: predicated region fallthrough
CT: control target
= control target key end

     0   :  { %s561_s12 = smov 0   ;;  %s747_s0 = inlined_call_operand.vmem [shape: f32[512,36], index: 0, kind: input, shape index: {}]   ;;  %s748_s1 = inlined_call_operand.vmem [shape: bf16[36,18], index: 1, kind: input, shape index: {}]   ;;  %s749_s2 = inlined_call_operand.vmem [shape: f32[1,18], index: 2, kind: input, shape index: {}]   ;;  %s750_s3 = inlined_call_operand.vmem [shape: f32[512,18], index: 3, kind: output, shape index: {}]  }
   0x1 LB: > { %s478_s13 = sadd.s32 4294967295, %s539_s12   ;;  %p482_p0 = scmp.ge.s32.totalorder %s539_s12, 1  ;;  %s539_s12 = sphi %s561_s12, %s13_s12  }
   0x2   : > { %p138_p1 = scmp.lt.s32.totalorder %s539_s12, 3 }
   0x4   : > { %p139_p2 = pnand %p482_p0, %p138_p1 }
   0x5   : > { %s483_s16 = sshll.u32 (!%p139_p2), %s478_s13, 5 }
   0x6   : > { %142 = sbr.rel (%p139_p2) target bundleno = 221 (0xdd), region = 32  ;;  %p163_p3 = scmp.lt.s32.totalorder (!%p139_p2), %s483_s16, 63 }
   0xb   : > { %v227_v0 = vld [vmem:[%s748_s1 + $0x10] sm:$0x3]  ;;  %vm296_vm0 = vcmask 1041408   ;;  %s752_s16 = smov (!%p163_p3, %s483_s16), 63  ;;  %v514_v4 = vld [vmem:[%s748_s1 + $0x8] sm:$0xff]  ;;  %v513_v5 = vld [vmem:[%s748_s1] sm:$0xff] }
   0xc   : > { %v241_v1 = vunpack.c.l.b16 %v227_v0  ;;  %s484_s17 = sshll.u32 %s752_s16, 3  ;;  %vm247_vm1 = vcmask 293888   ;;  %v639_v54 = vld [vmem:[%s749_s2] ss:$0 sm:$0xff]  ;;  %vm389_vm2 = vcmask 146432  }
   0xd   : > { %s583_s22 = scalar_lea.vmem %s747_s0, %s484_s17  ;;  %s646_s29 = scalar_lea.vmem %s750_s3, %s484_s17 }
   0xe   : > { %v244_v2 = vpack.c.b16 %v241_v1, %v241_v1  ;;  %v175_v6 = vld [vmem:[%s583_s22] sm:$0xff]  ;;  %v176_v7 = vld [vmem:[%s583_s22 + $0x8] sm:$0xff]  ;;  %v177_v18 = vld [vmem:[%s583_s22 + $0x10] sm:$0xff] }
   0xf   : > { %v183_v8 = vld [vmem:[%s583_s22 + $0x40] sm:$0xff]  ;;  %v184_v9 = vld [vmem:[%s583_s22 + $0x48] sm:$0xff]  ;;  %v207_v14 = vpack.c.bf16 %v176_v7, %v175_v6  ;;  %v178_v19 = vld [vmem:[%s583_s22 + $0x18] sm:$0xff] }
  0x10   : > { %v298_v3 = vsel %vm296_vm0, %v244_v2, 0  ;;  %v191_v10 = vld [vmem:[%s583_s22 + $0x80] sm:$0xff]  ;;  %v192_v11 = vld [vmem:[%s583_s22 + $0x88] sm:$0xff]  ;;  %v211_v15 = vpack.c.bf16 %v184_v9, %v183_v8  ;;  %v185_v20 = vld [vmem:[%s583_s22 + $0x50] sm:$0xff]  ;;  %v208_v26 = vpack.c.bf16 %v178_v19, %v177_v18 }
  0x11   : > { %305 = vmatpush.bf16.msra.mxu0 %v298_v3  ;;  %515 = vmatpush.bf16.msra.mxu1 %v298_v3  ;;  %v199_v12 = vld [vmem:[%s583_s22 + $0xc0] sm:$0xff]  ;;  %v200_v13 = vld [vmem:[%s583_s22 + $0xc8] sm:$0xff]  ;;  %v215_v16 = vpack.c.bf16 %v192_v11, %v191_v10  ;;  %v186_v21 = vld [vmem:[%s583_s22 + $0x58] sm:$0xff] }
  0x12   : > { %516 = vmatpush.bf16.msra.mxu2 %v298_v3  ;;  %517 = vmatpush.bf16.msra.mxu3 %v298_v3  ;;  %v219_v17 = vpack.c.bf16 %v200_v13, %v199_v12  ;;  %v193_v22 = vld [vmem:[%s583_s22 + $0x90] sm:$0xff]  ;;  %v194_v23 = vld [vmem:[%s583_s22 + $0x98] sm:$0xff]  ;;  %v212_v27 = vpack.c.bf16 %v186_v21, %v185_v20  ;;  %v179_v30 = vld [vmem:[%s583_s22 + $0x20] sm:$0xff] }
  0x13   : > { %v201_v24 = vld [vmem:[%s583_s22 + $0xd0] sm:$0xff]  ;;  %v202_v25 = vld [vmem:[%s583_s22 + $0xd8] sm:$0xff]  ;;  %v216_v28 = vpack.c.bf16 %v194_v23, %v193_v22  ;;  %v180_v31 = vld [vmem:[%s583_s22 + $0x28] sm:$0xff] }
  0x14   : > { %v220_v29 = vpack.c.bf16 %v202_v25, %v201_v24  ;;  %v187_v32 = vld [vmem:[%s583_s22 + $0x60] sm:$0xff]  ;;  %v188_v33 = vld [vmem:[%s583_s22 + $0x68] sm:$0xff]  ;;  %v209_v38 = vpack.c.bf16 %v180_v31, %v179_v30  ;;  %v181_v42 = vld [vmem:[%s583_s22 + $0x30] sm:$0xff] }
  0x15   : > { %306 = vmatpush.bf16.msra.mxu0 %v514_v4  ;;  %518 = vmatpush.bf16.msra.mxu1 %v514_v4  ;;  %v195_v34 = vld [vmem:[%s583_s22 + $0xa0] sm:$0xff]  ;;  %v196_v35 = vld [vmem:[%s583_s22 + $0xa8] sm:$0xff]  ;;  %v213_v39 = vpack.c.bf16 %v188_v33, %v187_v32  ;;  %v182_v43 = vld [vmem:[%s583_s22 + $0x38] sm:$0xff] }
  0x16   : > { %519 = vmatpush.bf16.msra.mxu2 %v514_v4  ;;  %520 = vmatpush.bf16.msra.mxu3 %v514_v4  ;;  %v203_v36 = vld [vmem:[%s583_s22 + $0xe0] sm:$0xff]  ;;  %v204_v37 = vld [vmem:[%s583_s22 + $0xe8] sm:$0xff]  ;;  %v217_v40 = vpack.c.bf16 %v196_v35, %v195_v34  ;;  %v189_v44 = vld [vmem:[%s583_s22 + $0x70] sm:$0xff]  ;;  %v210_v50 = vpack.c.bf16 %v182_v43, %v181_v42 }
  0x17   : > { %v221_v41 = vpack.c.bf16 %v204_v37, %v203_v36  ;;  %v190_v45 = vld [vmem:[%s583_s22 + $0x78] sm:$0xff]  ;;  %v197_v46 = vld [vmem:[%s583_s22 + $0xb0] sm:$0xff] }
  0x18   : > { %v198_v47 = vld [vmem:[%s583_s22 + $0xb8] sm:$0xff]  ;;  %v205_v48 = vld [vmem:[%s583_s22 + $0xf0] sm:$0xff]  ;;  %v214_v51 = vpack.c.bf16 %v190_v45, %v189_v44 }
  0x19   : > { %307 = vmatpush.bf16.msra.mxu0 %v513_v5  ;;  %521 = vmatpush.bf16.msra.mxu1 %v513_v5  ;;  %v206_v49 = vld [vmem:[%s583_s22 + $0xf8] sm:$0xff]  ;;  %v218_v52 = vpack.c.bf16 %v198_v47, %v197_v46 }
  0x1a   : > { %522 = vmatpush.bf16.msra.mxu2 %v513_v5  ;;  %523 = vmatpush.bf16.msra.mxu3 %v513_v5  ;;  %v222_v53 = vpack.c.bf16 %v206_v49, %v205_v48 }
  0x1c   : > { %495 = vmatmul.msk.bf16.vlgmr.msra.gmra.mxu0 %vm247_vm1, %v207_v14  ;;  %499 = vmatmul.msk.bf16.vlgmr.msra.gmra.mxu1 %vm247_vm1, %v211_v15 }
  0x1d   : > { %503 = vmatmul.msk.bf16.vlgmr.msra.gmra.mxu2 %vm247_vm1, %v215_v16  ;;  %507 = vmatmul.msk.bf16.vlgmr.msra.gmra.mxu3 %vm247_vm1, %v219_v17 }
  0x2c   : > { %496 = vmatmul.msk.bf16.gmra.mxu0 %vm247_vm1, %v208_v26  ;;  %500 = vmatmul.msk.bf16.gmra.mxu1 %vm247_vm1, %v212_v27 }
  0x2d   : > { %504 = vmatmul.msk.bf16.gmra.mxu2 %vm247_vm1, %v216_v28  ;;  %508 = vmatmul.msk.bf16.gmra.mxu3 %vm247_vm1, %v220_v29 }
  0x3c   : > { %497 = vmatmul.msk.bf16.gmra.mxu0 %vm247_vm1, %v209_v38  ;;  %501 = vmatmul.msk.bf16.gmra.mxu1 %vm247_vm1, %v213_v39 }
  0x3d   : > { %505 = vmatmul.msk.bf16.gmra.mxu2 %vm247_vm1, %v217_v40  ;;  %509 = vmatmul.msk.bf16.gmra.mxu3 %vm247_vm1, %v221_v41 }
  0x4c   : > { %498 = vmatmul.msk.bf16.gmra.mxu0 %vm247_vm1, %v210_v50  ;;  %502 = vmatmul.msk.bf16.gmra.mxu1 %vm247_vm1, %v214_v51 }
  0x4d   : > { %506 = vmatmul.msk.bf16.gmra.mxu2 %vm247_vm1, %v218_v52  ;;  %510 = vmatmul.msk.bf16.gmra.mxu3 %vm247_vm1, %v222_v53 }
  0x99   : > { %v309_v55 = vpop.f32.mrf.mxu0  ;;  %v329_v56 = vpop.f32.mrf.mxu1 }
  0x9a   : > { %v310_v57 = vadd.f32 %v639_v54, %v309_v55  ;;  %v330_v58 = vadd.f32 %v639_v54, %v329_v56 }
  0x9c   : > { %390 = vst.msk [vmem:[%s646_s29] sm:$0xff] %vm389_vm2, %v310_v57 }
  0x9d   : > { %398 = vst.msk [vmem:[%s646_s29 + $0x40] sm:$0xff] %vm389_vm2, %v330_v58 }
  0xa0   : > { %v349_v59 = vpop.f32.mrf.mxu2  ;;  %v369_v60 = vpop.f32.mrf.mxu3 }
  0xa1   : > { %v350_v61 = vadd.f32 %v639_v54, %v349_v59  ;;  %v370_v62 = vadd.f32 %v639_v54, %v369_v60  ;;  %v311_v63 = vpop.f32.mrf.mxu0  ;;  %v331_v0 = vpop.f32.mrf.mxu1 }
  0xa2   : > { %v312_v1 = vadd.f32 %v639_v54, %v311_v63  ;;  %v332_v2 = vadd.f32 %v639_v54, %v331_v0 }
  0xa3   : > { %406 = vst.msk [vmem:[%s646_s29 + $0x80] sm:$0xff] %vm389_vm2, %v350_v61 }
  0xa4   : > { %414 = vst.msk [vmem:[%s646_s29 + $0xc0] sm:$0xff] %vm389_vm2, %v370_v62 }
  0xa5   : > { %391 = vst.msk [vmem:[%s646_s29 + $0x8] sm:$0xff] %vm389_vm2, %v312_v1 }
  0xa6   : > { %399 = vst.msk [vmem:[%s646_s29 + $0x48] sm:$0xff] %vm389_vm2, %v332_v2 }
  0xa8   : > { %v351_v3 = vpop.f32.mrf.mxu2  ;;  %v371_v4 = vpop.f32.mrf.mxu3 }
  0xa9   : > { %v352_v5 = vadd.f32 %v639_v54, %v351_v3  ;;  %v372_v6 = vadd.f32 %v639_v54, %v371_v4  ;;  %v314_v7 = vpop.f32.mrf.mxu0  ;;  %v334_v8 = vpop.f32.mrf.mxu1 }
  0xaa   : > { %v315_v9 = vadd.f32 %v639_v54, %v314_v7  ;;  %v335_v10 = vadd.f32 %v639_v54, %v334_v8 }
  0xab   : > { %407 = vst.msk [vmem:[%s646_s29 + $0x88] sm:$0xff] %vm389_vm2, %v352_v5 }
  0xac   : > { %415 = vst.msk [vmem:[%s646_s29 + $0xc8] sm:$0xff] %vm389_vm2, %v372_v6 }
  0xad   : > { %392 = vst.msk [vmem:[%s646_s29 + $0x10] sm:$0xff] %vm389_vm2, %v315_v9 }
  0xae   : > { %400 = vst.msk [vmem:[%s646_s29 + $0x50] sm:$0xff] %vm389_vm2, %v335_v10 }
  0xb0   : > { %v354_v11 = vpop.f32.mrf.mxu2  ;;  %v374_v12 = vpop.f32.mrf.mxu3 }
  0xb1   : > { %v355_v13 = vadd.f32 %v639_v54, %v354_v11  ;;  %v375_v14 = vadd.f32 %v639_v54, %v374_v12  ;;  %v316_v15 = vpop.f32.mrf.mxu0  ;;  %v336_v16 = vpop.f32.mrf.mxu1 }
  0xb2   : > { %v317_v17 = vadd.f32 %v639_v54, %v316_v15  ;;  %v337_v18 = vadd.f32 %v639_v54, %v336_v16 }
  0xb3   : > { %408 = vst.msk [vmem:[%s646_s29 + $0x90] sm:$0xff] %vm389_vm2, %v355_v13 }
  0xb4   : > { %416 = vst.msk [vmem:[%s646_s29 + $0xd0] sm:$0xff] %vm389_vm2, %v375_v14 }
  0xb5   : > { %393 = vst.msk [vmem:[%s646_s29 + $0x18] sm:$0xff] %vm389_vm2, %v317_v17 }
  0xb6   : > { %401 = vst.msk [vmem:[%s646_s29 + $0x58] sm:$0xff] %vm389_vm2, %v337_v18 }
  0xb8   : > { %v356_v19 = vpop.f32.mrf.mxu2  ;;  %v376_v20 = vpop.f32.mrf.mxu3 }
  0xb9   : > { %v357_v21 = vadd.f32 %v639_v54, %v356_v19  ;;  %v377_v22 = vadd.f32 %v639_v54, %v376_v20  ;;  %v319_v23 = vpop.f32.mrf.mxu0  ;;  %v339_v24 = vpop.f32.mrf.mxu1 }
  0xba   : > { %v320_v25 = vadd.f32 %v639_v54, %v319_v23  ;;  %v340_v26 = vadd.f32 %v639_v54, %v339_v24 }
  0xbb   : > { %409 = vst.msk [vmem:[%s646_s29 + $0x98] sm:$0xff] %vm389_vm2, %v357_v21 }
  0xbc   : > { %417 = vst.msk [vmem:[%s646_s29 + $0xd8] sm:$0xff] %vm389_vm2, %v377_v22 }
  0xbd   : > { %394 = vst.msk [vmem:[%s646_s29 + $0x20] sm:$0xff] %vm389_vm2, %v320_v25 }
  0xbe   : > { %402 = vst.msk [vmem:[%s646_s29 + $0x60] sm:$0xff] %vm389_vm2, %v340_v26 }
  0xc0   : > { %v359_v27 = vpop.f32.mrf.mxu2  ;;  %v379_v28 = vpop.f32.mrf.mxu3 }
  0xc1   : > { %v360_v29 = vadd.f32 %v639_v54, %v359_v27  ;;  %v380_v30 = vadd.f32 %v639_v54, %v379_v28  ;;  %v321_v31 = vpop.f32.mrf.mxu0  ;;  %v341_v32 = vpop.f32.mrf.mxu1 }
  0xc2   : > { %v322_v33 = vadd.f32 %v639_v54, %v321_v31  ;;  %v342_v34 = vadd.f32 %v639_v54, %v341_v32 }
  0xc3   : > { %410 = vst.msk [vmem:[%s646_s29 + $0xa0] sm:$0xff] %vm389_vm2, %v360_v29 }
  0xc4   : > { %418 = vst.msk [vmem:[%s646_s29 + $0xe0] sm:$0xff] %vm389_vm2, %v380_v30 }
  0xc5   : > { %395 = vst.msk [vmem:[%s646_s29 + $0x28] sm:$0xff] %vm389_vm2, %v322_v33 }
  0xc6   : > { %403 = vst.msk [vmem:[%s646_s29 + $0x68] sm:$0xff] %vm389_vm2, %v342_v34 }
  0xc8   : > { %v361_v35 = vpop.f32.mrf.mxu2  ;;  %v381_v36 = vpop.f32.mrf.mxu3 }
  0xc9   : > { %v362_v37 = vadd.f32 %v639_v54, %v361_v35  ;;  %v382_v38 = vadd.f32 %v639_v54, %v381_v36  ;;  %v324_v39 = vpop.f32.mrf.mxu0  ;;  %v344_v40 = vpop.f32.mrf.mxu1 }
  0xca   : > { %v325_v41 = vadd.f32 %v639_v54, %v324_v39  ;;  %v345_v42 = vadd.f32 %v639_v54, %v344_v40 }
  0xcb   : > { %411 = vst.msk [vmem:[%s646_s29 + $0xa8] sm:$0xff] %vm389_vm2, %v362_v37 }
  0xcc   : > { %419 = vst.msk [vmem:[%s646_s29 + $0xe8] sm:$0xff] %vm389_vm2, %v382_v38 }
  0xcd   : > { %396 = vst.msk [vmem:[%s646_s29 + $0x30] sm:$0xff] %vm389_vm2, %v325_v41 }
  0xce   : > { %404 = vst.msk [vmem:[%s646_s29 + $0x70] sm:$0xff] %vm389_vm2, %v345_v42 }
  0xd0   : > { %v364_v43 = vpop.f32.mrf.mxu2  ;;  %v384_v44 = vpop.f32.mrf.mxu3 }
  0xd1   : > { %v365_v45 = vadd.f32 %v639_v54, %v364_v43  ;;  %v385_v46 = vadd.f32 %v639_v54, %v384_v44  ;;  %v326_v47 = vpop.f32.mrf.mxu0  ;;  %v346_v48 = vpop.f32.mrf.mxu1 }
  0xd2   : > { %v327_v49 = vadd.f32 %v639_v54, %v326_v47  ;;  %v347_v50 = vadd.f32 %v639_v54, %v346_v48 }
  0xd3   : > { %412 = vst.msk [vmem:[%s646_s29 + $0xb0] sm:$0xff] %vm389_vm2, %v365_v45 }
  0xd4   : > { %420 = vst.msk [vmem:[%s646_s29 + $0xf0] sm:$0xff] %vm389_vm2, %v385_v46 }
  0xd5   : > { %397 = vst.msk [vmem:[%s646_s29 + $0x38] sm:$0xff] %vm389_vm2, %v327_v49 }
  0xd6   : > { %405 = vst.msk [vmem:[%s646_s29 + $0x78] sm:$0xff] %vm389_vm2, %v347_v50 }
  0xd8   : > { %v366_v51 = vpop.f32.mrf.mxu2  ;;  %v386_v52 = vpop.f32.mrf.mxu3 }
  0xd9   : > { %v367_v53 = vadd.f32 %v639_v54, %v366_v51  ;;  %v387_v55 = vadd.f32 %v639_v54, %v386_v52 }
  0xdb   : > { %413 = vst.msk [vmem:[%s646_s29 + $0xb8] sm:$0xff] %vm389_vm2, %v367_v53 }
  0xdc   : > { %421 = vst.msk [vmem:[%s646_s29 + $0xf8] sm:$0xff] %vm389_vm2, %v387_v55 }
  0xdd PF: > { %s13_s12 = sadd.s32 1, %s539_s12  }
  0xde   : > { %p10_p4 = scmp.ge.s32.totalorder %s13_s12, 4  }
  0xe0   :  { %12 = sbr.rel (!%p10_p4) target bundleno = 1 (0x1), region = 62 }

// kernel: up_convolution.5
= control target key start
LH: loop header
LB: loop body
LE: loop exit
PB: predicated region body
PF: predicated region fallthrough
CT: control target
= control target key end

     0   :  { %s561_s12 = smov 0   ;;  %s747_s0 = inlined_call_operand.vmem [shape: f32[512,36], index: 0, kind: input, shape index: {}]   ;;  %s748_s1 = inlined_call_operand.vmem [shape: bf16[36,72], index: 1, kind: input, shape index: {}]   ;;  %s749_s2 = inlined_call_operand.vmem [shape: f32[1,72], index: 2, kind: input, shape index: {}]   ;;  %s750_s3 = inlined_call_operand.vmem [shape: f32[512,72], index: 3, kind: output, shape index: {}]  }
   0x1 LB: > { %s478_s13 = sadd.s32 4294967295, %s539_s12   ;;  %p482_p0 = scmp.ge.s32.totalorder %s539_s12, 1  ;;  %s539_s12 = sphi %s561_s12, %s13_s12  }
   0x2   : > { %p138_p1 = scmp.lt.s32.totalorder %s539_s12, 3 }
   0x4   : > { %p139_p2 = pnand %p482_p0, %p138_p1 }
   0x5   : > { %s483_s16 = sshll.u32 (!%p139_p2), %s478_s13, 5 }
   0x6   : > { %142 = sbr.rel (%p139_p2) target bundleno = 221 (0xdd), region = 32  ;;  %p163_p3 = scmp.lt.s32.totalorder (!%p139_p2), %s483_s16, 63 }
   0xb   : > { %v227_v0 = vld [vmem:[%s748_s1 + $0x10] sm:$0x3]  ;;  %vm296_vm0 = vcmask 1041408   ;;  %s752_s16 = smov (!%p163_p3, %s483_s16), 63  ;;  %v514_v4 = vld [vmem:[%s748_s1 + $0x8] sm:$0xff]  ;;  %v513_v5 = vld [vmem:[%s748_s1] sm:$0xff] }
   0xc   : > { %v241_v1 = vunpack.c.l.b16 %v227_v0  ;;  %s484_s17 = sshll.u32 %s752_s16, 3  ;;  %vm247_vm1 = vcmask 293888   ;;  %v639_v54 = vld [vmem:[%s749_s2] ss:$0 sm:$0xff]  ;;  %vm389_vm2 = vcmask 588800  }
   0xd   : > { %s583_s22 = scalar_lea.vmem %s747_s0, %s484_s17  ;;  %s646_s29 = scalar_lea.vmem %s750_s3, %s484_s17 }
   0xe   : > { %v244_v2 = vpack.c.b16 %v241_v1, %v241_v1  ;;  %v175_v6 = vld [vmem:[%s583_s22] sm:$0xff]  ;;  %v176_v7 = vld [vmem:[%s583_s22 + $0x8] sm:$0xff]  ;;  %v177_v18 = vld [vmem:[%s583_s22 + $0x10] sm:$0xff] }
   0xf   : > { %v183_v8 = vld [vmem:[%s583_s22 + $0x40] sm:$0xff]  ;;  %v184_v9 = vld [vmem:[%s583_s22 + $0x48] sm:$0xff]  ;;  %v207_v14 = vpack.c.bf16 %v176_v7, %v175_v6  ;;  %v178_v19 = vld [vmem:[%s583_s22 + $0x18] sm:$0xff] }
  0x10   : > { %v298_v3 = vsel %vm296_vm0, %v244_v2, 0  ;;  %v191_v10 = vld [vmem:[%s583_s22 + $0x80] sm:$0xff]  ;;  %v192_v11 = vld [vmem:[%s583_s22 + $0x88] sm:$0xff]  ;;  %v211_v15 = vpack.c.bf16 %v184_v9, %v183_v8  ;;  %v185_v20 = vld [vmem:[%s583_s22 + $0x50] sm:$0xff]  ;;  %v208_v26 = vpack.c.bf16 %v178_v19, %v177_v18 }
  0x11   : > { %305 = vmatpush.bf16.msra.mxu0 %v298_v3  ;;  %515 = vmatpush.bf16.msra.mxu1 %v298_v3  ;;  %v199_v12 = vld [vmem:[%s583_s22 + $0xc0] sm:$0xff]  ;;  %v200_v13 = vld [vmem:[%s583_s22 + $0xc8] sm:$0xff]  ;;  %v215_v16 = vpack.c.bf16 %v192_v11, %v191_v10  ;;  %v186_v21 = vld [vmem:[%s583_s22 + $0x58] sm:$0xff] }
  0x12   : > { %516 = vmatpush.bf16.msra.mxu2 %v298_v3  ;;  %517 = vmatpush.bf16.msra.mxu3 %v298_v3  ;;  %v219_v17 = vpack.c.bf16 %v200_v13, %v199_v12  ;;  %v193_v22 = vld [vmem:[%s583_s22 + $0x90] sm:$0xff]  ;;  %v194_v23 = vld [vmem:[%s583_s22 + $0x98] sm:$0xff]  ;;  %v212_v27 = vpack.c.bf16 %v186_v21, %v185_v20  ;;  %v179_v30 = vld [vmem:[%s583_s22 + $0x20] sm:$0xff] }
  0x13   : > { %v201_v24 = vld [vmem:[%s583_s22 + $0xd0] sm:$0xff]  ;;  %v202_v25 = vld [vmem:[%s583_s22 + $0xd8] sm:$0xff]  ;;  %v216_v28 = vpack.c.bf16 %v194_v23, %v193_v22  ;;  %v180_v31 = vld [vmem:[%s583_s22 + $0x28] sm:$0xff] }
  0x14   : > { %v220_v29 = vpack.c.bf16 %v202_v25, %v201_v24  ;;  %v187_v32 = vld [vmem:[%s583_s22 + $0x60] sm:$0xff]  ;;  %v188_v33 = vld [vmem:[%s583_s22 + $0x68] sm:$0xff]  ;;  %v209_v38 = vpack.c.bf16 %v180_v31, %v179_v30  ;;  %v181_v42 = vld [vmem:[%s583_s22 + $0x30] sm:$0xff] }
  0x15   : > { %306 = vmatpush.bf16.msra.mxu0 %v514_v4  ;;  %518 = vmatpush.bf16.msra.mxu1 %v514_v4  ;;  %v195_v34 = vld [vmem:[%s583_s22 + $0xa0] sm:$0xff]  ;;  %v196_v35 = vld [vmem:[%s583_s22 + $0xa8] sm:$0xff]  ;;  %v213_v39 = vpack.c.bf16 %v188_v33, %v187_v32  ;;  %v182_v43 = vld [vmem:[%s583_s22 + $0x38] sm:$0xff] }
  0x16   : > { %519 = vmatpush.bf16.msra.mxu2 %v514_v4  ;;  %520 = vmatpush.bf16.msra.mxu3 %v514_v4  ;;  %v203_v36 = vld [vmem:[%s583_s22 + $0xe0] sm:$0xff]  ;;  %v204_v37 = vld [vmem:[%s583_s22 + $0xe8] sm:$0xff]  ;;  %v217_v40 = vpack.c.bf16 %v196_v35, %v195_v34  ;;  %v189_v44 = vld [vmem:[%s583_s22 + $0x70] sm:$0xff]  ;;  %v210_v50 = vpack.c.bf16 %v182_v43, %v181_v42 }
  0x17   : > { %v221_v41 = vpack.c.bf16 %v204_v37, %v203_v36  ;;  %v190_v45 = vld [vmem:[%s583_s22 + $0x78] sm:$0xff]  ;;  %v197_v46 = vld [vmem:[%s583_s22 + $0xb0] sm:$0xff] }
  0x18   : > { %v198_v47 = vld [vmem:[%s583_s22 + $0xb8] sm:$0xff]  ;;  %v205_v48 = vld [vmem:[%s583_s22 + $0xf0] sm:$0xff]  ;;  %v214_v51 = vpack.c.bf16 %v190_v45, %v189_v44 }
  0x19   : > { %307 = vmatpush.bf16.msra.mxu0 %v513_v5  ;;  %521 = vmatpush.bf16.msra.mxu1 %v513_v5  ;;  %v206_v49 = vld [vmem:[%s583_s22 + $0xf8] sm:$0xff]  ;;  %v218_v52 = vpack.c.bf16 %v198_v47, %v197_v46 }
  0x1a   : > { %522 = vmatpush.bf16.msra.mxu2 %v513_v5  ;;  %523 = vmatpush.bf16.msra.mxu3 %v513_v5  ;;  %v222_v53 = vpack.c.bf16 %v206_v49, %v205_v48 }
  0x1c   : > { %495 = vmatmul.msk.bf16.vlgmr.msra.gmra.mxu0 %vm247_vm1, %v207_v14  ;;  %499 = vmatmul.msk.bf16.vlgmr.msra.gmra.mxu1 %vm247_vm1, %v211_v15 }
  0x1d   : > { %503 = vmatmul.msk.bf16.vlgmr.msra.gmra.mxu2 %vm247_vm1, %v215_v16  ;;  %507 = vmatmul.msk.bf16.vlgmr.msra.gmra.mxu3 %vm247_vm1, %v219_v17 }
  0x2c   : > { %496 = vmatmul.msk.bf16.gmra.mxu0 %vm247_vm1, %v208_v26  ;;  %500 = vmatmul.msk.bf16.gmra.mxu1 %vm247_vm1, %v212_v27 }
  0x2d   : > { %504 = vmatmul.msk.bf16.gmra.mxu2 %vm247_vm1, %v216_v28  ;;  %508 = vmatmul.msk.bf16.gmra.mxu3 %vm247_vm1, %v220_v29 }
  0x3c   : > { %497 = vmatmul.msk.bf16.gmra.mxu0 %vm247_vm1, %v209_v38  ;;  %501 = vmatmul.msk.bf16.gmra.mxu1 %vm247_vm1, %v213_v39 }
  0x3d   : > { %505 = vmatmul.msk.bf16.gmra.mxu2 %vm247_vm1, %v217_v40  ;;  %509 = vmatmul.msk.bf16.gmra.mxu3 %vm247_vm1, %v221_v41 }
  0x4c   : > { %498 = vmatmul.msk.bf16.gmra.mxu0 %vm247_vm1, %v210_v50  ;;  %502 = vmatmul.msk.bf16.gmra.mxu1 %vm247_vm1, %v214_v51 }
  0x4d   : > { %506 = vmatmul.msk.bf16.gmra.mxu2 %vm247_vm1, %v218_v52  ;;  %510 = vmatmul.msk.bf16.gmra.mxu3 %vm247_vm1, %v222_v53 }
  0x99   : > { %v309_v55 = vpop.f32.mrf.mxu0  ;;  %v329_v56 = vpop.f32.mrf.mxu1 }
  0x9a   : > { %v310_v57 = vadd.f32 %v639_v54, %v309_v55  ;;  %v330_v58 = vadd.f32 %v639_v54, %v329_v56 }
  0x9c   : > { %390 = vst.msk [vmem:[%s646_s29] sm:$0xff] %vm389_vm2, %v310_v57 }
  0x9d   : > { %398 = vst.msk [vmem:[%s646_s29 + $0x40] sm:$0xff] %vm389_vm2, %v330_v58 }
  0xa0   : > { %v349_v59 = vpop.f32.mrf.mxu2  ;;  %v369_v60 = vpop.f32.mrf.mxu3 }
  0xa1   : > { %v350_v61 = vadd.f32 %v639_v54, %v349_v59  ;;  %v370_v62 = vadd.f32 %v639_v54, %v369_v60  ;;  %v311_v63 = vpop.f32.mrf.mxu0  ;;  %v331_v0 = vpop.f32.mrf.mxu1 }
  0xa2   : > { %v312_v1 = vadd.f32 %v639_v54, %v311_v63  ;;  %v332_v2 = vadd.f32 %v639_v54, %v331_v0 }
  0xa3   : > { %406 = vst.msk [vmem:[%s646_s29 + $0x80] sm:$0xff] %vm389_vm2, %v350_v61 }
  0xa4   : > { %414 = vst.msk [vmem:[%s646_s29 + $0xc0] sm:$0xff] %vm389_vm2, %v370_v62 }
  0xa5   : > { %391 = vst.msk [vmem:[%s646_s29 + $0x8] sm:$0xff] %vm389_vm2, %v312_v1 }
  0xa6   : > { %399 = vst.msk [vmem:[%s646_s29 + $0x48] sm:$0xff] %vm389_vm2, %v332_v2 }
  0xa8   : > { %v351_v3 = vpop.f32.mrf.mxu2  ;;  %v371_v4 = vpop.f32.mrf.mxu3 }
  0xa9   : > { %v352_v5 = vadd.f32 %v639_v54, %v351_v3  ;;  %v372_v6 = vadd.f32 %v639_v54, %v371_v4  ;;  %v314_v7 = vpop.f32.mrf.mxu0  ;;  %v334_v8 = vpop.f32.mrf.mxu1 }
  0xaa   : > { %v315_v9 = vadd.f32 %v639_v54, %v314_v7  ;;  %v335_v10 = vadd.f32 %v639_v54, %v334_v8 }
  0xab   : > { %407 = vst.msk [vmem:[%s646_s29 + $0x88] sm:$0xff] %vm389_vm2, %v352_v5 }
  0xac   : > { %415 = vst.msk [vmem:[%s646_s29 + $0xc8] sm:$0xff] %vm389_vm2, %v372_v6 }
  0xad   : > { %392 = vst.msk [vmem:[%s646_s29 + $0x10] sm:$0xff] %vm389_vm2, %v315_v9 }
  0xae   : > { %400 = vst.msk [vmem:[%s646_s29 + $0x50] sm:$0xff] %vm389_vm2, %v335_v10 }
  0xb0   : > { %v354_v11 = vpop.f32.mrf.mxu2  ;;  %v374_v12 = vpop.f32.mrf.mxu3 }
  0xb1   : > { %v355_v13 = vadd.f32 %v639_v54, %v354_v11  ;;  %v375_v14 = vadd.f32 %v639_v54, %v374_v12  ;;  %v316_v15 = vpop.f32.mrf.mxu0  ;;  %v336_v16 = vpop.f32.mrf.mxu1 }
  0xb2   : > { %v317_v17 = vadd.f32 %v639_v54, %v316_v15  ;;  %v337_v18 = vadd.f32 %v639_v54, %v336_v16 }
  0xb3   : > { %408 = vst.msk [vmem:[%s646_s29 + $0x90] sm:$0xff] %vm389_vm2, %v355_v13 }
  0xb4   : > { %416 = vst.msk [vmem:[%s646_s29 + $0xd0] sm:$0xff] %vm389_vm2, %v375_v14 }
  0xb5   : > { %393 = vst.msk [vmem:[%s646_s29 + $0x18] sm:$0xff] %vm389_vm2, %v317_v17 }
  0xb6   : > { %401 = vst.msk [vmem:[%s646_s29 + $0x58] sm:$0xff] %vm389_vm2, %v337_v18 }
  0xb8   : > { %v356_v19 = vpop.f32.mrf.mxu2  ;;  %v376_v20 = vpop.f32.mrf.mxu3 }
  0xb9   : > { %v357_v21 = vadd.f32 %v639_v54, %v356_v19  ;;  %v377_v22 = vadd.f32 %v639_v54, %v376_v20  ;;  %v319_v23 = vpop.f32.mrf.mxu0  ;;  %v339_v24 = vpop.f32.mrf.mxu1 }
  0xba   : > { %v320_v25 = vadd.f32 %v639_v54, %v319_v23  ;;  %v340_v26 = vadd.f32 %v639_v54, %v339_v24 }
  0xbb   : > { %409 = vst.msk [vmem:[%s646_s29 + $0x98] sm:$0xff] %vm389_vm2, %v357_v21 }
  0xbc   : > { %417 = vst.msk [vmem:[%s646_s29 + $0xd8] sm:$0xff] %vm389_vm2, %v377_v22 }
  0xbd   : > { %394 = vst.msk [vmem:[%s646_s29 + $0x20] sm:$0xff] %vm389_vm2, %v320_v25 }
  0xbe   : > { %402 = vst.msk [vmem:[%s646_s29 + $0x60] sm:$0xff] %vm389_vm2, %v340_v26 }
  0xc0   : > { %v359_v27 = vpop.f32.mrf.mxu2  ;;  %v379_v28 = vpop.f32.mrf.mxu3 }
  0xc1   : > { %v360_v29 = vadd.f32 %v639_v54, %v359_v27  ;;  %v380_v30 = vadd.f32 %v639_v54, %v379_v28  ;;  %v321_v31 = vpop.f32.mrf.mxu0  ;;  %v341_v32 = vpop.f32.mrf.mxu1 }
  0xc2   : > { %v322_v33 = vadd.f32 %v639_v54, %v321_v31  ;;  %v342_v34 = vadd.f32 %v639_v54, %v341_v32 }
  0xc3   : > { %410 = vst.msk [vmem:[%s646_s29 + $0xa0] sm:$0xff] %vm389_vm2, %v360_v29 }
  0xc4   : > { %418 = vst.msk [vmem:[%s646_s29 + $0xe0] sm:$0xff] %vm389_vm2, %v380_v30 }
  0xc5   : > { %395 = vst.msk [vmem:[%s646_s29 + $0x28] sm:$0xff] %vm389_vm2, %v322_v33 }
  0xc6   : > { %403 = vst.msk [vmem:[%s646_s29 + $0x68] sm:$0xff] %vm389_vm2, %v342_v34 }
  0xc8   : > { %v361_v35 = vpop.f32.mrf.mxu2  ;;  %v381_v36 = vpop.f32.mrf.mxu3 }
  0xc9   : > { %v362_v37 = vadd.f32 %v639_v54, %v361_v35  ;;  %v382_v38 = vadd.f32 %v639_v54, %v381_v36  ;;  %v324_v39 = vpop.f32.mrf.mxu0  ;;  %v344_v40 = vpop.f32.mrf.mxu1 }
  0xca   : > { %v325_v41 = vadd.f32 %v639_v54, %v324_v39  ;;  %v345_v42 = vadd.f32 %v639_v54, %v344_v40 }
  0xcb   : > { %411 = vst.msk [vmem:[%s646_s29 + $0xa8] sm:$0xff] %vm389_vm2, %v362_v37 }
  0xcc   : > { %419 = vst.msk [vmem:[%s646_s29 + $0xe8] sm:$0xff] %vm389_vm2, %v382_v38 }
  0xcd   : > { %396 = vst.msk [vmem:[%s646_s29 + $0x30] sm:$0xff] %vm389_vm2, %v325_v41 }
  0xce   : > { %404 = vst.msk [vmem:[%s646_s29 + $0x70] sm:$0xff] %vm389_vm2, %v345_v42 }
  0xd0   : > { %v364_v43 = vpop.f32.mrf.mxu2  ;;  %v384_v44 = vpop.f32.mrf.mxu3 }
  0xd1   : > { %v365_v45 = vadd.f32 %v639_v54, %v364_v43  ;;  %v385_v46 = vadd.f32 %v639_v54, %v384_v44  ;;  %v326_v47 = vpop.f32.mrf.mxu0  ;;  %v346_v48 = vpop.f32.mrf.mxu1 }
  0xd2   : > { %v327_v49 = vadd.f32 %v639_v54, %v326_v47  ;;  %v347_v50 = vadd.f32 %v639_v54, %v346_v48 }
  0xd3   : > { %412 = vst.msk [vmem:[%s646_s29 + $0xb0] sm:$0xff] %vm389_vm2, %v365_v45 }
  0xd4   : > { %420 = vst.msk [vmem:[%s646_s29 + $0xf0] sm:$0xff] %vm389_vm2, %v385_v46 }
  0xd5   : > { %397 = vst.msk [vmem:[%s646_s29 + $0x38] sm:$0xff] %vm389_vm2, %v327_v49 }
  0xd6   : > { %405 = vst.msk [vmem:[%s646_s29 + $0x78] sm:$0xff] %vm389_vm2, %v347_v50 }
  0xd8   : > { %v366_v51 = vpop.f32.mrf.mxu2  ;;  %v386_v52 = vpop.f32.mrf.mxu3 }
  0xd9   : > { %v367_v53 = vadd.f32 %v639_v54, %v366_v51  ;;  %v387_v55 = vadd.f32 %v639_v54, %v386_v52 }
  0xdb   : > { %413 = vst.msk [vmem:[%s646_s29 + $0xb8] sm:$0xff] %vm389_vm2, %v367_v53 }
  0xdc   : > { %421 = vst.msk [vmem:[%s646_s29 + $0xf8] sm:$0xff] %vm389_vm2, %v387_v55 }
  0xdd PF: > { %s13_s12 = sadd.s32 1, %s539_s12  }
  0xde   : > { %p10_p4 = scmp.ge.s32.totalorder %s13_s12, 4  }
  0xe0   :  { %12 = sbr.rel (!%p10_p4) target bundleno = 1 (0x1), region = 62 }

// kernel: up_convolution.7
= control target key start
LH: loop header
LB: loop body
LE: loop exit
PB: predicated region body
PF: predicated region fallthrough
CT: control target
= control target key end

     0   :  { %s973_s12 = smov 0   ;;  %s1699_s0 = inlined_call_operand.vmem [shape: f32[2192,8], index: 0, kind: input, shape index: {}]   ;;  %s1700_s1 = inlined_call_operand.vmem [shape: f32[1,8], index: 1, kind: input, shape index: {}]   ;;  %s1701_s2 = inlined_call_operand.vmem [shape: f32[1,8], index: 2, kind: input, shape index: {}]   ;;  %s1702_s3 = inlined_call_operand.vmem [shape: f32[2192,8], index: 3, kind: output, shape index: {}]  }
   0x1 LB: > { %s924_s13 = sadd.s32 4294967295, %s951_s12   ;;  %p928_p0 = scmp.ge.s32.totalorder %s951_s12, 1  ;;  %s951_s12 = sphi %s973_s12, %s13_s12  }
   0x2   : > { %p138_p1 = scmp.lt.s32.totalorder %s951_s12, 3 }
   0x4   : > { %p139_p2 = pnand %p928_p0, %p138_p1 }
   0x5   : > { %s162_s14 = smul.u32 (!%p139_p2), 137, %s924_s13 }
   0x6   : > { %142 = sbr.rel (%p139_p2) target bundleno = 158 (0x9e), region = 32 }
   0x7   : > { %p163_p3 = scmp.lt.s32.totalorder (!%p139_p2), %s162_s14, 273 }
   0xb   : > { %s1704_s14 = smov (!%p163_p3, %s162_s14), 273  ;;  %v984_v0 = vld [vmem:[%s1700_s1] ss:$0 sm:$0xff]  ;;  %vm730_vm0 = vcmask 64512  }
   0xc   : > { %s929_s17 = sshll.u32 %s1704_s14, 3  ;;  %v994_v1 = vld [vmem:[%s1701_s2] ss:$0 sm:$0xff] }
   0xd   : > { %s989_s20 = scalar_lea.vmem %s1699_s0, %s929_s17  ;;  %s1017_s25 = scalar_lea.vmem %s1702_s3, %s929_s17 }
   0xe   : > { %v174_v2 = vld [vmem:[%s989_s20] sm:$0xff]  ;;  %v175_v3 = vld [vmem:[%s989_s20 + $0x8] sm:$0xff]  ;;  %v176_v4 = vld [vmem:[%s989_s20 + $0x10] sm:$0xff] }
   0xf   : > { %v315_v5 = vmul.f32 %v984_v0, %v174_v2  ;;  %v316_v6 = vmul.f32 %v984_v0, %v175_v3  ;;  %v317_v7 = vmul.f32 %v984_v0, %v176_v4  ;;  %v177_v8 = vld [vmem:[%s989_s20 + $0x18] sm:$0xff]  ;;  %v178_v9 = vld [vmem:[%s989_s20 + $0x20] sm:$0xff]  ;;  %v179_v10 = vld [vmem:[%s989_s20 + $0x28] sm:$0xff] }
  0x10   : > { %v318_v11 = vmul.f32 %v984_v0, %v177_v8  ;;  %v319_v12 = vmul.f32 %v984_v0, %v178_v9  ;;  %v320_v13 = vmul.f32 %v984_v0, %v179_v10  ;;  %v180_v14 = vld [vmem:[%s989_s20 + $0x30] sm:$0xff]  ;;  %v181_v15 = vld [vmem:[%s989_s20 + $0x38] sm:$0xff]  ;;  %v182_v24 = vld [vmem:[%s989_s20 + $0x40] sm:$0xff] }
  0x11   : > { %v456_v16 = vadd.f32 %v994_v1, %v315_v5  ;;  %v457_v17 = vadd.f32 %v994_v1, %v316_v6  ;;  %v458_v18 = vadd.f32 %v994_v1, %v317_v7  ;;  %v321_v19 = vmul.f32 %v984_v0, %v180_v14  ;;  %v183_v25 = vld [vmem:[%s989_s20 + $0x48] sm:$0xff]  ;;  %v184_v26 = vld [vmem:[%s989_s20 + $0x50] sm:$0xff]  ;;  %v185_v31 = vld [vmem:[%s989_s20 + $0x58] sm:$0xff] }
  0x12   : > { %v459_v20 = vadd.f32 %v994_v1, %v318_v11  ;;  %v460_v21 = vadd.f32 %v994_v1, %v319_v12  ;;  %v461_v22 = vadd.f32 %v994_v1, %v320_v13  ;;  %v322_v23 = vmul.f32 %v984_v0, %v181_v15  ;;  %v186_v32 = vld [vmem:[%s989_s20 + $0x60] sm:$0xff]  ;;  %v187_v33 = vld [vmem:[%s989_s20 + $0x68] sm:$0xff]  ;;  %v188_v37 = vld [vmem:[%s989_s20 + $0x70] sm:$0xff] }
  0x13   : > { %v593_v27 = vmax.f32 %v456_v16, 0.0  ;;  %v594_v28 = vmax.f32 %v457_v17, 0.0  ;;  %v595_v29 = vmax.f32 %v458_v18, 0.0  ;;  %v462_v30 = vadd.f32 %v994_v1, %v321_v19  ;;  %v189_v42 = vld [vmem:[%s989_s20 + $0x78] sm:$0xff]  ;;  %v190_v54 = vld [vmem:[%s989_s20 + $0x80] sm:$0xff]  ;;  %v191_v55 = vld [vmem:[%s989_s20 + $0x88] sm:$0xff] }
  0x14   : > { %v596_v34 = vmax.f32 %v459_v20, 0.0  ;;  %v597_v35 = vmax.f32 %v460_v21, 0.0  ;;  %v463_v36 = vadd.f32 %v994_v1, %v322_v23  ;;  %v598_v38 = vmax.f32 %v461_v22, 0.0  ;;  %v192_v56 = vld [vmem:[%s989_s20 + $0x90] sm:$0xff]  ;;  %v193_v59 = vld [vmem:[%s989_s20 + $0x98] sm:$0xff]  ;;  %v194_v63 = vld [vmem:[%s989_s20 + $0xa0] sm:$0xff] }
  0x15   : > { %731 = vst.msk [vmem:[%s1017_s25] sm:$0xff] %vm730_vm0, %v593_v27  ;;  %v323_v39 = vmul.f32 %v984_v0, %v182_v24  ;;  %v324_v40 = vmul.f32 %v984_v0, %v183_v25  ;;  %v325_v41 = vmul.f32 %v984_v0, %v184_v26  ;;  %v599_v43 = vmax.f32 %v462_v30, 0.0  ;;  %v195_v6 = vld [vmem:[%s989_s20 + $0xa8] sm:$0xff]  ;;  %v196_v10 = vld [vmem:[%s989_s20 + $0xb0] sm:$0xff]  ;;  %v197_v14 = vld [vmem:[%s989_s20 + $0xb8] sm:$0xff] }
  0x16   : > { %732 = vst.msk [vmem:[%s1017_s25 + $0x8] sm:$0xff] %vm730_vm0, %v594_v28  ;;  %v326_v44 = vmul.f32 %v984_v0, %v185_v31  ;;  %v327_v45 = vmul.f32 %v984_v0, %v186_v32  ;;  %v328_v46 = vmul.f32 %v984_v0, %v187_v33  ;;  %v329_v50 = vmul.f32 %v984_v0, %v188_v37  ;;  %v198_v18 = vld [vmem:[%s989_s20 + $0xc0] sm:$0xff]  ;;  %v199_v22 = vld [vmem:[%s989_s20 + $0xc8] sm:$0xff]  ;;  %v200_v26 = vld [vmem:[%s989_s20 + $0xd0] sm:$0xff] }
  0x17   : > { %733 = vst.msk [vmem:[%s1017_s25 + $0x10] sm:$0xff] %vm730_vm0, %v595_v29  ;;  %v464_v47 = vadd.f32 %v994_v1, %v323_v39  ;;  %v465_v48 = vadd.f32 %v994_v1, %v324_v40  ;;  %v466_v49 = vadd.f32 %v994_v1, %v325_v41  ;;  %v600_v51 = vmax.f32 %v463_v36, 0.0  ;;  %v201_v30 = vld [vmem:[%s989_s20 + $0xd8] sm:$0xff] }
  0x18   : > { %734 = vst.msk [vmem:[%s1017_s25 + $0x18] sm:$0xff] %vm730_vm0, %v596_v34  ;;  %v467_v52 = vadd.f32 %v994_v1, %v326_v44  ;;  %v330_v53 = vmul.f32 %v984_v0, %v189_v42  ;;  %v468_v58 = vadd.f32 %v994_v1, %v327_v45  ;;  %v469_v62 = vadd.f32 %v994_v1, %v328_v46  ;;  %v202_v34 = vld [vmem:[%s989_s20 + $0xe0] sm:$0xff]  ;;  %v204_v42 = vld [vmem:[%s989_s20 + $0xf0] sm:$0xff]  ;;  %v205_v46 = vld [vmem:[%s989_s20 + $0xf8] sm:$0xff] }
  0x19   : > { %735 = vst.msk [vmem:[%s1017_s25 + $0x20] sm:$0xff] %vm730_vm0, %v597_v35  ;;  %v601_v57 = vmax.f32 %v464_v47, 0.0  ;;  %v602_v60 = vmax.f32 %v465_v48, 0.0  ;;  %v603_v61 = vmax.f32 %v466_v49, 0.0  ;;  %v470_v2 = vadd.f32 %v994_v1, %v329_v50  ;;  %v206_v50 = vld [vmem:[%s989_s20 + $0x100] sm:$0xff] }
  0x1a   : > { %736 = vst.msk [vmem:[%s1017_s25 + $0x28] sm:$0xff] %vm730_vm0, %v598_v38  ;;  %v331_v3 = vmul.f32 %v984_v0, %v190_v54  ;;  %v332_v4 = vmul.f32 %v984_v0, %v191_v55  ;;  %v333_v5 = vmul.f32 %v984_v0, %v192_v56  ;;  %v604_v7 = vmax.f32 %v467_v52, 0.0  ;;  %v203_v38 = vld [vmem:[%s989_s20 + $0xe8] sm:$0xff] }
  0x1b   : > { %737 = vst.msk [vmem:[%s1017_s25 + $0x30] sm:$0xff] %vm730_vm0, %v599_v43  ;;  %v471_v8 = vadd.f32 %v994_v1, %v330_v53  ;;  %v334_v9 = vmul.f32 %v984_v0, %v193_v59  ;;  %v605_v11 = vmax.f32 %v468_v58, 0.0  ;;  %v335_v13 = vmul.f32 %v984_v0, %v194_v63  ;;  %v207_v54 = vld [vmem:[%s989_s20 + $0x108] sm:$0xff]  ;;  %v208_v58 = vld [vmem:[%s989_s20 + $0x110] sm:$0xff] }
  0x1c   : > { %738 = vst.msk [vmem:[%s1017_s25 + $0x38] sm:$0xff] %vm730_vm0, %v600_v51  ;;  %v472_v12 = vadd.f32 %v994_v1, %v331_v3  ;;  %v606_v15 = vmax.f32 %v469_v62, 0.0  ;;  %v473_v16 = vadd.f32 %v994_v1, %v332_v4  ;;  %v336_v17 = vmul.f32 %v984_v0, %v195_v6  ;;  %v209_v62 = vld [vmem:[%s989_s20 + $0x118] sm:$0xff]  ;;  %v210_v4 = vld [vmem:[%s989_s20 + $0x120] sm:$0xff] }
  0x1d   : > { %739 = vst.msk [vmem:[%s1017_s25 + $0x40] sm:$0xff] %vm730_vm0, %v601_v57  ;;  %v607_v19 = vmax.f32 %v470_v2, 0.0  ;;  %v474_v20 = vadd.f32 %v994_v1, %v333_v5  ;;  %v337_v21 = vmul.f32 %v984_v0, %v196_v10  ;;  %v608_v23 = vmax.f32 %v471_v8, 0.0  ;;  %v211_v8 = vld [vmem:[%s989_s20 + $0x128] sm:$0xff] }
  0x1e   : > { %740 = vst.msk [vmem:[%s1017_s25 + $0x48] sm:$0xff] %vm730_vm0, %v602_v60  ;;  %v475_v24 = vadd.f32 %v994_v1, %v334_v9  ;;  %v338_v25 = vmul.f32 %v984_v0, %v197_v14  ;;  %v609_v27 = vmax.f32 %v472_v12, 0.0  ;;  %v476_v28 = vadd.f32 %v994_v1, %v335_v13  ;;  %v212_v12 = vld [vmem:[%s989_s20 + $0x130] sm:$0xff] }
  0x1f   : > { %741 = vst.msk [vmem:[%s1017_s25 + $0x50] sm:$0xff] %vm730_vm0, %v603_v61  ;;  %v339_v29 = vmul.f32 %v984_v0, %v198_v18  ;;  %v610_v31 = vmax.f32 %v473_v16, 0.0  ;;  %v477_v32 = vadd.f32 %v994_v1, %v336_v17  ;;  %v340_v33 = vmul.f32 %v984_v0, %v199_v22  ;;  %v213_v16 = vld [vmem:[%s989_s20 + $0x138] sm:$0xff] }
  0x20   : > { %742 = vst.msk [vmem:[%s1017_s25 + $0x58] sm:$0xff] %vm730_vm0, %v604_v7  ;;  %v611_v35 = vmax.f32 %v474_v20, 0.0  ;;  %v478_v36 = vadd.f32 %v994_v1, %v337_v21  ;;  %v341_v37 = vmul.f32 %v984_v0, %v200_v26  ;;  %v612_v39 = vmax.f32 %v475_v24, 0.0  ;;  %v214_v20 = vld [vmem:[%s989_s20 + $0x140] sm:$0xff]  ;;  %v215_v24 = vld [vmem:[%s989_s20 + $0x148] sm:$0xff] }
  0x21   : > { %743 = vst.msk [vmem:[%s1017_s25 + $0x60] sm:$0xff] %vm730_vm0, %v605_v11  ;;  %v479_v40 = vadd.f32 %v994_v1, %v338_v25  ;;  %v342_v41 = vmul.f32 %v984_v0, %v201_v30  ;;  %v613_v43 = vmax.f32 %v476_v28, 0.0  ;;  %v480_v44 = vadd.f32 %v994_v1, %v339_v29  ;;  %v216_v28 = vld [vmem:[%s989_s20 + $0x150] sm:$0xff] }
  0x22   : > { %744 = vst.msk [vmem:[%s1017_s25 + $0x68] sm:$0xff] %vm730_vm0, %v606_v15  ;;  %v343_v45 = vmul.f32 %v984_v0, %v202_v34  ;;  %v614_v47 = vmax.f32 %v477_v32, 0.0  ;;  %v481_v48 = vadd.f32 %v994_v1, %v340_v33  ;;  %v344_v49 = vmul.f32 %v984_v0, %v203_v38  ;;  %v217_v32 = vld [vmem:[%s989_s20 + $0x158] sm:$0xff] }
  0x23   : > { %745 = vst.msk [vmem:[%s1017_s25 + $0x70] sm:$0xff] %vm730_vm0, %v607_v19  ;;  %v615_v51 = vmax.f32 %v478_v36, 0.0  ;;  %v482_v52 = vadd.f32 %v994_v1, %v341_v37  ;;  %v345_v53 = vmul.f32 %v984_v0, %v204_v42  ;;  %v616_v55 = vmax.f32 %v479_v40, 0.0  ;;  %v218_v36 = vld [vmem:[%s989_s20 + $0x160] sm:$0xff]  ;;  %v219_v40 = vld [vmem:[%s989_s20 + $0x168] sm:$0xff] }
  0x24   : > { %746 = vst.msk [vmem:[%s1017_s25 + $0x78] sm:$0xff] %vm730_vm0, %v608_v23  ;;  %v483_v56 = vadd.f32 %v994_v1, %v342_v41  ;;  %v346_v57 = vmul.f32 %v984_v0, %v205_v46  ;;  %v617_v59 = vmax.f32 %v480_v44, 0.0  ;;  %v484_v60 = vadd.f32 %v994_v1, %v343_v45  ;;  %v220_v44 = vld [vmem:[%s989_s20 + $0x170] sm:$0xff] }
  0x25   : > { %747 = vst.msk [vmem:[%s1017_s25 + $0x80] sm:$0xff] %vm730_vm0, %v609_v27  ;;  %v347_v61 = vmul.f32 %v984_v0, %v206_v50  ;;  %v618_v63 = vmax.f32 %v481_v48, 0.0  ;;  %v485_v2 = vadd.f32 %v994_v1, %v344_v49  ;;  %v348_v3 = vmul.f32 %v984_v0, %v207_v54  ;;  %v221_v48 = vld [vmem:[%s989_s20 + $0x178] sm:$0xff] }
  0x26   : > { %748 = vst.msk [vmem:[%s1017_s25 + $0x88] sm:$0xff] %vm730_vm0, %v610_v31  ;;  %v619_v5 = vmax.f32 %v482_v52, 0.0  ;;  %v486_v6 = vadd.f32 %v994_v1, %v345_v53  ;;  %v349_v7 = vmul.f32 %v984_v0, %v208_v58  ;;  %v620_v9 = vmax.f32 %v483_v56, 0.0  ;;  %v222_v52 = vld [vmem:[%s989_s20 + $0x180] sm:$0xff]  ;;  %v223_v56 = vld [vmem:[%s989_s20 + $0x188] sm:$0xff] }
  0x27   : > { %749 = vst.msk [vmem:[%s1017_s25 + $0x90] sm:$0xff] %vm730_vm0, %v611_v35  ;;  %v487_v10 = vadd.f32 %v994_v1, %v346_v57  ;;  %v350_v11 = vmul.f32 %v984_v0, %v209_v62  ;;  %v621_v13 = vmax.f32 %v484_v60, 0.0  ;;  %v488_v14 = vadd.f32 %v994_v1, %v347_v61  ;;  %v224_v60 = vld [vmem:[%s989_s20 + $0x190] sm:$0xff] }
  0x28   : > { %750 = vst.msk [vmem:[%s1017_s25 + $0x98] sm:$0xff] %vm730_vm0, %v612_v39  ;;  %v351_v15 = vmul.f32 %v984_v0, %v210_v4  ;;  %v622_v17 = vmax.f32 %v485_v2, 0.0  ;;  %v489_v18 = vadd.f32 %v994_v1, %v348_v3  ;;  %v352_v19 = vmul.f32 %v984_v0, %v211_v8  ;;  %v225_v2 = vld [vmem:[%s989_s20 + $0x198] sm:$0xff] }
  0x29   : > { %751 = vst.msk [vmem:[%s1017_s25 + $0xa0] sm:$0xff] %vm730_vm0, %v613_v43  ;;  %v623_v21 = vmax.f32 %v486_v6, 0.0  ;;  %v490_v22 = vadd.f32 %v994_v1, %v349_v7  ;;  %v353_v23 = vmul.f32 %v984_v0, %v212_v12  ;;  %v624_v25 = vmax.f32 %v487_v10, 0.0  ;;  %v226_v6 = vld [vmem:[%s989_s20 + $0x1a0] sm:$0xff]  ;;  %v227_v10 = vld [vmem:[%s989_s20 + $0x1a8] sm:$0xff] }
  0x2a   : > { %752 = vst.msk [vmem:[%s1017_s25 + $0xa8] sm:$0xff] %vm730_vm0, %v614_v47  ;;  %v491_v26 = vadd.f32 %v994_v1, %v350_v11  ;;  %v354_v27 = vmul.f32 %v984_v0, %v213_v16  ;;  %v625_v29 = vmax.f32 %v488_v14, 0.0  ;;  %v492_v30 = vadd.f32 %v994_v1, %v351_v15  ;;  %v228_v14 = vld [vmem:[%s989_s20 + $0x1b0] sm:$0xff] }
  0x2b   : > { %753 = vst.msk [vmem:[%s1017_s25 + $0xb0] sm:$0xff] %vm730_vm0, %v615_v51  ;;  %v355_v31 = vmul.f32 %v984_v0, %v214_v20  ;;  %v626_v33 = vmax.f32 %v489_v18, 0.0  ;;  %v493_v34 = vadd.f32 %v994_v1, %v352_v19  ;;  %v356_v35 = vmul.f32 %v984_v0, %v215_v24  ;;  %v229_v18 = vld [vmem:[%s989_s20 + $0x1b8] sm:$0xff] }
  0x2c   : > { %754 = vst.msk [vmem:[%s1017_s25 + $0xb8] sm:$0xff] %vm730_vm0, %v616_v55  ;;  %v627_v37 = vmax.f32 %v490_v22, 0.0  ;;  %v494_v38 = vadd.f32 %v994_v1, %v353_v23  ;;  %v357_v39 = vmul.f32 %v984_v0, %v216_v28  ;;  %v628_v41 = vmax.f32 %v491_v26, 0.0  ;;  %v230_v22 = vld [vmem:[%s989_s20 + $0x1c0] sm:$0xff]  ;;  %v231_v26 = vld [vmem:[%s989_s20 + $0x1c8] sm:$0xff] }
  0x2d   : > { %755 = vst.msk [vmem:[%s1017_s25 + $0xc0] sm:$0xff] %vm730_vm0, %v617_v59  ;;  %v495_v42 = vadd.f32 %v994_v1, %v354_v27  ;;  %v358_v43 = vmul.f32 %v984_v0, %v217_v32  ;;  %v629_v45 = vmax.f32 %v492_v30, 0.0  ;;  %v496_v46 = vadd.f32 %v994_v1, %v355_v31  ;;  %v232_v30 = vld [vmem:[%s989_s20 + $0x1d0] sm:$0xff] }
  0x2e   : > { %756 = vst.msk [vmem:[%s1017_s25 + $0xc8] sm:$0xff] %vm730_vm0, %v618_v63  ;;  %v359_v47 = vmul.f32 %v984_v0, %v218_v36  ;;  %v630_v49 = vmax.f32 %v493_v34, 0.0  ;;  %v497_v50 = vadd.f32 %v994_v1, %v356_v35  ;;  %v360_v51 = vmul.f32 %v984_v0, %v219_v40  ;;  %v233_v34 = vld [vmem:[%s989_s20 + $0x1d8] sm:$0xff] }
  0x2f   : > { %757 = vst.msk [vmem:[%s1017_s25 + $0xd0] sm:$0xff] %vm730_vm0, %v619_v5  ;;  %v631_v53 = vmax.f32 %v494_v38, 0.0  ;;  %v498_v54 = vadd.f32 %v994_v1, %v357_v39  ;;  %v361_v55 = vmul.f32 %v984_v0, %v220_v44  ;;  %v632_v57 = vmax.f32 %v495_v42, 0.0  ;;  %v234_v38 = vld [vmem:[%s989_s20 + $0x1e0] sm:$0xff]  ;;  %v235_v42 = vld [vmem:[%s989_s20 + $0x1e8] sm:$0xff] }
  0x30   : > { %758 = vst.msk [vmem:[%s1017_s25 + $0xd8] sm:$0xff] %vm730_vm0, %v620_v9  ;;  %v499_v58 = vadd.f32 %v994_v1, %v358_v43  ;;  %v362_v59 = vmul.f32 %v984_v0, %v221_v48  ;;  %v633_v61 = vmax.f32 %v496_v46, 0.0  ;;  %v500_v62 = vadd.f32 %v994_v1, %v359_v47  ;;  %v236_v46 = vld [vmem:[%s989_s20 + $0x1f0] sm:$0xff] }
  0x31   : > { %759 = vst.msk [vmem:[%s1017_s25 + $0xe0] sm:$0xff] %vm730_vm0, %v621_v13  ;;  %v363_v63 = vmul.f32 %v984_v0, %v222_v52  ;;  %v634_v3 = vmax.f32 %v497_v50, 0.0  ;;  %v501_v4 = vadd.f32 %v994_v1, %v360_v51  ;;  %v364_v5 = vmul.f32 %v984_v0, %v223_v56  ;;  %v237_v50 = vld [vmem:[%s989_s20 + $0x1f8] sm:$0xff] }
  0x32   : > { %760 = vst.msk [vmem:[%s1017_s25 + $0xe8] sm:$0xff] %vm730_vm0, %v622_v17  ;;  %v635_v7 = vmax.f32 %v498_v54, 0.0  ;;  %v502_v8 = vadd.f32 %v994_v1, %v361_v55  ;;  %v365_v9 = vmul.f32 %v984_v0, %v224_v60  ;;  %v636_v11 = vmax.f32 %v499_v58, 0.0  ;;  %v238_v54 = vld [vmem:[%s989_s20 + $0x200] sm:$0xff]  ;;  %v239_v58 = vld [vmem:[%s989_s20 + $0x208] sm:$0xff] }
  0x33   : > { %761 = vst.msk [vmem:[%s1017_s25 + $0xf0] sm:$0xff] %vm730_vm0, %v623_v21  ;;  %v503_v12 = vadd.f32 %v994_v1, %v362_v59  ;;  %v366_v13 = vmul.f32 %v984_v0, %v225_v2  ;;  %v637_v15 = vmax.f32 %v500_v62, 0.0  ;;  %v504_v16 = vadd.f32 %v994_v1, %v363_v63  ;;  %v240_v62 = vld [vmem:[%s989_s20 + $0x210] sm:$0xff] }
  0x34   : > { %762 = vst.msk [vmem:[%s1017_s25 + $0xf8] sm:$0xff] %vm730_vm0, %v624_v25  ;;  %v367_v17 = vmul.f32 %v984_v0, %v226_v6  ;;  %v638_v19 = vmax.f32 %v501_v4, 0.0  ;;  %v505_v20 = vadd.f32 %v994_v1, %v364_v5  ;;  %v368_v21 = vmul.f32 %v984_v0, %v227_v10  ;;  %v241_v4 = vld [vmem:[%s989_s20 + $0x218] sm:$0xff] }
  0x35   : > { %763 = vst.msk [vmem:[%s1017_s25 + $0x100] sm:$0xff] %vm730_vm0, %v625_v29  ;;  %v639_v23 = vmax.f32 %v502_v8, 0.0  ;;  %v506_v24 = vadd.f32 %v994_v1, %v365_v9  ;;  %v369_v25 = vmul.f32 %v984_v0, %v228_v14  ;;  %v640_v27 = vmax.f32 %v503_v12, 0.0  ;;  %v242_v8 = vld [vmem:[%s989_s20 + $0x220] sm:$0xff]  ;;  %v243_v12 = vld [vmem:[%s989_s20 + $0x228] sm:$0xff] }
  0x36   : > { %764 = vst.msk [vmem:[%s1017_s25 + $0x108] sm:$0xff] %vm730_vm0, %v626_v33  ;;  %v507_v28 = vadd.f32 %v994_v1, %v366_v13  ;;  %v370_v29 = vmul.f32 %v984_v0, %v229_v18  ;;  %v641_v31 = vmax.f32 %v504_v16, 0.0  ;;  %v508_v32 = vadd.f32 %v994_v1, %v367_v17  ;;  %v244_v16 = vld [vmem:[%s989_s20 + $0x230] sm:$0xff] }
  0x37   : > { %765 = vst.msk [vmem:[%s1017_s25 + $0x110] sm:$0xff] %vm730_vm0, %v627_v37  ;;  %v371_v33 = vmul.f32 %v984_v0, %v230_v22  ;;  %v642_v35 = vmax.f32 %v505_v20, 0.0  ;;  %v509_v36 = vadd.f32 %v994_v1, %v368_v21  ;;  %v372_v37 = vmul.f32 %v984_v0, %v231_v26  ;;  %v245_v20 = vld [vmem:[%s989_s20 + $0x238] sm:$0xff] }
  0x38   : > { %766 = vst.msk [vmem:[%s1017_s25 + $0x118] sm:$0xff] %vm730_vm0, %v628_v41  ;;  %v643_v39 = vmax.f32 %v506_v24, 0.0  ;;  %v510_v40 = vadd.f32 %v994_v1, %v369_v25  ;;  %v373_v41 = vmul.f32 %v984_v0, %v232_v30  ;;  %v644_v43 = vmax.f32 %v507_v28, 0.0  ;;  %v246_v24 = vld [vmem:[%s989_s20 + $0x240] sm:$0xff]  ;;  %v247_v28 = vld [vmem:[%s989_s20 + $0x248] sm:$0xff] }
  0x39   : > { %767 = vst.msk [vmem:[%s1017_s25 + $0x120] sm:$0xff] %vm730_vm0, %v629_v45  ;;  %v511_v44 = vadd.f32 %v994_v1, %v370_v29  ;;  %v374_v45 = vmul.f32 %v984_v0, %v233_v34  ;;  %v645_v47 = vmax.f32 %v508_v32, 0.0  ;;  %v512_v48 = vadd.f32 %v994_v1, %v371_v33  ;;  %v248_v32 = vld [vmem:[%s989_s20 + $0x250] sm:$0xff] }
  0x3a   : > { %768 = vst.msk [vmem:[%s1017_s25 + $0x128] sm:$0xff] %vm730_vm0, %v630_v49  ;;  %v375_v49 = vmul.f32 %v984_v0, %v234_v38  ;;  %v646_v51 = vmax.f32 %v509_v36, 0.0  ;;  %v513_v52 = vadd.f32 %v994_v1, %v372_v37  ;;  %v647_v55 = vmax.f32 %v510_v40, 0.0  ;;  %v249_v36 = vld [vmem:[%s989_s20 + $0x258] sm:$0xff]  ;;  %v250_v40 = vld [vmem:[%s989_s20 + $0x260] sm:$0xff] }
  0x3b   : > { %769 = vst.msk [vmem:[%s1017_s25 + $0x130] sm:$0xff] %vm730_vm0, %v631_v53  ;;  %v376_v53 = vmul.f32 %v984_v0, %v235_v42  ;;  %v514_v56 = vadd.f32 %v994_v1, %v373_v41  ;;  %v648_v59 = vmax.f32 %v511_v44, 0.0  ;;  %v515_v60 = vadd.f32 %v994_v1, %v374_v45  ;;  %v251_v44 = vld [vmem:[%s989_s20 + $0x268] sm:$0xff] }
  0x3c   : > { %770 = vst.msk [vmem:[%s1017_s25 + $0x138] sm:$0xff] %vm730_vm0, %v632_v57  ;;  %v377_v57 = vmul.f32 %v984_v0, %v236_v46  ;;  %v649_v63 = vmax.f32 %v512_v48, 0.0  ;;  %v516_v2 = vadd.f32 %v994_v1, %v375_v49  ;;  %v650_v5 = vmax.f32 %v513_v52, 0.0  ;;  %v252_v48 = vld [vmem:[%s989_s20 + $0x270] sm:$0xff]  ;;  %v253_v52 = vld [vmem:[%s989_s20 + $0x278] sm:$0xff] }
  0x3d   : > { %771 = vst.msk [vmem:[%s1017_s25 + $0x140] sm:$0xff] %vm730_vm0, %v633_v61  ;;  %v378_v61 = vmul.f32 %v984_v0, %v237_v50  ;;  %v517_v6 = vadd.f32 %v994_v1, %v376_v53  ;;  %v651_v9 = vmax.f32 %v514_v56, 0.0  ;;  %v652_v13 = vmax.f32 %v515_v60, 0.0  ;;  %v254_v56 = vld [vmem:[%s989_s20 + $0x280] sm:$0xff]  ;;  %v255_v60 = vld [vmem:[%s989_s20 + $0x288] sm:$0xff] }
  0x3e   : > { %772 = vst.msk [vmem:[%s1017_s25 + $0x148] sm:$0xff] %vm730_vm0, %v634_v3  ;;  %v379_v3 = vmul.f32 %v984_v0, %v238_v54  ;;  %v518_v10 = vadd.f32 %v994_v1, %v377_v57  ;;  %v653_v17 = vmax.f32 %v516_v2, 0.0  ;;  %v256_v2 = vld [vmem:[%s989_s20 + $0x290] sm:$0xff] }
  0x3f   : > { %773 = vst.msk [vmem:[%s1017_s25 + $0x150] sm:$0xff] %vm730_vm0, %v635_v7  ;;  %v380_v7 = vmul.f32 %v984_v0, %v239_v58  ;;  %v519_v14 = vadd.f32 %v994_v1, %v378_v61  ;;  %v654_v21 = vmax.f32 %v517_v6, 0.0  ;;  %v257_v6 = vld [vmem:[%s989_s20 + $0x298] sm:$0xff] }
  0x40   : > { %774 = vst.msk [vmem:[%s1017_s25 + $0x158] sm:$0xff] %vm730_vm0, %v636_v11  ;;  %v381_v11 = vmul.f32 %v984_v0, %v240_v62  ;;  %v520_v18 = vadd.f32 %v994_v1, %v379_v3  ;;  %v655_v25 = vmax.f32 %v518_v10, 0.0  ;;  %v258_v10 = vld [vmem:[%s989_s20 + $0x2a0] sm:$0xff] }
  0x41   : > { %775 = vst.msk [vmem:[%s1017_s25 + $0x160] sm:$0xff] %vm730_vm0, %v637_v15  ;;  %v382_v15 = vmul.f32 %v984_v0, %v241_v4  ;;  %v521_v22 = vadd.f32 %v994_v1, %v380_v7  ;;  %v656_v29 = vmax.f32 %v519_v14, 0.0  ;;  %v259_v14 = vld [vmem:[%s989_s20 + $0x2a8] sm:$0xff] }
  0x42   : > { %776 = vst.msk [vmem:[%s1017_s25 + $0x168] sm:$0xff] %vm730_vm0, %v638_v19  ;;  %v383_v19 = vmul.f32 %v984_v0, %v242_v8  ;;  %v522_v26 = vadd.f32 %v994_v1, %v381_v11  ;;  %v657_v33 = vmax.f32 %v520_v18, 0.0  ;;  %v260_v18 = vld [vmem:[%s989_s20 + $0x2b0] sm:$0xff] }
  0x43   : > { %777 = vst.msk [vmem:[%s1017_s25 + $0x170] sm:$0xff] %vm730_vm0, %v639_v23  ;;  %v384_v23 = vmul.f32 %v984_v0, %v243_v12  ;;  %v523_v30 = vadd.f32 %v994_v1, %v382_v15  ;;  %v658_v37 = vmax.f32 %v521_v22, 0.0  ;;  %v261_v22 = vld [vmem:[%s989_s20 + $0x2b8] sm:$0xff] }
  0x44   : > { %778 = vst.msk [vmem:[%s1017_s25 + $0x178] sm:$0xff] %vm730_vm0, %v640_v27  ;;  %v385_v27 = vmul.f32 %v984_v0, %v244_v16  ;;  %v524_v34 = vadd.f32 %v994_v1, %v383_v19  ;;  %v659_v41 = vmax.f32 %v522_v26, 0.0  ;;  %v262_v26 = vld [vmem:[%s989_s20 + $0x2c0] sm:$0xff] }
  0x45   : > { %779 = vst.msk [vmem:[%s1017_s25 + $0x180] sm:$0xff] %vm730_vm0, %v641_v31  ;;  %v386_v31 = vmul.f32 %v984_v0, %v245_v20  ;;  %v525_v38 = vadd.f32 %v994_v1, %v384_v23  ;;  %v660_v45 = vmax.f32 %v523_v30, 0.0  ;;  %v263_v30 = vld [vmem:[%s989_s20 + $0x2c8] sm:$0xff] }
  0x46   : > { %780 = vst.msk [vmem:[%s1017_s25 + $0x188] sm:$0xff] %vm730_vm0, %v642_v35  ;;  %v387_v35 = vmul.f32 %v984_v0, %v246_v24  ;;  %v526_v42 = vadd.f32 %v994_v1, %v385_v27  ;;  %v661_v49 = vmax.f32 %v524_v34, 0.0  ;;  %v264_v34 = vld [vmem:[%s989_s20 + $0x2d0] sm:$0xff] }
  0x47   : > { %781 = vst.msk [vmem:[%s1017_s25 + $0x190] sm:$0xff] %vm730_vm0, %v643_v39  ;;  %v388_v39 = vmul.f32 %v984_v0, %v247_v28  ;;  %v527_v46 = vadd.f32 %v994_v1, %v386_v31  ;;  %v662_v53 = vmax.f32 %v525_v38, 0.0  ;;  %v265_v38 = vld [vmem:[%s989_s20 + $0x2d8] sm:$0xff] }
  0x48   : > { %782 = vst.msk [vmem:[%s1017_s25 + $0x198] sm:$0xff] %vm730_vm0, %v644_v43  ;;  %v389_v43 = vmul.f32 %v984_v0, %v248_v32  ;;  %v528_v50 = vadd.f32 %v994_v1, %v387_v35  ;;  %v663_v57 = vmax.f32 %v526_v42, 0.0  ;;  %v266_v42 = vld [vmem:[%s989_s20 + $0x2e0] sm:$0xff] }
  0x49   : > { %783 = vst.msk [vmem:[%s1017_s25 + $0x1a0] sm:$0xff] %vm730_vm0, %v645_v47  ;;  %v390_v47 = vmul.f32 %v984_v0, %v249_v36  ;;  %v529_v54 = vadd.f32 %v994_v1, %v388_v39  ;;  %v664_v61 = vmax.f32 %v527_v46, 0.0  ;;  %v267_v46 = vld [vmem:[%s989_s20 + $0x2e8] sm:$0xff] }
  0x4a   : > { %784 = vst.msk [vmem:[%s1017_s25 + $0x1a8] sm:$0xff] %vm730_vm0, %v646_v51  ;;  %v391_v51 = vmul.f32 %v984_v0, %v250_v40  ;;  %v530_v58 = vadd.f32 %v994_v1, %v389_v43  ;;  %v665_v3 = vmax.f32 %v528_v50, 0.0  ;;  %v268_v50 = vld [vmem:[%s989_s20 + $0x2f0] sm:$0xff] }
  0x4b   : > { %785 = vst.msk [vmem:[%s1017_s25 + $0x1b0] sm:$0xff] %vm730_vm0, %v647_v55  ;;  %v392_v55 = vmul.f32 %v984_v0, %v251_v44  ;;  %v531_v62 = vadd.f32 %v994_v1, %v390_v47  ;;  %v666_v7 = vmax.f32 %v529_v54, 0.0  ;;  %v269_v54 = vld [vmem:[%s989_s20 + $0x2f8] sm:$0xff] }
  0x4c   : > { %786 = vst.msk [vmem:[%s1017_s25 + $0x1b8] sm:$0xff] %vm730_vm0, %v648_v59  ;;  %v393_v59 = vmul.f32 %v984_v0, %v252_v48  ;;  %v532_v4 = vadd.f32 %v994_v1, %v391_v51  ;;  %v667_v11 = vmax.f32 %v530_v58, 0.0  ;;  %v270_v58 = vld [vmem:[%s989_s20 + $0x300] sm:$0xff] }
  0x4d   : > { %787 = vst.msk [vmem:[%s1017_s25 + $0x1c0] sm:$0xff] %vm730_vm0, %v649_v63  ;;  %v394_v63 = vmul.f32 %v984_v0, %v253_v52  ;;  %v533_v8 = vadd.f32 %v994_v1, %v392_v55  ;;  %v668_v15 = vmax.f32 %v531_v62, 0.0  ;;  %v271_v62 = vld [vmem:[%s989_s20 + $0x308] sm:$0xff] }
  0x4e   : > { %788 = vst.msk [vmem:[%s1017_s25 + $0x1c8] sm:$0xff] %vm730_vm0, %v650_v5  ;;  %v395_v5 = vmul.f32 %v984_v0, %v254_v56  ;;  %v534_v12 = vadd.f32 %v994_v1, %v393_v59  ;;  %v669_v19 = vmax.f32 %v532_v4, 0.0  ;;  %v272_v4 = vld [vmem:[%s989_s20 + $0x310] sm:$0xff] }
  0x4f   : > { %789 = vst.msk [vmem:[%s1017_s25 + $0x1d0] sm:$0xff] %vm730_vm0, %v651_v9  ;;  %v396_v9 = vmul.f32 %v984_v0, %v255_v60  ;;  %v535_v16 = vadd.f32 %v994_v1, %v394_v63  ;;  %v670_v23 = vmax.f32 %v533_v8, 0.0  ;;  %v273_v8 = vld [vmem:[%s989_s20 + $0x318] sm:$0xff] }
  0x50   : > { %790 = vst.msk [vmem:[%s1017_s25 + $0x1d8] sm:$0xff] %vm730_vm0, %v652_v13  ;;  %v397_v13 = vmul.f32 %v984_v0, %v256_v2  ;;  %v536_v20 = vadd.f32 %v994_v1, %v395_v5  ;;  %v671_v27 = vmax.f32 %v534_v12, 0.0  ;;  %v274_v12 = vld [vmem:[%s989_s20 + $0x320] sm:$0xff] }
  0x51   : > { %791 = vst.msk [vmem:[%s1017_s25 + $0x1e0] sm:$0xff] %vm730_vm0, %v653_v17  ;;  %v398_v17 = vmul.f32 %v984_v0, %v257_v6  ;;  %v537_v24 = vadd.f32 %v994_v1, %v396_v9  ;;  %v672_v31 = vmax.f32 %v535_v16, 0.0  ;;  %v275_v16 = vld [vmem:[%s989_s20 + $0x328] sm:$0xff] }
  0x52   : > { %792 = vst.msk [vmem:[%s1017_s25 + $0x1e8] sm:$0xff] %vm730_vm0, %v654_v21  ;;  %v399_v21 = vmul.f32 %v984_v0, %v258_v10  ;;  %v538_v28 = vadd.f32 %v994_v1, %v397_v13  ;;  %v673_v35 = vmax.f32 %v536_v20, 0.0  ;;  %v276_v20 = vld [vmem:[%s989_s20 + $0x330] sm:$0xff] }
  0x53   : > { %793 = vst.msk [vmem:[%s1017_s25 + $0x1f0] sm:$0xff] %vm730_vm0, %v655_v25  ;;  %v400_v25 = vmul.f32 %v984_v0, %v259_v14  ;;  %v539_v32 = vadd.f32 %v994_v1, %v398_v17  ;;  %v674_v39 = vmax.f32 %v537_v24, 0.0  ;;  %v277_v24 = vld [vmem:[%s989_s20 + $0x338] sm:$0xff] }
  0x54   : > { %794 = vst.msk [vmem:[%s1017_s25 + $0x1f8] sm:$0xff] %vm730_vm0, %v656_v29  ;;  %v401_v29 = vmul.f32 %v984_v0, %v260_v18  ;;  %v540_v36 = vadd.f32 %v994_v1, %v399_v21  ;;  %v675_v43 = vmax.f32 %v538_v28, 0.0  ;;  %v278_v28 = vld [vmem:[%s989_s20 + $0x340] sm:$0xff] }
  0x55   : > { %795 = vst.msk [vmem:[%s1017_s25 + $0x200] sm:$0xff] %vm730_vm0, %v657_v33  ;;  %v402_v33 = vmul.f32 %v984_v0, %v261_v22  ;;  %v541_v40 = vadd.f32 %v994_v1, %v400_v25  ;;  %v676_v47 = vmax.f32 %v539_v32, 0.0  ;;  %v279_v32 = vld [vmem:[%s989_s20 + $0x348] sm:$0xff] }
  0x56   : > { %796 = vst.msk [vmem:[%s1017_s25 + $0x208] sm:$0xff] %vm730_vm0, %v658_v37  ;;  %v403_v37 = vmul.f32 %v984_v0, %v262_v26  ;;  %v542_v44 = vadd.f32 %v994_v1, %v401_v29  ;;  %v677_v51 = vmax.f32 %v540_v36, 0.0  ;;  %v280_v36 = vld [vmem:[%s989_s20 + $0x350] sm:$0xff] }
  0x57   : > { %797 = vst.msk [vmem:[%s1017_s25 + $0x210] sm:$0xff] %vm730_vm0, %v659_v41  ;;  %v404_v41 = vmul.f32 %v984_v0, %v263_v30  ;;  %v543_v48 = vadd.f32 %v994_v1, %v402_v33  ;;  %v678_v55 = vmax.f32 %v541_v40, 0.0  ;;  %v281_v40 = vld [vmem:[%s989_s20 + $0x358] sm:$0xff] }
  0x58   : > { %798 = vst.msk [vmem:[%s1017_s25 + $0x218] sm:$0xff] %vm730_vm0, %v660_v45  ;;  %v405_v45 = vmul.f32 %v984_v0, %v264_v34  ;;  %v544_v52 = vadd.f32 %v994_v1, %v403_v37  ;;  %v679_v59 = vmax.f32 %v542_v44, 0.0 }
  0x59   : > { %799 = vst.msk [vmem:[%s1017_s25 + $0x220] sm:$0xff] %vm730_vm0, %v661_v49  ;;  %v406_v49 = vmul.f32 %v984_v0, %v265_v38  ;;  %v545_v56 = vadd.f32 %v994_v1, %v404_v41  ;;  %v680_v63 = vmax.f32 %v543_v48, 0.0  ;;  %v283_v48 = vld [vmem:[%s989_s20 + $0x368] sm:$0xff] }
  0x5a   : > { %800 = vst.msk [vmem:[%s1017_s25 + $0x228] sm:$0xff] %vm730_vm0, %v662_v53  ;;  %v407_v53 = vmul.f32 %v984_v0, %v266_v42  ;;  %v546_v60 = vadd.f32 %v994_v1, %v405_v45  ;;  %v681_v5 = vmax.f32 %v544_v52, 0.0  ;;  %v282_v45 = vld [vmem:[%s989_s20 + $0x360] sm:$0xff]  ;;  %v284_v52 = vld [vmem:[%s989_s20 + $0x370] sm:$0xff] }
  0x5b   : > { %801 = vst.msk [vmem:[%s1017_s25 + $0x230] sm:$0xff] %vm730_vm0, %v663_v57  ;;  %v408_v57 = vmul.f32 %v984_v0, %v267_v46  ;;  %v547_v2 = vadd.f32 %v994_v1, %v406_v49  ;;  %v682_v9 = vmax.f32 %v545_v56, 0.0  ;;  %v1516_v46 = vld [vmem:[%s1701_s2] ss:$0 sm:$0xff]  ;;  %v285_v56 = vld [vmem:[%s989_s20 + $0x378] sm:$0xff] }
  0x5c   : > { %802 = vst.msk [vmem:[%s1017_s25 + $0x238] sm:$0xff] %vm730_vm0, %v664_v61  ;;  %v409_v61 = vmul.f32 %v984_v0, %v268_v50  ;;  %v548_v6 = vadd.f32 %v994_v1, %v407_v53  ;;  %v683_v13 = vmax.f32 %v546_v60, 0.0  ;;  %v286_v60 = vld [vmem:[%s989_s20 + $0x380] sm:$0xff] }
  0x5d   : > { %803 = vst.msk [vmem:[%s1017_s25 + $0x240] sm:$0xff] %vm730_vm0, %v665_v3  ;;  %v410_v3 = vmul.f32 %v984_v0, %v269_v54  ;;  %v549_v10 = vadd.f32 %v994_v1, %v408_v57  ;;  %v684_v17 = vmax.f32 %v547_v2, 0.0  ;;  %v287_v2 = vld [vmem:[%s989_s20 + $0x388] sm:$0xff] }
  0x5e   : > { %804 = vst.msk [vmem:[%s1017_s25 + $0x248] sm:$0xff] %vm730_vm0, %v666_v7  ;;  %v411_v7 = vmul.f32 %v984_v0, %v270_v58  ;;  %v550_v14 = vadd.f32 %v994_v1, %v409_v61  ;;  %v685_v21 = vmax.f32 %v548_v6, 0.0  ;;  %v288_v6 = vld [vmem:[%s989_s20 + $0x390] sm:$0xff] }
  0x5f   : > { %805 = vst.msk [vmem:[%s1017_s25 + $0x250] sm:$0xff] %vm730_vm0, %v667_v11  ;;  %v412_v11 = vmul.f32 %v984_v0, %v271_v62  ;;  %v551_v18 = vadd.f32 %v994_v1, %v410_v3  ;;  %v686_v25 = vmax.f32 %v549_v10, 0.0  ;;  %v289_v10 = vld [vmem:[%s989_s20 + $0x398] sm:$0xff] }
  0x60   : > { %806 = vst.msk [vmem:[%s1017_s25 + $0x258] sm:$0xff] %vm730_vm0, %v668_v15  ;;  %v413_v15 = vmul.f32 %v984_v0, %v272_v4  ;;  %v552_v22 = vadd.f32 %v994_v1, %v411_v7  ;;  %v687_v29 = vmax.f32 %v550_v14, 0.0  ;;  %v290_v14 = vld [vmem:[%s989_s20 + $0x3a0] sm:$0xff] }
  0x61   : > { %807 = vst.msk [vmem:[%s1017_s25 + $0x260] sm:$0xff] %vm730_vm0, %v669_v19  ;;  %v414_v19 = vmul.f32 %v984_v0, %v273_v8  ;;  %v553_v26 = vadd.f32 %v994_v1, %v412_v11  ;;  %v688_v33 = vmax.f32 %v551_v18, 0.0  ;;  %v291_v18 = vld [vmem:[%s989_s20 + $0x3a8] sm:$0xff] }
  0x62   : > { %808 = vst.msk [vmem:[%s1017_s25 + $0x268] sm:$0xff] %vm730_vm0, %v670_v23  ;;  %v415_v23 = vmul.f32 %v984_v0, %v274_v12  ;;  %v554_v30 = vadd.f32 %v994_v1, %v413_v15  ;;  %v689_v37 = vmax.f32 %v552_v22, 0.0  ;;  %v292_v22 = vld [vmem:[%s989_s20 + $0x3b0] sm:$0xff] }
  0x63   : > { %809 = vst.msk [vmem:[%s1017_s25 + $0x270] sm:$0xff] %vm730_vm0, %v671_v27  ;;  %v416_v27 = vmul.f32 %v984_v0, %v275_v16  ;;  %v555_v34 = vadd.f32 %v994_v1, %v414_v19  ;;  %v690_v41 = vmax.f32 %v553_v26, 0.0  ;;  %v293_v26 = vld [vmem:[%s989_s20 + $0x3b8] sm:$0xff] }
  0x64   : > { %810 = vst.msk [vmem:[%s1017_s25 + $0x278] sm:$0xff] %vm730_vm0, %v672_v31  ;;  %v417_v31 = vmul.f32 %v984_v0, %v276_v20  ;;  %v556_v38 = vadd.f32 %v994_v1, %v415_v23 }
  0x65   : > { %811 = vst.msk [vmem:[%s1017_s25 + $0x280] sm:$0xff] %vm730_vm0, %v673_v35  ;;  %v418_v35 = vmul.f32 %v984_v0, %v277_v24  ;;  %v557_v42 = vadd.f32 %v994_v1, %v416_v27  ;;  %v692_v49 = vmax.f32 %v555_v34, 0.0  ;;  %v295_v34 = vld [vmem:[%s989_s20 + $0x3c8] sm:$0xff] }
  0x66   : > { %812 = vst.msk [vmem:[%s1017_s25 + $0x288] sm:$0xff] %vm730_vm0, %v674_v39  ;;  %v419_v39 = vmul.f32 %v984_v0, %v278_v28  ;;  %v691_v0 = vmax.f32 %v554_v30, 0.0  ;;  %v558_v1 = vadd.f32 %v1516_v46, %v417_v31  ;;  %v693_v53 = vmax.f32 %v556_v38, 0.0  ;;  %v294_v30 = vld [vmem:[%s989_s20 + $0x3c0] sm:$0xff]  ;;  %v296_v38 = vld [vmem:[%s989_s20 + $0x3d0] sm:$0xff] }
  0x67   : > { %813 = vst.msk [vmem:[%s1017_s25 + $0x290] sm:$0xff] %vm730_vm0, %v675_v43  ;;  %v1507_v43 = vld [vmem:[%s1700_s1] ss:$0 sm:$0xff]  ;;  %v559_v50 = vadd.f32 %v1516_v46, %v418_v35  ;;  %v694_v57 = vmax.f32 %v557_v42, 0.0  ;;  %v297_v42 = vld [vmem:[%s989_s20 + $0x3d8] sm:$0xff] }
  0x68   : > { %814 = vst.msk [vmem:[%s1017_s25 + $0x298] sm:$0xff] %vm730_vm0, %v676_v47  ;;  %v420_v44 = vmul.f32 %v1507_v43, %v279_v32  ;;  %v421_v47 = vmul.f32 %v1507_v43, %v280_v36  ;;  %v560_v54 = vadd.f32 %v1516_v46, %v419_v39  ;;  %v695_v61 = vmax.f32 %v558_v1, 0.0  ;;  %v298_v1 = vld [vmem:[%s989_s20 + $0x3e0] sm:$0xff] }
  0x69   : > { %815 = vst.msk [vmem:[%s1017_s25 + $0x2a0] sm:$0xff] %vm730_vm0, %v677_v51  ;;  %v422_v51 = vmul.f32 %v1507_v43, %v281_v40  ;;  %v696_v3 = vmax.f32 %v559_v50, 0.0  ;;  %v299_v50 = vld [vmem:[%s989_s20 + $0x3e8] sm:$0xff] }
  0x6a   : > { %816 = vst.msk [vmem:[%s1017_s25 + $0x2a8] sm:$0xff] %vm730_vm0, %v678_v55  ;;  %v423_v55 = vmul.f32 %v1507_v43, %v282_v45  ;;  %v561_v58 = vadd.f32 %v1516_v46, %v420_v44  ;;  %v562_v62 = vadd.f32 %v1516_v46, %v421_v47  ;;  %v697_v7 = vmax.f32 %v560_v54, 0.0  ;;  %v300_v54 = vld [vmem:[%s989_s20 + $0x3f0] sm:$0xff] }
  0x6b   : > { %817 = vst.msk [vmem:[%s1017_s25 + $0x2b0] sm:$0xff] %vm730_vm0, %v679_v59  ;;  %v424_v59 = vmul.f32 %v1507_v43, %v283_v48  ;;  %v563_v4 = vadd.f32 %v1516_v46, %v422_v51 }
  0x6c   : > { %818 = vst.msk [vmem:[%s1017_s25 + $0x2b8] sm:$0xff] %vm730_vm0, %v680_v63  ;;  %v425_v63 = vmul.f32 %v1507_v43, %v284_v52  ;;  %v564_v8 = vadd.f32 %v1516_v46, %v423_v55  ;;  %v698_v11 = vmax.f32 %v561_v58, 0.0  ;;  %v699_v15 = vmax.f32 %v562_v62, 0.0  ;;  %v301_v58 = vld [vmem:[%s989_s20 + $0x3f8] sm:$0xff]  ;;  %v302_v62 = vld [vmem:[%s989_s20 + $0x400] sm:$0xff] }
  0x6d   : > { %819 = vst.msk [vmem:[%s1017_s25 + $0x2c0] sm:$0xff] %vm730_vm0, %v681_v5  ;;  %v426_v5 = vmul.f32 %v1507_v43, %v285_v56  ;;  %v565_v12 = vadd.f32 %v1516_v46, %v424_v59  ;;  %v700_v19 = vmax.f32 %v563_v4, 0.0  ;;  %v303_v4 = vld [vmem:[%s989_s20 + $0x408] sm:$0xff] }
  0x6e   : > { %820 = vst.msk [vmem:[%s1017_s25 + $0x2c8] sm:$0xff] %vm730_vm0, %v682_v9  ;;  %v427_v9 = vmul.f32 %v1507_v43, %v286_v60  ;;  %v566_v16 = vadd.f32 %v1516_v46, %v425_v63  ;;  %v701_v23 = vmax.f32 %v564_v8, 0.0  ;;  %v304_v8 = vld [vmem:[%s989_s20 + $0x410] sm:$0xff] }
  0x6f   : > { %821 = vst.msk [vmem:[%s1017_s25 + $0x2d0] sm:$0xff] %vm730_vm0, %v683_v13  ;;  %v428_v13 = vmul.f32 %v1507_v43, %v287_v2  ;;  %v567_v20 = vadd.f32 %v1516_v46, %v426_v5  ;;  %v702_v27 = vmax.f32 %v565_v12, 0.0  ;;  %v305_v12 = vld [vmem:[%s989_s20 + $0x418] sm:$0xff] }
  0x70   : > { %822 = vst.msk [vmem:[%s1017_s25 + $0x2d8] sm:$0xff] %vm730_vm0, %v684_v17  ;;  %v429_v17 = vmul.f32 %v1507_v43, %v288_v6  ;;  %v568_v24 = vadd.f32 %v1516_v46, %v427_v9  ;;  %v703_v31 = vmax.f32 %v566_v16, 0.0  ;;  %v306_v16 = vld [vmem:[%s989_s20 + $0x420] sm:$0xff] }
  0x71   : > { %823 = vst.msk [vmem:[%s1017_s25 + $0x2e0] sm:$0xff] %vm730_vm0, %v685_v21  ;;  %v430_v21 = vmul.f32 %v1507_v43, %v289_v10  ;;  %v569_v28 = vadd.f32 %v1516_v46, %v428_v13  ;;  %v704_v35 = vmax.f32 %v567_v20, 0.0  ;;  %v307_v20 = vld [vmem:[%s989_s20 + $0x428] sm:$0xff] }
  0x72   : > { %824 = vst.msk [vmem:[%s1017_s25 + $0x2e8] sm:$0xff] %vm730_vm0, %v686_v25  ;;  %v431_v25 = vmul.f32 %v1507_v43, %v290_v14  ;;  %v570_v32 = vadd.f32 %v1516_v46, %v429_v17  ;;  %v705_v39 = vmax.f32 %v568_v24, 0.0  ;;  %v308_v24 = vld [vmem:[%s989_s20 + $0x430] sm:$0xff] }
  0x73   : > { %825 = vst.msk [vmem:[%s1017_s25 + $0x2f0] sm:$0xff] %vm730_vm0, %v687_v29  ;;  %v432_v29 = vmul.f32 %v1507_v43, %v291_v18  ;;  %v571_v36 = vadd.f32 %v1516_v46, %v430_v21  ;;  %v706_v44 = vmax.f32 %v569_v28, 0.0  ;;  %v309_v28 = vld [vmem:[%s989_s20 + $0x438] sm:$0xff] }
  0x74   : > { %826 = vst.msk [vmem:[%s1017_s25 + $0x2f8] sm:$0xff] %vm730_vm0, %v688_v33  ;;  %v433_v33 = vmul.f32 %v1507_v43, %v292_v22  ;;  %v572_v40 = vadd.f32 %v1516_v46, %v431_v25  ;;  %v707_v47 = vmax.f32 %v570_v32, 0.0  ;;  %v310_v32 = vld [vmem:[%s989_s20 + $0x440] sm:$0xff] }
  0x75   : > { %827 = vst.msk [vmem:[%s1017_s25 + $0x300] sm:$0xff] %vm730_vm0, %v689_v37  ;;  %v434_v37 = vmul.f32 %v1507_v43, %v293_v26  ;;  %v573_v45 = vadd.f32 %v1516_v46, %v432_v29  ;;  %v708_v51 = vmax.f32 %v571_v36, 0.0 }
  0x76   : > { %828 = vst.msk [vmem:[%s1017_s25 + $0x308] sm:$0xff] %vm730_vm0, %v690_v41  ;;  %v435_v41 = vmul.f32 %v1507_v43, %v294_v30  ;;  %v574_v48 = vadd.f32 %v1516_v46, %v433_v33  ;;  %v709_v55 = vmax.f32 %v572_v40, 0.0 }
  0x77   : > { %829 = vst.msk [vmem:[%s1017_s25 + $0x310] sm:$0xff] %vm730_vm0, %v691_v0  ;;  %v436_v0 = vmul.f32 %v1507_v43, %v295_v34  ;;  %v575_v52 = vadd.f32 %v1516_v46, %v434_v37  ;;  %v710_v59 = vmax.f32 %v573_v45, 0.0 }
  0x78   : > { %830 = vst.msk [vmem:[%s1017_s25 + $0x318] sm:$0xff] %vm730_vm0, %v692_v49  ;;  %v437_v49 = vmul.f32 %v1507_v43, %v296_v38  ;;  %v576_v56 = vadd.f32 %v1516_v46, %v435_v41  ;;  %v711_v63 = vmax.f32 %v574_v48, 0.0  ;;  %v450_v38 = vmul.f32 %v1507_v43, %v309_v28 }
  0x79   : > { %831 = vst.msk [vmem:[%s1017_s25 + $0x320] sm:$0xff] %vm730_vm0, %v693_v53  ;;  %v438_v53 = vmul.f32 %v1507_v43, %v297_v42  ;;  %v577_v60 = vadd.f32 %v1516_v46, %v436_v0  ;;  %v712_v5 = vmax.f32 %v575_v52, 0.0  ;;  %v451_v41 = vmul.f32 %v1507_v43, %v310_v32 }
  0x7a   : > { %832 = vst.msk [vmem:[%s1017_s25 + $0x328] sm:$0xff] %vm730_vm0, %v694_v57  ;;  %v439_v57 = vmul.f32 %v1507_v43, %v298_v1  ;;  %v578_v2 = vadd.f32 %v1516_v46, %v437_v49  ;;  %v713_v9 = vmax.f32 %v576_v56, 0.0 }
  0x7b   : > { %833 = vst.msk [vmem:[%s1017_s25 + $0x330] sm:$0xff] %vm730_vm0, %v695_v61  ;;  %v440_v61 = vmul.f32 %v1507_v43, %v299_v50  ;;  %v579_v6 = vadd.f32 %v1516_v46, %v438_v53  ;;  %v714_v13 = vmax.f32 %v577_v60, 0.0  ;;  %v592_v48 = vadd.f32 %v1516_v46, %v451_v41 }
  0x7c   : > { %834 = vst.msk [vmem:[%s1017_s25 + $0x338] sm:$0xff] %vm730_vm0, %v696_v3  ;;  %v441_v3 = vmul.f32 %v1507_v43, %v300_v54  ;;  %v580_v10 = vadd.f32 %v1516_v46, %v439_v57  ;;  %v715_v17 = vmax.f32 %v578_v2, 0.0 }
  0x7d   : > { %835 = vst.msk [vmem:[%s1017_s25 + $0x340] sm:$0xff] %vm730_vm0, %v697_v7  ;;  %v442_v7 = vmul.f32 %v1507_v43, %v301_v58  ;;  %v581_v14 = vadd.f32 %v1516_v46, %v440_v61  ;;  %v716_v21 = vmax.f32 %v579_v6, 0.0  ;;  %v729_v52 = vmax.f32 %v592_v48, 0.0 }
  0x7e   : > { %836 = vst.msk [vmem:[%s1017_s25 + $0x348] sm:$0xff] %vm730_vm0, %v698_v11  ;;  %v443_v11 = vmul.f32 %v1507_v43, %v302_v62  ;;  %v582_v18 = vadd.f32 %v1516_v46, %v441_v3  ;;  %v717_v25 = vmax.f32 %v580_v10, 0.0 }
  0x7f   : > { %837 = vst.msk [vmem:[%s1017_s25 + $0x350] sm:$0xff] %vm730_vm0, %v699_v15  ;;  %v444_v15 = vmul.f32 %v1507_v43, %v303_v4  ;;  %v583_v22 = vadd.f32 %v1516_v46, %v442_v7  ;;  %v718_v29 = vmax.f32 %v581_v14, 0.0 }
  0x80   : > { %838 = vst.msk [vmem:[%s1017_s25 + $0x358] sm:$0xff] %vm730_vm0, %v700_v19  ;;  %v445_v19 = vmul.f32 %v1507_v43, %v304_v8  ;;  %v584_v26 = vadd.f32 %v1516_v46, %v443_v11  ;;  %v719_v33 = vmax.f32 %v582_v18, 0.0 }
  0x81   : > { %839 = vst.msk [vmem:[%s1017_s25 + $0x360] sm:$0xff] %vm730_vm0, %v701_v23  ;;  %v446_v23 = vmul.f32 %v1507_v43, %v305_v12  ;;  %v585_v30 = vadd.f32 %v1516_v46, %v444_v15  ;;  %v720_v36 = vmax.f32 %v583_v22, 0.0 }
  0x82   : > { %840 = vst.msk [vmem:[%s1017_s25 + $0x368] sm:$0xff] %vm730_vm0, %v702_v27  ;;  %v447_v27 = vmul.f32 %v1507_v43, %v306_v16  ;;  %v586_v34 = vadd.f32 %v1516_v46, %v445_v19 }
  0x83   : > { %841 = vst.msk [vmem:[%s1017_s25 + $0x370] sm:$0xff] %vm730_vm0, %v703_v31  ;;  %v448_v31 = vmul.f32 %v1507_v43, %v307_v20  ;;  %v587_v37 = vadd.f32 %v1516_v46, %v446_v23  ;;  %v722_v42 = vmax.f32 %v585_v30, 0.0 }
  0x84   : > { %842 = vst.msk [vmem:[%s1017_s25 + $0x378] sm:$0xff] %vm730_vm0, %v704_v35  ;;  %v449_v35 = vmul.f32 %v1507_v43, %v308_v24  ;;  %v588_v40 = vadd.f32 %v1516_v46, %v447_v27  ;;  %v723_v45 = vmax.f32 %v586_v34, 0.0  ;;  %v591_v43 = vadd.f32 %v1516_v46, %v450_v38 }
  0x85   : > { %843 = vst.msk [vmem:[%s1017_s25 + $0x380] sm:$0xff] %vm730_vm0, %v705_v39  ;;  %v721_v39 = vmax.f32 %v584_v26, 0.0  ;;  %v724_v1 = vmax.f32 %v587_v37, 0.0 }
  0x86   : > { %844 = vst.msk [vmem:[%s1017_s25 + $0x388] sm:$0xff] %vm730_vm0, %v706_v44  ;;  %v589_v44 = vadd.f32 %v1516_v46, %v448_v31  ;;  %v590_v0 = vadd.f32 %v1516_v46, %v449_v35 }
  0x87   : > { %845 = vst.msk [vmem:[%s1017_s25 + $0x390] sm:$0xff] %vm730_vm0, %v707_v47  ;;  %v725_v47 = vmax.f32 %v588_v40, 0.0 }
  0x88   : > { %846 = vst.msk [vmem:[%s1017_s25 + $0x398] sm:$0xff] %vm730_vm0, %v708_v51  ;;  %v726_v49 = vmax.f32 %v589_v44, 0.0  ;;  %v727_v50 = vmax.f32 %v590_v0, 0.0  ;;  %v728_v51 = vmax.f32 %v591_v43, 0.0 }
  0x89   : > { %847 = vst.msk [vmem:[%s1017_s25 + $0x3a0] sm:$0xff] %vm730_vm0, %v709_v55 }
  0x8a   : > { %848 = vst.msk [vmem:[%s1017_s25 + $0x3a8] sm:$0xff] %vm730_vm0, %v710_v59 }
  0x8b   : > { %849 = vst.msk [vmem:[%s1017_s25 + $0x3b0] sm:$0xff] %vm730_vm0, %v711_v63 }
  0x8c   : > { %850 = vst.msk [vmem:[%s1017_s25 + $0x3b8] sm:$0xff] %vm730_vm0, %v712_v5 }
  0x8d   : > { %851 = vst.msk [vmem:[%s1017_s25 + $0x3c0] sm:$0xff] %vm730_vm0, %v713_v9 }
  0x8e   : > { %852 = vst.msk [vmem:[%s1017_s25 + $0x3c8] sm:$0xff] %vm730_vm0, %v714_v13 }
  0x8f   : > { %853 = vst.msk [vmem:[%s1017_s25 + $0x3d0] sm:$0xff] %vm730_vm0, %v715_v17 }
  0x90   : > { %854 = vst.msk [vmem:[%s1017_s25 + $0x3d8] sm:$0xff] %vm730_vm0, %v716_v21 }
  0x91   : > { %855 = vst.msk [vmem:[%s1017_s25 + $0x3e0] sm:$0xff] %vm730_vm0, %v717_v25 }
  0x92   : > { %856 = vst.msk [vmem:[%s1017_s25 + $0x3e8] sm:$0xff] %vm730_vm0, %v718_v29 }
  0x93   : > { %857 = vst.msk [vmem:[%s1017_s25 + $0x3f0] sm:$0xff] %vm730_vm0, %v719_v33 }
  0x94   : > { %858 = vst.msk [vmem:[%s1017_s25 + $0x3f8] sm:$0xff] %vm730_vm0, %v720_v36 }
  0x95   : > { %859 = vst.msk [vmem:[%s1017_s25 + $0x400] sm:$0xff] %vm730_vm0, %v721_v39 }
  0x96   : > { %860 = vst.msk [vmem:[%s1017_s25 + $0x408] sm:$0xff] %vm730_vm0, %v722_v42 }
  0x97   : > { %861 = vst.msk [vmem:[%s1017_s25 + $0x410] sm:$0xff] %vm730_vm0, %v723_v45 }
  0x98   : > { %862 = vst.msk [vmem:[%s1017_s25 + $0x418] sm:$0xff] %vm730_vm0, %v724_v1 }
  0x99   : > { %863 = vst.msk [vmem:[%s1017_s25 + $0x420] sm:$0xff] %vm730_vm0, %v725_v47 }
  0x9a   : > { %864 = vst.msk [vmem:[%s1017_s25 + $0x428] sm:$0xff] %vm730_vm0, %v726_v49 }
  0x9b   : > { %865 = vst.msk [vmem:[%s1017_s25 + $0x430] sm:$0xff] %vm730_vm0, %v727_v50 }
  0x9c   : > { %866 = vst.msk [vmem:[%s1017_s25 + $0x438] sm:$0xff] %vm730_vm0, %v728_v51 }
  0x9d   : > { %867 = vst.msk [vmem:[%s1017_s25 + $0x440] sm:$0xff] %vm730_vm0, %v729_v52 }
  0x9e PF: > { %s13_s12 = sadd.s32 1, %s951_s12  }
  0x9f   : > { %p10_p4 = scmp.ge.s32.totalorder %s13_s12, 4  }
  0xa1   :  { %12 = sbr.rel (!%p10_p4) target bundleno = 1 (0x1), region = 62 }

// kernel: up_convolution.6
= control target key start
LH: loop header
LB: loop body
LE: loop exit
PB: predicated region body
PF: predicated region fallthrough
CT: control target
= control target key end

     0   :  { %s1051_s9 = smov 0   ;;  %s1496_s0 = inlined_call_operand.vmem [shape: f32[2192,8], index: 0, kind: input, shape index: {}]   ;;  %s1497_s1 = inlined_call_operand.vmem [shape: f32[1,8], index: 1, kind: output, shape index: {0}]   ;;  %s1498_s2 = inlined_call_operand.vmem [shape: f32[1,8], index: 2, kind: output, shape index: {1}]  }
   0x1 LB: > { %s1010_s10 = sadd.s32 4294967295, %s1033_s9   ;;  %p1013_p0 = scmp.ge.s32.totalorder %s1033_s9, 1  ;;  %s1033_s9 = sphi %s1051_s9, %s13_s9  }
   0x2   : > { %p106_p1 = scmp.lt.s32.totalorder %s1033_s9, 3 }
   0x4   : > { %p107_p2 = pnand %p1013_p0, %p106_p1 }
   0x5   : > { %s123_s11 = smul.u32 (!%p107_p2), 137, %s1010_s10  ;;  %p1015_p4 = scmp.ne.s32.totalorder (!%p107_p2), %s1010_s10, 0 }
   0x6   : > { %110 = sbr.rel (%p107_p2) target bundleno = 312 (0x138), region = 24 }
   0x7   : > { %p124_p3 = scmp.lt.s32.totalorder (!%p107_p2), %s123_s11, 273 }
   0xb   : > { %s1500_s11 = smov (!%p124_p3, %s123_s11), 273  ;;  %132 = sbr.rel (%p1015_p4) target bundleno = 19 (0x13), region = 28 }
   0xc   : > { %s1014_s12 = sshll.u32 %s1500_s11, 3 }
   0xd   : > { %s1062_s15 = scalar_lea.vmem %s1496_s0, %s1014_s12 }
  0x10   : > { %vm133_vm0 = vcmask 57344   ;;  %v1035_v0 = vmov 0.0  }
  0x11   : > { %134 = vst.msk [vmem:[%s1497_s1] sm:$0x1] %vm133_vm0, %v1035_v0 }
  0x12   : > { %135 = vst.msk [vmem:[%s1498_s2] sm:$0x1] %vm133_vm0, %v1035_v0 }
  0x13 PF: > { %v136_v1 = vld [vmem:[%s1062_s15] sm:$0xff]  ;;  %v137_v2 = vld [vmem:[%s1062_s15 + $0x8] sm:$0xff]  ;;  %v138_v3 = vld [vmem:[%s1062_s15 + $0x10] sm:$0xff]  ;;  %vm274_vm1 = vcmask 64512   ;;  %vm555_vm2 = vcmask 57344  }
  0x14   : > { %v275_v4 = vsel %vm274_vm1, %v136_v1, 0.0  ;;  %v276_v5 = vsel %vm274_vm1, %v137_v2, 0.0  ;;  %v278_v6 = vsel %vm274_vm1, %v138_v3, 0.0  ;;  %v139_v7 = vld [vmem:[%s1062_s15 + $0x18] sm:$0xff]  ;;  %v140_v10 = vld [vmem:[%s1062_s15 + $0x20] sm:$0xff]  ;;  %v141_v13 = vld [vmem:[%s1062_s15 + $0x28] sm:$0xff]  ;;  %v558_v21 = vmul.f32 %v136_v1, %v136_v1 }
  0x15   : > { %v277_v8 = vadd.f32 %v276_v5, %v275_v4  ;;  %v280_v9 = vsel %vm274_vm1, %v139_v7, 0.0  ;;  %v282_v12 = vsel %vm274_vm1, %v140_v10, 0.0  ;;  %v284_v15 = vsel %vm274_vm1, %v141_v13, 0.0  ;;  %v142_v16 = vld [vmem:[%s1062_s15 + $0x30] sm:$0xff]  ;;  %v143_v19 = vld [vmem:[%s1062_s15 + $0x38] sm:$0xff]  ;;  %v144_v25 = vld [vmem:[%s1062_s15 + $0x40] sm:$0xff] }
  0x16   : > { %v286_v18 = vsel %vm274_vm1, %v142_v16, 0.0  ;;  %v288_v22 = vsel %vm274_vm1, %v143_v19, 0.0  ;;  %v559_v23 = vmul.f32 %v137_v2, %v137_v2  ;;  %v560_v24 = vmul.f32 %v138_v3, %v138_v3  ;;  %v145_v29 = vld [vmem:[%s1062_s15 + $0x48] sm:$0xff]  ;;  %v146_v36 = vld [vmem:[%s1062_s15 + $0x50] sm:$0xff]  ;;  %v147_v42 = vld [vmem:[%s1062_s15 + $0x58] sm:$0xff] }
  0x17   : > { %v279_v11 = vadd.f32 %v278_v6, %v277_v8  ;;  %v290_v27 = vsel %vm274_vm1, %v144_v25, 0.0  ;;  %v561_v28 = vmul.f32 %v139_v7, %v139_v7  ;;  %v695_v31 = vsel %vm274_vm1, %v558_v21, 0.0  ;;  %v148_v48 = vld [vmem:[%s1062_s15 + $0x60] sm:$0xff]  ;;  %v149_v54 = vld [vmem:[%s1062_s15 + $0x68] sm:$0xff]  ;;  %v150_v60 = vld [vmem:[%s1062_s15 + $0x70] sm:$0xff] }
  0x18   : > { %v292_v32 = vsel %vm274_vm1, %v145_v29, 0.0  ;;  %v562_v33 = vmul.f32 %v140_v10, %v140_v10  ;;  %v696_v34 = vsel %vm274_vm1, %v559_v23, 0.0  ;;  %v698_v35 = vsel %vm274_vm1, %v560_v24, 0.0  ;;  %v151_v2 = vld [vmem:[%s1062_s15 + $0x78] sm:$0xff]  ;;  %v152_v8 = vld [vmem:[%s1062_s15 + $0x80] sm:$0xff] }
  0x19   : > { %v281_v14 = vadd.f32 %v280_v9, %v279_v11  ;;  %v697_v38 = vadd.f32 %v696_v34, %v695_v31  ;;  %v294_v39 = vsel %vm274_vm1, %v146_v36, 0.0  ;;  %v563_v40 = vmul.f32 %v141_v13, %v141_v13 }
  0x1a   : > { %v700_v41 = vsel %vm274_vm1, %v561_v28, 0.0  ;;  %v296_v45 = vsel %vm274_vm1, %v147_v42, 0.0  ;;  %v564_v46 = vmul.f32 %v142_v16, %v142_v16  ;;  %v702_v47 = vsel %vm274_vm1, %v562_v33, 0.0 }
  0x1b   : > { %v283_v17 = vadd.f32 %v282_v12, %v281_v14  ;;  %v699_v44 = vadd.f32 %v698_v35, %v697_v38  ;;  %v298_v51 = vsel %vm274_vm1, %v148_v48, 0.0  ;;  %v565_v52 = vmul.f32 %v143_v19, %v143_v19  ;;  %v153_v14 = vld [vmem:[%s1062_s15 + $0x88] sm:$0xff] }
  0x1c   : > { %v704_v53 = vsel %vm274_vm1, %v563_v40, 0.0  ;;  %v300_v57 = vsel %vm274_vm1, %v149_v54, 0.0  ;;  %v566_v58 = vmul.f32 %v144_v25, %v144_v25  ;;  %v706_v59 = vsel %vm274_vm1, %v564_v46, 0.0  ;;  %v157_v38 = vld [vmem:[%s1062_s15 + $0xa8] sm:$0xff] }
  0x1d   : > { %v285_v20 = vadd.f32 %v284_v15, %v283_v17  ;;  %v701_v50 = vadd.f32 %v700_v41, %v699_v44  ;;  %v302_v63 = vsel %vm274_vm1, %v150_v60, 0.0  ;;  %v567_v0 = vmul.f32 %v145_v29, %v145_v29  ;;  %v158_v44 = vld [vmem:[%s1062_s15 + $0xb0] sm:$0xff] }
  0x1e   : > { %v708_v1 = vsel %vm274_vm1, %v565_v52, 0.0  ;;  %v304_v5 = vsel %vm274_vm1, %v151_v2, 0.0  ;;  %v568_v6 = vmul.f32 %v146_v36, %v146_v36  ;;  %v710_v7 = vsel %vm274_vm1, %v566_v58, 0.0 }
  0x1f   : > { %v287_v26 = vadd.f32 %v286_v18, %v285_v20  ;;  %v703_v56 = vadd.f32 %v702_v47, %v701_v50  ;;  %v306_v11 = vsel %vm274_vm1, %v152_v8, 0.0  ;;  %v569_v12 = vmul.f32 %v147_v42, %v147_v42  ;;  %v154_v20 = vld [vmem:[%s1062_s15 + $0x90] sm:$0xff]  ;;  %v159_v50 = vld [vmem:[%s1062_s15 + $0xb8] sm:$0xff] }
  0x20   : > { %v712_v13 = vsel %vm274_vm1, %v567_v0, 0.0  ;;  %v308_v17 = vsel %vm274_vm1, %v153_v14, 0.0  ;;  %v570_v18 = vmul.f32 %v148_v48, %v148_v48  ;;  %v714_v19 = vsel %vm274_vm1, %v568_v6, 0.0 }
  0x21   : > { %v289_v30 = vadd.f32 %v288_v22, %v287_v26  ;;  %v705_v62 = vadd.f32 %v704_v53, %v703_v56  ;;  %v310_v23 = vsel %vm274_vm1, %v154_v20, 0.0  ;;  %v571_v24 = vmul.f32 %v149_v54, %v149_v54  ;;  %v155_v26 = vld [vmem:[%s1062_s15 + $0x98] sm:$0xff]  ;;  %v160_v56 = vld [vmem:[%s1062_s15 + $0xc0] sm:$0xff] }
  0x22   : > { %v716_v25 = vsel %vm274_vm1, %v569_v12, 0.0  ;;  %v312_v29 = vsel %vm274_vm1, %v155_v26, 0.0  ;;  %v718_v31 = vsel %vm274_vm1, %v570_v18, 0.0  ;;  %v573_v36 = vmul.f32 %v151_v2, %v151_v2 }
  0x23   : > { %v291_v37 = vadd.f32 %v290_v27, %v289_v30  ;;  %v707_v4 = vadd.f32 %v706_v59, %v705_v62  ;;  %v572_v30 = vmul.f32 %v150_v60, %v150_v60  ;;  %v316_v41 = vsel %vm274_vm1, %v157_v38, 0.0  ;;  %v161_v62 = vld [vmem:[%s1062_s15 + $0xc8] sm:$0xff] }
  0x24   : > { %v574_v42 = vmul.f32 %v152_v8, %v152_v8  ;;  %v318_v47 = vsel %vm274_vm1, %v158_v44, 0.0  ;;  %v575_v48 = vmul.f32 %v153_v14, %v153_v14  ;;  %v320_v53 = vsel %vm274_vm1, %v159_v50, 0.0 }
  0x25   : > { %v293_v43 = vadd.f32 %v292_v32, %v291_v37  ;;  %v709_v10 = vadd.f32 %v708_v1, %v707_v4  ;;  %v156_v32 = vld [vmem:[%s1062_s15 + $0xa0] sm:$0xff]  ;;  %v720_v37 = vsel %vm274_vm1, %v571_v24, 0.0  ;;  %v576_v54 = vmul.f32 %v154_v20, %v154_v20  ;;  %v162_v4 = vld [vmem:[%s1062_s15 + $0xd0] sm:$0xff] }
  0x26   : > { %v314_v35 = vsel %vm274_vm1, %v156_v32, 0.0  ;;  %v322_v59 = vsel %vm274_vm1, %v160_v56, 0.0  ;;  %v577_v60 = vmul.f32 %v155_v26, %v155_v26  ;;  %v324_v1 = vsel %vm274_vm1, %v161_v62, 0.0 }
  0x27   : > { %v295_v49 = vadd.f32 %v294_v39, %v293_v43  ;;  %v711_v16 = vadd.f32 %v710_v7, %v709_v10  ;;  %v722_v43 = vsel %vm274_vm1, %v572_v30, 0.0  ;;  %v578_v2 = vmul.f32 %v156_v32, %v156_v32  ;;  %v163_v10 = vld [vmem:[%s1062_s15 + $0xd8] sm:$0xff] }
  0x28   : > { %v326_v7 = vsel %vm274_vm1, %v162_v4, 0.0  ;;  %v579_v8 = vmul.f32 %v157_v38, %v157_v38  ;;  %v580_v14 = vmul.f32 %v158_v44, %v158_v44  ;;  %v581_v20 = vmul.f32 %v159_v50, %v159_v50 }
  0x29   : > { %v297_v55 = vadd.f32 %v296_v45, %v295_v49  ;;  %v713_v22 = vadd.f32 %v712_v13, %v711_v16  ;;  %v724_v49 = vsel %vm274_vm1, %v573_v36, 0.0  ;;  %v328_v13 = vsel %vm274_vm1, %v163_v10, 0.0  ;;  %v164_v16 = vld [vmem:[%s1062_s15 + $0xe0] sm:$0xff] }
  0x2a   : > { %v582_v26 = vmul.f32 %v160_v56, %v160_v56  ;;  %v583_v32 = vmul.f32 %v161_v62, %v161_v62  ;;  %v584_v38 = vmul.f32 %v162_v4, %v162_v4  ;;  %v585_v44 = vmul.f32 %v163_v10, %v163_v10 }
  0x2b   : > { %v299_v61 = vadd.f32 %v298_v51, %v297_v55  ;;  %v715_v28 = vadd.f32 %v714_v19, %v713_v22  ;;  %v726_v55 = vsel %vm274_vm1, %v574_v42, 0.0  ;;  %v330_v19 = vsel %vm274_vm1, %v164_v16, 0.0  ;;  %v165_v22 = vld [vmem:[%s1062_s15 + $0xe8] sm:$0xff] }
  0x2c   : > { %v586_v50 = vmul.f32 %v164_v16, %v164_v16  ;;  %v587_v56 = vmul.f32 %v165_v22, %v165_v22 }
  0x2d   : > { %v301_v3 = vadd.f32 %v300_v57, %v299_v61  ;;  %v717_v34 = vadd.f32 %v716_v25, %v715_v28  ;;  %v728_v61 = vsel %vm274_vm1, %v575_v48, 0.0  ;;  %v332_v25 = vsel %vm274_vm1, %v165_v22, 0.0  ;;  %v166_v28 = vld [vmem:[%s1062_s15 + $0xf0] sm:$0xff] }
  0x2e   : > { %v588_v62 = vmul.f32 %v166_v28, %v166_v28 }
  0x2f   : > { %v303_v9 = vadd.f32 %v302_v63, %v301_v3  ;;  %v719_v40 = vadd.f32 %v718_v31, %v717_v34  ;;  %v730_v3 = vsel %vm274_vm1, %v576_v54, 0.0  ;;  %v334_v31 = vsel %vm274_vm1, %v166_v28, 0.0  ;;  %v167_v34 = vld [vmem:[%s1062_s15 + $0xf8] sm:$0xff] }
  0x30   : > { %v589_v4 = vmul.f32 %v167_v34, %v167_v34 }
  0x31   : > { %v305_v15 = vadd.f32 %v304_v5, %v303_v9  ;;  %v721_v46 = vadd.f32 %v720_v37, %v719_v40  ;;  %v732_v9 = vsel %vm274_vm1, %v577_v60, 0.0  ;;  %v336_v37 = vsel %vm274_vm1, %v167_v34, 0.0  ;;  %v168_v40 = vld [vmem:[%s1062_s15 + $0x100] sm:$0xff] }
  0x32   : > { %v590_v10 = vmul.f32 %v168_v40, %v168_v40 }
  0x33   : > { %v307_v21 = vadd.f32 %v306_v11, %v305_v15  ;;  %v723_v52 = vadd.f32 %v722_v43, %v721_v46  ;;  %v734_v15 = vsel %vm274_vm1, %v578_v2, 0.0  ;;  %v338_v43 = vsel %vm274_vm1, %v168_v40, 0.0  ;;  %v169_v46 = vld [vmem:[%s1062_s15 + $0x108] sm:$0xff] }
  0x34   : > { %v591_v16 = vmul.f32 %v169_v46, %v169_v46 }
  0x35   : > { %v309_v27 = vadd.f32 %v308_v17, %v307_v21  ;;  %v725_v58 = vadd.f32 %v724_v49, %v723_v52  ;;  %v736_v21 = vsel %vm274_vm1, %v579_v8, 0.0  ;;  %v340_v49 = vsel %vm274_vm1, %v169_v46, 0.0  ;;  %v170_v52 = vld [vmem:[%s1062_s15 + $0x110] sm:$0xff] }
  0x36   : > { %v592_v22 = vmul.f32 %v170_v52, %v170_v52 }
  0x37   : > { %v311_v33 = vadd.f32 %v310_v23, %v309_v27  ;;  %v727_v0 = vadd.f32 %v726_v55, %v725_v58  ;;  %v738_v27 = vsel %vm274_vm1, %v580_v14, 0.0  ;;  %v342_v55 = vsel %vm274_vm1, %v170_v52, 0.0  ;;  %v171_v58 = vld [vmem:[%s1062_s15 + $0x118] sm:$0xff] }
  0x38   : > { %v593_v28 = vmul.f32 %v171_v58, %v171_v58 }
  0x39   : > { %v313_v39 = vadd.f32 %v312_v29, %v311_v33  ;;  %v729_v6 = vadd.f32 %v728_v61, %v727_v0  ;;  %v740_v33 = vsel %vm274_vm1, %v581_v20, 0.0  ;;  %v344_v61 = vsel %vm274_vm1, %v171_v58, 0.0  ;;  %v172_v0 = vld [vmem:[%s1062_s15 + $0x120] sm:$0xff] }
  0x3a   : > { %v594_v34 = vmul.f32 %v172_v0, %v172_v0 }
  0x3b   : > { %v315_v45 = vadd.f32 %v314_v35, %v313_v39  ;;  %v731_v12 = vadd.f32 %v730_v3, %v729_v6  ;;  %v742_v39 = vsel %vm274_vm1, %v582_v26, 0.0  ;;  %v346_v3 = vsel %vm274_vm1, %v172_v0, 0.0  ;;  %v173_v6 = vld [vmem:[%s1062_s15 + $0x128] sm:$0xff] }
  0x3c   : > { %v595_v40 = vmul.f32 %v173_v6, %v173_v6 }
  0x3d   : > { %v317_v51 = vadd.f32 %v316_v41, %v315_v45  ;;  %v733_v18 = vadd.f32 %v732_v9, %v731_v12  ;;  %v744_v45 = vsel %vm274_vm1, %v583_v32, 0.0  ;;  %v348_v9 = vsel %vm274_vm1, %v173_v6, 0.0  ;;  %v174_v12 = vld [vmem:[%s1062_s15 + $0x130] sm:$0xff] }
  0x3e   : > { %v596_v46 = vmul.f32 %v174_v12, %v174_v12 }
  0x3f   : > { %v319_v57 = vadd.f32 %v318_v47, %v317_v51  ;;  %v735_v24 = vadd.f32 %v734_v15, %v733_v18  ;;  %v746_v51 = vsel %vm274_vm1, %v584_v38, 0.0  ;;  %v350_v15 = vsel %vm274_vm1, %v174_v12, 0.0  ;;  %v175_v18 = vld [vmem:[%s1062_s15 + $0x138] sm:$0xff] }
  0x40   : > { %v597_v52 = vmul.f32 %v175_v18, %v175_v18 }
  0x41   : > { %v321_v63 = vadd.f32 %v320_v53, %v319_v57  ;;  %v737_v30 = vadd.f32 %v736_v21, %v735_v24  ;;  %v748_v57 = vsel %vm274_vm1, %v585_v44, 0.0  ;;  %v352_v21 = vsel %vm274_vm1, %v175_v18, 0.0  ;;  %v176_v24 = vld [vmem:[%s1062_s15 + $0x140] sm:$0xff] }
  0x42   : > { %v598_v58 = vmul.f32 %v176_v24, %v176_v24 }
  0x43   : > { %v323_v5 = vadd.f32 %v322_v59, %v321_v63  ;;  %v739_v36 = vadd.f32 %v738_v27, %v737_v30  ;;  %v750_v63 = vsel %vm274_vm1, %v586_v50, 0.0  ;;  %v354_v27 = vsel %vm274_vm1, %v176_v24, 0.0  ;;  %v177_v30 = vld [vmem:[%s1062_s15 + $0x148] sm:$0xff] }
  0x44   : > { %v599_v0 = vmul.f32 %v177_v30, %v177_v30 }
  0x45   : > { %v325_v11 = vadd.f32 %v324_v1, %v323_v5  ;;  %v741_v42 = vadd.f32 %v740_v33, %v739_v36  ;;  %v752_v5 = vsel %vm274_vm1, %v587_v56, 0.0  ;;  %v356_v33 = vsel %vm274_vm1, %v177_v30, 0.0  ;;  %v178_v36 = vld [vmem:[%s1062_s15 + $0x150] sm:$0xff] }
  0x46   : > { %v600_v6 = vmul.f32 %v178_v36, %v178_v36 }
  0x47   : > { %v327_v17 = vadd.f32 %v326_v7, %v325_v11  ;;  %v743_v48 = vadd.f32 %v742_v39, %v741_v42  ;;  %v754_v11 = vsel %vm274_vm1, %v588_v62, 0.0  ;;  %v358_v39 = vsel %vm274_vm1, %v178_v36, 0.0  ;;  %v179_v42 = vld [vmem:[%s1062_s15 + $0x158] sm:$0xff] }
  0x48   : > { %v601_v12 = vmul.f32 %v179_v42, %v179_v42 }
  0x49   : > { %v329_v23 = vadd.f32 %v328_v13, %v327_v17  ;;  %v745_v54 = vadd.f32 %v744_v45, %v743_v48  ;;  %v756_v17 = vsel %vm274_vm1, %v589_v4, 0.0  ;;  %v360_v45 = vsel %vm274_vm1, %v179_v42, 0.0  ;;  %v180_v48 = vld [vmem:[%s1062_s15 + $0x160] sm:$0xff] }
  0x4a   : > { %v602_v18 = vmul.f32 %v180_v48, %v180_v48 }
  0x4b   : > { %v331_v29 = vadd.f32 %v330_v19, %v329_v23  ;;  %v747_v60 = vadd.f32 %v746_v51, %v745_v54  ;;  %v758_v23 = vsel %vm274_vm1, %v590_v10, 0.0  ;;  %v362_v51 = vsel %vm274_vm1, %v180_v48, 0.0  ;;  %v181_v54 = vld [vmem:[%s1062_s15 + $0x168] sm:$0xff] }
  0x4c   : > { %v603_v24 = vmul.f32 %v181_v54, %v181_v54 }
  0x4d   : > { %v333_v35 = vadd.f32 %v332_v25, %v331_v29  ;;  %v749_v2 = vadd.f32 %v748_v57, %v747_v60  ;;  %v760_v29 = vsel %vm274_vm1, %v591_v16, 0.0  ;;  %v364_v57 = vsel %vm274_vm1, %v181_v54, 0.0  ;;  %v182_v60 = vld [vmem:[%s1062_s15 + $0x170] sm:$0xff] }
  0x4e   : > { %v604_v30 = vmul.f32 %v182_v60, %v182_v60 }
  0x4f   : > { %v335_v41 = vadd.f32 %v334_v31, %v333_v35  ;;  %v751_v8 = vadd.f32 %v750_v63, %v749_v2  ;;  %v762_v35 = vsel %vm274_vm1, %v592_v22, 0.0  ;;  %v366_v63 = vsel %vm274_vm1, %v182_v60, 0.0  ;;  %v183_v2 = vld [vmem:[%s1062_s15 + $0x178] sm:$0xff] }
  0x50   : > { %v605_v36 = vmul.f32 %v183_v2, %v183_v2 }
  0x51   : > { %v337_v47 = vadd.f32 %v336_v37, %v335_v41  ;;  %v753_v14 = vadd.f32 %v752_v5, %v751_v8  ;;  %v764_v41 = vsel %vm274_vm1, %v593_v28, 0.0  ;;  %v368_v5 = vsel %vm274_vm1, %v183_v2, 0.0  ;;  %v184_v8 = vld [vmem:[%s1062_s15 + $0x180] sm:$0xff] }
  0x52   : > { %v606_v42 = vmul.f32 %v184_v8, %v184_v8 }
  0x53   : > { %v339_v53 = vadd.f32 %v338_v43, %v337_v47  ;;  %v755_v20 = vadd.f32 %v754_v11, %v753_v14  ;;  %v766_v47 = vsel %vm274_vm1, %v594_v34, 0.0  ;;  %v370_v11 = vsel %vm274_vm1, %v184_v8, 0.0  ;;  %v185_v14 = vld [vmem:[%s1062_s15 + $0x188] sm:$0xff] }
  0x54   : > { %v607_v48 = vmul.f32 %v185_v14, %v185_v14 }
  0x55   : > { %v341_v59 = vadd.f32 %v340_v49, %v339_v53  ;;  %v757_v26 = vadd.f32 %v756_v17, %v755_v20  ;;  %v768_v53 = vsel %vm274_vm1, %v595_v40, 0.0  ;;  %v372_v17 = vsel %vm274_vm1, %v185_v14, 0.0  ;;  %v186_v20 = vld [vmem:[%s1062_s15 + $0x190] sm:$0xff] }
  0x56   : > { %v608_v54 = vmul.f32 %v186_v20, %v186_v20 }
  0x57   : > { %v343_v1 = vadd.f32 %v342_v55, %v341_v59  ;;  %v759_v32 = vadd.f32 %v758_v23, %v757_v26  ;;  %v770_v59 = vsel %vm274_vm1, %v596_v46, 0.0  ;;  %v374_v23 = vsel %vm274_vm1, %v186_v20, 0.0  ;;  %v187_v26 = vld [vmem:[%s1062_s15 + $0x198] sm:$0xff] }
  0x58   : > { %v609_v60 = vmul.f32 %v187_v26, %v187_v26 }
  0x59   : > { %v345_v7 = vadd.f32 %v344_v61, %v343_v1  ;;  %v761_v38 = vadd.f32 %v760_v29, %v759_v32  ;;  %v772_v1 = vsel %vm274_vm1, %v597_v52, 0.0  ;;  %v376_v29 = vsel %vm274_vm1, %v187_v26, 0.0  ;;  %v188_v32 = vld [vmem:[%s1062_s15 + $0x1a0] sm:$0xff] }
  0x5a   : > { %v610_v2 = vmul.f32 %v188_v32, %v188_v32 }
  0x5b   : > { %v347_v13 = vadd.f32 %v346_v3, %v345_v7  ;;  %v763_v44 = vadd.f32 %v762_v35, %v761_v38  ;;  %v774_v7 = vsel %vm274_vm1, %v598_v58, 0.0  ;;  %v378_v35 = vsel %vm274_vm1, %v188_v32, 0.0  ;;  %v189_v38 = vld [vmem:[%s1062_s15 + $0x1a8] sm:$0xff] }
  0x5c   : > { %v611_v8 = vmul.f32 %v189_v38, %v189_v38 }
  0x5d   : > { %v349_v19 = vadd.f32 %v348_v9, %v347_v13  ;;  %v765_v50 = vadd.f32 %v764_v41, %v763_v44  ;;  %v776_v13 = vsel %vm274_vm1, %v599_v0, 0.0  ;;  %v380_v41 = vsel %vm274_vm1, %v189_v38, 0.0  ;;  %v190_v44 = vld [vmem:[%s1062_s15 + $0x1b0] sm:$0xff] }
  0x5e   : > { %v612_v14 = vmul.f32 %v190_v44, %v190_v44 }
  0x5f   : > { %v351_v25 = vadd.f32 %v350_v15, %v349_v19  ;;  %v767_v56 = vadd.f32 %v766_v47, %v765_v50  ;;  %v778_v19 = vsel %vm274_vm1, %v600_v6, 0.0  ;;  %v382_v47 = vsel %vm274_vm1, %v190_v44, 0.0  ;;  %v191_v50 = vld [vmem:[%s1062_s15 + $0x1b8] sm:$0xff] }
  0x60   : > { %v613_v20 = vmul.f32 %v191_v50, %v191_v50 }
  0x61   : > { %v353_v31 = vadd.f32 %v352_v21, %v351_v25  ;;  %v769_v62 = vadd.f32 %v768_v53, %v767_v56  ;;  %v780_v25 = vsel %vm274_vm1, %v601_v12, 0.0  ;;  %v384_v53 = vsel %vm274_vm1, %v191_v50, 0.0  ;;  %v192_v56 = vld [vmem:[%s1062_s15 + $0x1c0] sm:$0xff] }
  0x62   : > { %v614_v26 = vmul.f32 %v192_v56, %v192_v56 }
  0x63   : > { %v355_v37 = vadd.f32 %v354_v27, %v353_v31  ;;  %v771_v4 = vadd.f32 %v770_v59, %v769_v62  ;;  %v782_v31 = vsel %vm274_vm1, %v602_v18, 0.0  ;;  %v386_v59 = vsel %vm274_vm1, %v192_v56, 0.0  ;;  %v193_v62 = vld [vmem:[%s1062_s15 + $0x1c8] sm:$0xff] }
  0x64   : > { %v615_v32 = vmul.f32 %v193_v62, %v193_v62 }
  0x65   : > { %v357_v43 = vadd.f32 %v356_v33, %v355_v37  ;;  %v773_v10 = vadd.f32 %v772_v1, %v771_v4  ;;  %v784_v37 = vsel %vm274_vm1, %v603_v24, 0.0  ;;  %v388_v1 = vsel %vm274_vm1, %v193_v62, 0.0  ;;  %v194_v4 = vld [vmem:[%s1062_s15 + $0x1d0] sm:$0xff] }
  0x66   : > { %v616_v38 = vmul.f32 %v194_v4, %v194_v4 }
  0x67   : > { %v359_v49 = vadd.f32 %v358_v39, %v357_v43  ;;  %v775_v16 = vadd.f32 %v774_v7, %v773_v10  ;;  %v786_v43 = vsel %vm274_vm1, %v604_v30, 0.0  ;;  %v390_v7 = vsel %vm274_vm1, %v194_v4, 0.0  ;;  %v195_v10 = vld [vmem:[%s1062_s15 + $0x1d8] sm:$0xff] }
  0x68   : > { %v617_v44 = vmul.f32 %v195_v10, %v195_v10 }
  0x69   : > { %v361_v55 = vadd.f32 %v360_v45, %v359_v49  ;;  %v777_v22 = vadd.f32 %v776_v13, %v775_v16  ;;  %v788_v49 = vsel %vm274_vm1, %v605_v36, 0.0  ;;  %v392_v13 = vsel %vm274_vm1, %v195_v10, 0.0  ;;  %v196_v16 = vld [vmem:[%s1062_s15 + $0x1e0] sm:$0xff] }
  0x6a   : > { %v618_v50 = vmul.f32 %v196_v16, %v196_v16 }
  0x6b   : > { %v363_v61 = vadd.f32 %v362_v51, %v361_v55  ;;  %v779_v28 = vadd.f32 %v778_v19, %v777_v22  ;;  %v790_v55 = vsel %vm274_vm1, %v606_v42, 0.0  ;;  %v394_v19 = vsel %vm274_vm1, %v196_v16, 0.0  ;;  %v197_v22 = vld [vmem:[%s1062_s15 + $0x1e8] sm:$0xff] }
  0x6c   : > { %v619_v56 = vmul.f32 %v197_v22, %v197_v22 }
  0x6d   : > { %v365_v3 = vadd.f32 %v364_v57, %v363_v61  ;;  %v781_v34 = vadd.f32 %v780_v25, %v779_v28  ;;  %v792_v61 = vsel %vm274_vm1, %v607_v48, 0.0  ;;  %v396_v25 = vsel %vm274_vm1, %v197_v22, 0.0  ;;  %v198_v28 = vld [vmem:[%s1062_s15 + $0x1f0] sm:$0xff] }
  0x6e   : > { %v620_v62 = vmul.f32 %v198_v28, %v198_v28 }
  0x6f   : > { %v367_v9 = vadd.f32 %v366_v63, %v365_v3  ;;  %v783_v40 = vadd.f32 %v782_v31, %v781_v34  ;;  %v794_v3 = vsel %vm274_vm1, %v608_v54, 0.0  ;;  %v398_v31 = vsel %vm274_vm1, %v198_v28, 0.0  ;;  %v199_v34 = vld [vmem:[%s1062_s15 + $0x1f8] sm:$0xff] }
  0x70   : > { %v621_v4 = vmul.f32 %v199_v34, %v199_v34 }
  0x71   : > { %v369_v15 = vadd.f32 %v368_v5, %v367_v9  ;;  %v785_v46 = vadd.f32 %v784_v37, %v783_v40  ;;  %v796_v9 = vsel %vm274_vm1, %v609_v60, 0.0  ;;  %v400_v37 = vsel %vm274_vm1, %v199_v34, 0.0  ;;  %v200_v40 = vld [vmem:[%s1062_s15 + $0x200] sm:$0xff] }
  0x72   : > { %v622_v10 = vmul.f32 %v200_v40, %v200_v40 }
  0x73   : > { %v371_v21 = vadd.f32 %v370_v11, %v369_v15  ;;  %v787_v52 = vadd.f32 %v786_v43, %v785_v46  ;;  %v798_v15 = vsel %vm274_vm1, %v610_v2, 0.0  ;;  %v402_v43 = vsel %vm274_vm1, %v200_v40, 0.0  ;;  %v201_v46 = vld [vmem:[%s1062_s15 + $0x208] sm:$0xff] }
  0x74   : > { %v623_v16 = vmul.f32 %v201_v46, %v201_v46 }
  0x75   : > { %v373_v27 = vadd.f32 %v372_v17, %v371_v21  ;;  %v789_v58 = vadd.f32 %v788_v49, %v787_v52  ;;  %v800_v21 = vsel %vm274_vm1, %v611_v8, 0.0  ;;  %v404_v49 = vsel %vm274_vm1, %v201_v46, 0.0  ;;  %v202_v52 = vld [vmem:[%s1062_s15 + $0x210] sm:$0xff] }
  0x76   : > { %v624_v22 = vmul.f32 %v202_v52, %v202_v52 }
  0x77   : > { %v375_v33 = vadd.f32 %v374_v23, %v373_v27  ;;  %v791_v0 = vadd.f32 %v790_v55, %v789_v58  ;;  %v802_v27 = vsel %vm274_vm1, %v612_v14, 0.0  ;;  %v406_v55 = vsel %vm274_vm1, %v202_v52, 0.0  ;;  %v203_v58 = vld [vmem:[%s1062_s15 + $0x218] sm:$0xff] }
  0x78   : > { %v625_v28 = vmul.f32 %v203_v58, %v203_v58 }
  0x79   : > { %v377_v39 = vadd.f32 %v376_v29, %v375_v33  ;;  %v793_v6 = vadd.f32 %v792_v61, %v791_v0  ;;  %v804_v33 = vsel %vm274_vm1, %v613_v20, 0.0  ;;  %v408_v61 = vsel %vm274_vm1, %v203_v58, 0.0  ;;  %v204_v0 = vld [vmem:[%s1062_s15 + $0x220] sm:$0xff] }
  0x7a   : > { %v626_v34 = vmul.f32 %v204_v0, %v204_v0 }
  0x7b   : > { %v379_v45 = vadd.f32 %v378_v35, %v377_v39  ;;  %v795_v12 = vadd.f32 %v794_v3, %v793_v6  ;;  %v806_v39 = vsel %vm274_vm1, %v614_v26, 0.0  ;;  %v410_v3 = vsel %vm274_vm1, %v204_v0, 0.0  ;;  %v205_v6 = vld [vmem:[%s1062_s15 + $0x228] sm:$0xff] }
  0x7c   : > { %v627_v40 = vmul.f32 %v205_v6, %v205_v6 }
  0x7d   : > { %v381_v51 = vadd.f32 %v380_v41, %v379_v45  ;;  %v797_v18 = vadd.f32 %v796_v9, %v795_v12  ;;  %v808_v45 = vsel %vm274_vm1, %v615_v32, 0.0  ;;  %v412_v9 = vsel %vm274_vm1, %v205_v6, 0.0  ;;  %v206_v12 = vld [vmem:[%s1062_s15 + $0x230] sm:$0xff] }
  0x7e   : > { %v628_v46 = vmul.f32 %v206_v12, %v206_v12 }
  0x7f   : > { %v383_v57 = vadd.f32 %v382_v47, %v381_v51  ;;  %v799_v24 = vadd.f32 %v798_v15, %v797_v18  ;;  %v810_v51 = vsel %vm274_vm1, %v616_v38, 0.0  ;;  %v414_v15 = vsel %vm274_vm1, %v206_v12, 0.0  ;;  %v207_v18 = vld [vmem:[%s1062_s15 + $0x238] sm:$0xff] }
  0x80   : > { %v629_v52 = vmul.f32 %v207_v18, %v207_v18 }
  0x81   : > { %v385_v63 = vadd.f32 %v384_v53, %v383_v57  ;;  %v801_v30 = vadd.f32 %v800_v21, %v799_v24  ;;  %v812_v57 = vsel %vm274_vm1, %v617_v44, 0.0  ;;  %v416_v21 = vsel %vm274_vm1, %v207_v18, 0.0  ;;  %v208_v24 = vld [vmem:[%s1062_s15 + $0x240] sm:$0xff] }
  0x82   : > { %v630_v58 = vmul.f32 %v208_v24, %v208_v24 }
  0x83   : > { %v387_v5 = vadd.f32 %v386_v59, %v385_v63  ;;  %v803_v36 = vadd.f32 %v802_v27, %v801_v30  ;;  %v814_v63 = vsel %vm274_vm1, %v618_v50, 0.0  ;;  %v418_v27 = vsel %vm274_vm1, %v208_v24, 0.0  ;;  %v209_v30 = vld [vmem:[%s1062_s15 + $0x248] sm:$0xff] }
  0x84   : > { %v631_v0 = vmul.f32 %v209_v30, %v209_v30 }
  0x85   : > { %v389_v11 = vadd.f32 %v388_v1, %v387_v5  ;;  %v805_v42 = vadd.f32 %v804_v33, %v803_v36  ;;  %v816_v5 = vsel %vm274_vm1, %v619_v56, 0.0  ;;  %v420_v33 = vsel %vm274_vm1, %v209_v30, 0.0  ;;  %v210_v36 = vld [vmem:[%s1062_s15 + $0x250] sm:$0xff] }
  0x86   : > { %v632_v6 = vmul.f32 %v210_v36, %v210_v36 }
  0x87   : > { %v391_v17 = vadd.f32 %v390_v7, %v389_v11  ;;  %v807_v48 = vadd.f32 %v806_v39, %v805_v42  ;;  %v818_v11 = vsel %vm274_vm1, %v620_v62, 0.0  ;;  %v422_v39 = vsel %vm274_vm1, %v210_v36, 0.0  ;;  %v211_v42 = vld [vmem:[%s1062_s15 + $0x258] sm:$0xff] }
  0x88   : > { %v633_v12 = vmul.f32 %v211_v42, %v211_v42 }
  0x89   : > { %v393_v23 = vadd.f32 %v392_v13, %v391_v17  ;;  %v809_v54 = vadd.f32 %v808_v45, %v807_v48  ;;  %v820_v17 = vsel %vm274_vm1, %v621_v4, 0.0  ;;  %v424_v45 = vsel %vm274_vm1, %v211_v42, 0.0  ;;  %v212_v48 = vld [vmem:[%s1062_s15 + $0x260] sm:$0xff] }
  0x8a   : > { %v634_v18 = vmul.f32 %v212_v48, %v212_v48 }
  0x8b   : > { %v395_v29 = vadd.f32 %v394_v19, %v393_v23  ;;  %v811_v60 = vadd.f32 %v810_v51, %v809_v54  ;;  %v822_v23 = vsel %vm274_vm1, %v622_v10, 0.0  ;;  %v426_v51 = vsel %vm274_vm1, %v212_v48, 0.0  ;;  %v213_v54 = vld [vmem:[%s1062_s15 + $0x268] sm:$0xff] }
  0x8c   : > { %v635_v24 = vmul.f32 %v213_v54, %v213_v54 }
  0x8d   : > { %v397_v35 = vadd.f32 %v396_v25, %v395_v29  ;;  %v813_v2 = vadd.f32 %v812_v57, %v811_v60  ;;  %v824_v29 = vsel %vm274_vm1, %v623_v16, 0.0  ;;  %v428_v57 = vsel %vm274_vm1, %v213_v54, 0.0  ;;  %v214_v60 = vld [vmem:[%s1062_s15 + $0x270] sm:$0xff] }
  0x8e   : > { %v636_v30 = vmul.f32 %v214_v60, %v214_v60 }
  0x8f   : > { %v399_v41 = vadd.f32 %v398_v31, %v397_v35  ;;  %v815_v8 = vadd.f32 %v814_v63, %v813_v2  ;;  %v826_v35 = vsel %vm274_vm1, %v624_v22, 0.0  ;;  %v430_v63 = vsel %vm274_vm1, %v214_v60, 0.0  ;;  %v215_v2 = vld [vmem:[%s1062_s15 + $0x278] sm:$0xff] }
  0x90   : > { %v637_v36 = vmul.f32 %v215_v2, %v215_v2 }
  0x91   : > { %v401_v47 = vadd.f32 %v400_v37, %v399_v41  ;;  %v817_v14 = vadd.f32 %v816_v5, %v815_v8  ;;  %v828_v41 = vsel %vm274_vm1, %v625_v28, 0.0  ;;  %v432_v5 = vsel %vm274_vm1, %v215_v2, 0.0  ;;  %v216_v8 = vld [vmem:[%s1062_s15 + $0x280] sm:$0xff] }
  0x92   : > { %v638_v42 = vmul.f32 %v216_v8, %v216_v8 }
  0x93   : > { %v403_v53 = vadd.f32 %v402_v43, %v401_v47  ;;  %v819_v20 = vadd.f32 %v818_v11, %v817_v14  ;;  %v830_v47 = vsel %vm274_vm1, %v626_v34, 0.0  ;;  %v434_v11 = vsel %vm274_vm1, %v216_v8, 0.0  ;;  %v217_v14 = vld [vmem:[%s1062_s15 + $0x288] sm:$0xff] }
  0x94   : > { %v639_v48 = vmul.f32 %v217_v14, %v217_v14 }
  0x95   : > { %v405_v59 = vadd.f32 %v404_v49, %v403_v53  ;;  %v821_v26 = vadd.f32 %v820_v17, %v819_v20  ;;  %v832_v53 = vsel %vm274_vm1, %v627_v40, 0.0  ;;  %v436_v17 = vsel %vm274_vm1, %v217_v14, 0.0  ;;  %v218_v20 = vld [vmem:[%s1062_s15 + $0x290] sm:$0xff] }
  0x96   : > { %v640_v54 = vmul.f32 %v218_v20, %v218_v20 }
  0x97   : > { %v407_v1 = vadd.f32 %v406_v55, %v405_v59  ;;  %v823_v32 = vadd.f32 %v822_v23, %v821_v26  ;;  %v834_v59 = vsel %vm274_vm1, %v628_v46, 0.0  ;;  %v438_v23 = vsel %vm274_vm1, %v218_v20, 0.0  ;;  %v219_v26 = vld [vmem:[%s1062_s15 + $0x298] sm:$0xff] }
  0x98   : > { %v641_v60 = vmul.f32 %v219_v26, %v219_v26 }
  0x99   : > { %v409_v7 = vadd.f32 %v408_v61, %v407_v1  ;;  %v825_v38 = vadd.f32 %v824_v29, %v823_v32  ;;  %v836_v1 = vsel %vm274_vm1, %v629_v52, 0.0  ;;  %v440_v29 = vsel %vm274_vm1, %v219_v26, 0.0  ;;  %v220_v32 = vld [vmem:[%s1062_s15 + $0x2a0] sm:$0xff] }
  0x9a   : > { %v642_v2 = vmul.f32 %v220_v32, %v220_v32 }
  0x9b   : > { %v411_v13 = vadd.f32 %v410_v3, %v409_v7  ;;  %v827_v44 = vadd.f32 %v826_v35, %v825_v38  ;;  %v838_v7 = vsel %vm274_vm1, %v630_v58, 0.0  ;;  %v442_v35 = vsel %vm274_vm1, %v220_v32, 0.0  ;;  %v221_v38 = vld [vmem:[%s1062_s15 + $0x2a8] sm:$0xff] }
  0x9c   : > { %v643_v8 = vmul.f32 %v221_v38, %v221_v38 }
  0x9d   : > { %v413_v19 = vadd.f32 %v412_v9, %v411_v13  ;;  %v829_v50 = vadd.f32 %v828_v41, %v827_v44  ;;  %v840_v13 = vsel %vm274_vm1, %v631_v0, 0.0  ;;  %v444_v41 = vsel %vm274_vm1, %v221_v38, 0.0  ;;  %v222_v44 = vld [vmem:[%s1062_s15 + $0x2b0] sm:$0xff] }
  0x9e   : > { %v644_v14 = vmul.f32 %v222_v44, %v222_v44 }
  0x9f   : > { %v415_v25 = vadd.f32 %v414_v15, %v413_v19  ;;  %v831_v56 = vadd.f32 %v830_v47, %v829_v50  ;;  %v842_v19 = vsel %vm274_vm1, %v632_v6, 0.0  ;;  %v446_v47 = vsel %vm274_vm1, %v222_v44, 0.0  ;;  %v223_v50 = vld [vmem:[%s1062_s15 + $0x2b8] sm:$0xff] }
  0xa0   : > { %v645_v20 = vmul.f32 %v223_v50, %v223_v50 }
  0xa1   : > { %v417_v31 = vadd.f32 %v416_v21, %v415_v25  ;;  %v833_v62 = vadd.f32 %v832_v53, %v831_v56  ;;  %v844_v25 = vsel %vm274_vm1, %v633_v12, 0.0  ;;  %v448_v53 = vsel %vm274_vm1, %v223_v50, 0.0  ;;  %v224_v56 = vld [vmem:[%s1062_s15 + $0x2c0] sm:$0xff] }
  0xa2   : > { %v646_v26 = vmul.f32 %v224_v56, %v224_v56 }
  0xa3   : > { %v419_v37 = vadd.f32 %v418_v27, %v417_v31  ;;  %v835_v4 = vadd.f32 %v834_v59, %v833_v62  ;;  %v846_v31 = vsel %vm274_vm1, %v634_v18, 0.0  ;;  %v450_v59 = vsel %vm274_vm1, %v224_v56, 0.0  ;;  %v225_v62 = vld [vmem:[%s1062_s15 + $0x2c8] sm:$0xff] }
  0xa4   : > { %v647_v32 = vmul.f32 %v225_v62, %v225_v62 }
  0xa5   : > { %v421_v43 = vadd.f32 %v420_v33, %v419_v37  ;;  %v837_v10 = vadd.f32 %v836_v1, %v835_v4  ;;  %v848_v37 = vsel %vm274_vm1, %v635_v24, 0.0  ;;  %v452_v1 = vsel %vm274_vm1, %v225_v62, 0.0  ;;  %v226_v4 = vld [vmem:[%s1062_s15 + $0x2d0] sm:$0xff] }
  0xa6   : > { %v648_v38 = vmul.f32 %v226_v4, %v226_v4 }
  0xa7   : > { %v423_v49 = vadd.f32 %v422_v39, %v421_v43  ;;  %v839_v16 = vadd.f32 %v838_v7, %v837_v10  ;;  %v850_v43 = vsel %vm274_vm1, %v636_v30, 0.0  ;;  %v454_v7 = vsel %vm274_vm1, %v226_v4, 0.0  ;;  %v227_v10 = vld [vmem:[%s1062_s15 + $0x2d8] sm:$0xff] }
  0xa8   : > { %v649_v44 = vmul.f32 %v227_v10, %v227_v10 }
  0xa9   : > { %v425_v55 = vadd.f32 %v424_v45, %v423_v49  ;;  %v841_v22 = vadd.f32 %v840_v13, %v839_v16  ;;  %v852_v49 = vsel %vm274_vm1, %v637_v36, 0.0  ;;  %v456_v13 = vsel %vm274_vm1, %v227_v10, 0.0  ;;  %v228_v16 = vld [vmem:[%s1062_s15 + $0x2e0] sm:$0xff] }
  0xaa   : > { %v650_v50 = vmul.f32 %v228_v16, %v228_v16 }
  0xab   : > { %v427_v61 = vadd.f32 %v426_v51, %v425_v55  ;;  %v843_v28 = vadd.f32 %v842_v19, %v841_v22  ;;  %v854_v55 = vsel %vm274_vm1, %v638_v42, 0.0  ;;  %v458_v19 = vsel %vm274_vm1, %v228_v16, 0.0  ;;  %v229_v22 = vld [vmem:[%s1062_s15 + $0x2e8] sm:$0xff] }
  0xac   : > { %v651_v56 = vmul.f32 %v229_v22, %v229_v22 }
  0xad   : > { %v429_v3 = vadd.f32 %v428_v57, %v427_v61  ;;  %v845_v34 = vadd.f32 %v844_v25, %v843_v28  ;;  %v856_v61 = vsel %vm274_vm1, %v639_v48, 0.0  ;;  %v460_v25 = vsel %vm274_vm1, %v229_v22, 0.0  ;;  %v230_v28 = vld [vmem:[%s1062_s15 + $0x2f0] sm:$0xff] }
  0xae   : > { %v652_v62 = vmul.f32 %v230_v28, %v230_v28 }
  0xaf   : > { %v431_v9 = vadd.f32 %v430_v63, %v429_v3  ;;  %v847_v40 = vadd.f32 %v846_v31, %v845_v34  ;;  %v858_v3 = vsel %vm274_vm1, %v640_v54, 0.0  ;;  %v462_v31 = vsel %vm274_vm1, %v230_v28, 0.0  ;;  %v231_v34 = vld [vmem:[%s1062_s15 + $0x2f8] sm:$0xff] }
  0xb0   : > { %v653_v4 = vmul.f32 %v231_v34, %v231_v34 }
  0xb1   : > { %v433_v15 = vadd.f32 %v432_v5, %v431_v9  ;;  %v849_v46 = vadd.f32 %v848_v37, %v847_v40  ;;  %v860_v9 = vsel %vm274_vm1, %v641_v60, 0.0  ;;  %v464_v37 = vsel %vm274_vm1, %v231_v34, 0.0  ;;  %v232_v40 = vld [vmem:[%s1062_s15 + $0x300] sm:$0xff] }
  0xb2   : > { %v654_v10 = vmul.f32 %v232_v40, %v232_v40 }
  0xb3   : > { %v435_v21 = vadd.f32 %v434_v11, %v433_v15  ;;  %v851_v52 = vadd.f32 %v850_v43, %v849_v46  ;;  %v862_v15 = vsel %vm274_vm1, %v642_v2, 0.0  ;;  %v466_v43 = vsel %vm274_vm1, %v232_v40, 0.0  ;;  %v233_v46 = vld [vmem:[%s1062_s15 + $0x308] sm:$0xff] }
  0xb4   : > { %v655_v16 = vmul.f32 %v233_v46, %v233_v46 }
  0xb5   : > { %v437_v27 = vadd.f32 %v436_v17, %v435_v21  ;;  %v853_v58 = vadd.f32 %v852_v49, %v851_v52  ;;  %v864_v21 = vsel %vm274_vm1, %v643_v8, 0.0  ;;  %v468_v49 = vsel %vm274_vm1, %v233_v46, 0.0  ;;  %v234_v52 = vld [vmem:[%s1062_s15 + $0x310] sm:$0xff] }
  0xb6   : > { %v656_v22 = vmul.f32 %v234_v52, %v234_v52 }
  0xb7   : > { %v439_v33 = vadd.f32 %v438_v23, %v437_v27  ;;  %v855_v0 = vadd.f32 %v854_v55, %v853_v58  ;;  %v866_v27 = vsel %vm274_vm1, %v644_v14, 0.0  ;;  %v470_v55 = vsel %vm274_vm1, %v234_v52, 0.0  ;;  %v235_v58 = vld [vmem:[%s1062_s15 + $0x318] sm:$0xff] }
  0xb8   : > { %v657_v28 = vmul.f32 %v235_v58, %v235_v58 }
  0xb9   : > { %v441_v39 = vadd.f32 %v440_v29, %v439_v33  ;;  %v857_v6 = vadd.f32 %v856_v61, %v855_v0  ;;  %v868_v33 = vsel %vm274_vm1, %v645_v20, 0.0  ;;  %v472_v61 = vsel %vm274_vm1, %v235_v58, 0.0  ;;  %v236_v0 = vld [vmem:[%s1062_s15 + $0x320] sm:$0xff] }
  0xba   : > { %v658_v34 = vmul.f32 %v236_v0, %v236_v0 }
  0xbb   : > { %v443_v45 = vadd.f32 %v442_v35, %v441_v39  ;;  %v859_v12 = vadd.f32 %v858_v3, %v857_v6  ;;  %v870_v39 = vsel %vm274_vm1, %v646_v26, 0.0  ;;  %v474_v3 = vsel %vm274_vm1, %v236_v0, 0.0  ;;  %v237_v6 = vld [vmem:[%s1062_s15 + $0x328] sm:$0xff] }
  0xbc   : > { %v659_v40 = vmul.f32 %v237_v6, %v237_v6 }
  0xbd   : > { %v445_v51 = vadd.f32 %v444_v41, %v443_v45  ;;  %v861_v18 = vadd.f32 %v860_v9, %v859_v12  ;;  %v872_v45 = vsel %vm274_vm1, %v647_v32, 0.0  ;;  %v476_v9 = vsel %vm274_vm1, %v237_v6, 0.0  ;;  %v238_v12 = vld [vmem:[%s1062_s15 + $0x330] sm:$0xff] }
  0xbe   : > { %v660_v46 = vmul.f32 %v238_v12, %v238_v12 }
  0xbf   : > { %v447_v57 = vadd.f32 %v446_v47, %v445_v51  ;;  %v863_v24 = vadd.f32 %v862_v15, %v861_v18  ;;  %v874_v51 = vsel %vm274_vm1, %v648_v38, 0.0  ;;  %v478_v15 = vsel %vm274_vm1, %v238_v12, 0.0  ;;  %v239_v18 = vld [vmem:[%s1062_s15 + $0x338] sm:$0xff] }
  0xc0   : > { %v661_v52 = vmul.f32 %v239_v18, %v239_v18 }
  0xc1   : > { %v449_v63 = vadd.f32 %v448_v53, %v447_v57  ;;  %v865_v30 = vadd.f32 %v864_v21, %v863_v24  ;;  %v876_v57 = vsel %vm274_vm1, %v649_v44, 0.0  ;;  %v480_v21 = vsel %vm274_vm1, %v239_v18, 0.0  ;;  %v240_v24 = vld [vmem:[%s1062_s15 + $0x340] sm:$0xff] }
  0xc2   : > { %v662_v58 = vmul.f32 %v240_v24, %v240_v24 }
  0xc3   : > { %v451_v5 = vadd.f32 %v450_v59, %v449_v63  ;;  %v867_v36 = vadd.f32 %v866_v27, %v865_v30  ;;  %v878_v63 = vsel %vm274_vm1, %v650_v50, 0.0  ;;  %v482_v27 = vsel %vm274_vm1, %v240_v24, 0.0  ;;  %v241_v30 = vld [vmem:[%s1062_s15 + $0x348] sm:$0xff] }
  0xc4   : > { %v663_v0 = vmul.f32 %v241_v30, %v241_v30 }
  0xc5   : > { %v453_v11 = vadd.f32 %v452_v1, %v451_v5  ;;  %v869_v42 = vadd.f32 %v868_v33, %v867_v36  ;;  %v880_v5 = vsel %vm274_vm1, %v651_v56, 0.0  ;;  %v484_v33 = vsel %vm274_vm1, %v241_v30, 0.0  ;;  %v242_v36 = vld [vmem:[%s1062_s15 + $0x350] sm:$0xff] }
  0xc6   : > { %v664_v6 = vmul.f32 %v242_v36, %v242_v36 }
  0xc7   : > { %v455_v17 = vadd.f32 %v454_v7, %v453_v11  ;;  %v871_v48 = vadd.f32 %v870_v39, %v869_v42  ;;  %v882_v11 = vsel %vm274_vm1, %v652_v62, 0.0  ;;  %v486_v39 = vsel %vm274_vm1, %v242_v36, 0.0  ;;  %v243_v42 = vld [vmem:[%s1062_s15 + $0x358] sm:$0xff] }
  0xc8   : > { %v665_v12 = vmul.f32 %v243_v42, %v243_v42 }
  0xc9   : > { %v457_v23 = vadd.f32 %v456_v13, %v455_v17  ;;  %v873_v54 = vadd.f32 %v872_v45, %v871_v48  ;;  %v884_v17 = vsel %vm274_vm1, %v653_v4, 0.0  ;;  %v488_v45 = vsel %vm274_vm1, %v243_v42, 0.0  ;;  %v244_v48 = vld [vmem:[%s1062_s15 + $0x360] sm:$0xff] }
  0xca   : > { %v666_v18 = vmul.f32 %v244_v48, %v244_v48 }
  0xcb   : > { %v459_v29 = vadd.f32 %v458_v19, %v457_v23  ;;  %v875_v60 = vadd.f32 %v874_v51, %v873_v54  ;;  %v886_v23 = vsel %vm274_vm1, %v654_v10, 0.0  ;;  %v490_v51 = vsel %vm274_vm1, %v244_v48, 0.0  ;;  %v245_v54 = vld [vmem:[%s1062_s15 + $0x368] sm:$0xff] }
  0xcc   : > { %v667_v24 = vmul.f32 %v245_v54, %v245_v54 }
  0xcd   : > { %v461_v35 = vadd.f32 %v460_v25, %v459_v29  ;;  %v877_v2 = vadd.f32 %v876_v57, %v875_v60  ;;  %v888_v29 = vsel %vm274_vm1, %v655_v16, 0.0  ;;  %v492_v57 = vsel %vm274_vm1, %v245_v54, 0.0  ;;  %v246_v60 = vld [vmem:[%s1062_s15 + $0x370] sm:$0xff] }
  0xce   : > { %v668_v30 = vmul.f32 %v246_v60, %v246_v60 }
  0xcf   : > { %v463_v41 = vadd.f32 %v462_v31, %v461_v35  ;;  %v879_v8 = vadd.f32 %v878_v63, %v877_v2  ;;  %v890_v35 = vsel %vm274_vm1, %v656_v22, 0.0  ;;  %v494_v63 = vsel %vm274_vm1, %v246_v60, 0.0  ;;  %v247_v2 = vld [vmem:[%s1062_s15 + $0x378] sm:$0xff] }
  0xd0   : > { %v669_v36 = vmul.f32 %v247_v2, %v247_v2 }
  0xd1   : > { %v465_v47 = vadd.f32 %v464_v37, %v463_v41  ;;  %v881_v14 = vadd.f32 %v880_v5, %v879_v8  ;;  %v892_v41 = vsel %vm274_vm1, %v657_v28, 0.0  ;;  %v496_v5 = vsel %vm274_vm1, %v247_v2, 0.0  ;;  %v248_v8 = vld [vmem:[%s1062_s15 + $0x380] sm:$0xff] }
  0xd2   : > { %v670_v42 = vmul.f32 %v248_v8, %v248_v8 }
  0xd3   : > { %v467_v53 = vadd.f32 %v466_v43, %v465_v47  ;;  %v883_v20 = vadd.f32 %v882_v11, %v881_v14  ;;  %v894_v47 = vsel %vm274_vm1, %v658_v34, 0.0  ;;  %v498_v11 = vsel %vm274_vm1, %v248_v8, 0.0  ;;  %v249_v14 = vld [vmem:[%s1062_s15 + $0x388] sm:$0xff] }
  0xd4   : > { %v671_v48 = vmul.f32 %v249_v14, %v249_v14 }
  0xd5   : > { %v469_v59 = vadd.f32 %v468_v49, %v467_v53  ;;  %v885_v26 = vadd.f32 %v884_v17, %v883_v20  ;;  %v896_v53 = vsel %vm274_vm1, %v659_v40, 0.0  ;;  %v500_v17 = vsel %vm274_vm1, %v249_v14, 0.0  ;;  %v250_v20 = vld [vmem:[%s1062_s15 + $0x390] sm:$0xff] }
  0xd6   : > { %v672_v54 = vmul.f32 %v250_v20, %v250_v20 }
  0xd7   : > { %v471_v1 = vadd.f32 %v470_v55, %v469_v59  ;;  %v887_v32 = vadd.f32 %v886_v23, %v885_v26  ;;  %v898_v59 = vsel %vm274_vm1, %v660_v46, 0.0  ;;  %v502_v23 = vsel %vm274_vm1, %v250_v20, 0.0  ;;  %v251_v26 = vld [vmem:[%s1062_s15 + $0x398] sm:$0xff] }
  0xd8   : > { %v673_v60 = vmul.f32 %v251_v26, %v251_v26 }
  0xd9   : > { %v473_v7 = vadd.f32 %v472_v61, %v471_v1  ;;  %v889_v38 = vadd.f32 %v888_v29, %v887_v32  ;;  %v900_v1 = vsel %vm274_vm1, %v661_v52, 0.0  ;;  %v504_v29 = vsel %vm274_vm1, %v251_v26, 0.0  ;;  %v252_v32 = vld [vmem:[%s1062_s15 + $0x3a0] sm:$0xff] }
  0xda   : > { %v674_v2 = vmul.f32 %v252_v32, %v252_v32 }
  0xdb   : > { %v475_v13 = vadd.f32 %v474_v3, %v473_v7  ;;  %v891_v44 = vadd.f32 %v890_v35, %v889_v38  ;;  %v902_v7 = vsel %vm274_vm1, %v662_v58, 0.0  ;;  %v506_v35 = vsel %vm274_vm1, %v252_v32, 0.0  ;;  %v253_v38 = vld [vmem:[%s1062_s15 + $0x3a8] sm:$0xff] }
  0xdc   : > { %v675_v8 = vmul.f32 %v253_v38, %v253_v38 }
  0xdd   : > { %v477_v19 = vadd.f32 %v476_v9, %v475_v13  ;;  %v893_v50 = vadd.f32 %v892_v41, %v891_v44  ;;  %v904_v13 = vsel %vm274_vm1, %v663_v0, 0.0  ;;  %v508_v41 = vsel %vm274_vm1, %v253_v38, 0.0  ;;  %v254_v44 = vld [vmem:[%s1062_s15 + $0x3b0] sm:$0xff] }
  0xde   : > { %v676_v14 = vmul.f32 %v254_v44, %v254_v44 }
  0xdf   : > { %v479_v25 = vadd.f32 %v478_v15, %v477_v19  ;;  %v895_v56 = vadd.f32 %v894_v47, %v893_v50  ;;  %v906_v19 = vsel %vm274_vm1, %v664_v6, 0.0  ;;  %v510_v47 = vsel %vm274_vm1, %v254_v44, 0.0  ;;  %v255_v50 = vld [vmem:[%s1062_s15 + $0x3b8] sm:$0xff] }
  0xe0   : > { %v677_v20 = vmul.f32 %v255_v50, %v255_v50 }
  0xe1   : > { %v481_v31 = vadd.f32 %v480_v21, %v479_v25  ;;  %v897_v62 = vadd.f32 %v896_v53, %v895_v56  ;;  %v908_v25 = vsel %vm274_vm1, %v665_v12, 0.0  ;;  %v512_v53 = vsel %vm274_vm1, %v255_v50, 0.0  ;;  %v256_v56 = vld [vmem:[%s1062_s15 + $0x3c0] sm:$0xff] }
  0xe2   : > { %v678_v26 = vmul.f32 %v256_v56, %v256_v56 }
  0xe3   : > { %v483_v37 = vadd.f32 %v482_v27, %v481_v31  ;;  %v899_v4 = vadd.f32 %v898_v59, %v897_v62  ;;  %v910_v31 = vsel %vm274_vm1, %v666_v18, 0.0  ;;  %v514_v59 = vsel %vm274_vm1, %v256_v56, 0.0  ;;  %v257_v62 = vld [vmem:[%s1062_s15 + $0x3c8] sm:$0xff] }
  0xe4   : > { %v679_v32 = vmul.f32 %v257_v62, %v257_v62 }
  0xe5   : > { %v485_v43 = vadd.f32 %v484_v33, %v483_v37  ;;  %v901_v10 = vadd.f32 %v900_v1, %v899_v4  ;;  %v912_v37 = vsel %vm274_vm1, %v667_v24, 0.0  ;;  %v516_v1 = vsel %vm274_vm1, %v257_v62, 0.0  ;;  %v258_v4 = vld [vmem:[%s1062_s15 + $0x3d0] sm:$0xff] }
  0xe6   : > { %v680_v38 = vmul.f32 %v258_v4, %v258_v4 }
  0xe7   : > { %v487_v49 = vadd.f32 %v486_v39, %v485_v43  ;;  %v903_v16 = vadd.f32 %v902_v7, %v901_v10  ;;  %v914_v43 = vsel %vm274_vm1, %v668_v30, 0.0  ;;  %v518_v7 = vsel %vm274_vm1, %v258_v4, 0.0  ;;  %v259_v10 = vld [vmem:[%s1062_s15 + $0x3d8] sm:$0xff] }
  0xe8   : > { %v681_v44 = vmul.f32 %v259_v10, %v259_v10 }
  0xe9   : > { %v489_v55 = vadd.f32 %v488_v45, %v487_v49  ;;  %v905_v22 = vadd.f32 %v904_v13, %v903_v16  ;;  %v916_v49 = vsel %vm274_vm1, %v669_v36, 0.0  ;;  %v520_v13 = vsel %vm274_vm1, %v259_v10, 0.0  ;;  %v260_v16 = vld [vmem:[%s1062_s15 + $0x3e0] sm:$0xff] }
  0xea   : > { %v682_v50 = vmul.f32 %v260_v16, %v260_v16 }
  0xeb   : > { %v491_v61 = vadd.f32 %v490_v51, %v489_v55  ;;  %v907_v28 = vadd.f32 %v906_v19, %v905_v22  ;;  %v918_v55 = vsel %vm274_vm1, %v670_v42, 0.0  ;;  %v522_v19 = vsel %vm274_vm1, %v260_v16, 0.0  ;;  %v261_v22 = vld [vmem:[%s1062_s15 + $0x3e8] sm:$0xff] }
  0xec   : > { %v683_v56 = vmul.f32 %v261_v22, %v261_v22 }
  0xed   : > { %v493_v3 = vadd.f32 %v492_v57, %v491_v61  ;;  %v909_v34 = vadd.f32 %v908_v25, %v907_v28  ;;  %v920_v61 = vsel %vm274_vm1, %v671_v48, 0.0  ;;  %v524_v25 = vsel %vm274_vm1, %v261_v22, 0.0  ;;  %v262_v28 = vld [vmem:[%s1062_s15 + $0x3f0] sm:$0xff] }
  0xee   : > { %v684_v62 = vmul.f32 %v262_v28, %v262_v28 }
  0xef   : > { %v495_v9 = vadd.f32 %v494_v63, %v493_v3  ;;  %v911_v40 = vadd.f32 %v910_v31, %v909_v34  ;;  %v922_v3 = vsel %vm274_vm1, %v672_v54, 0.0  ;;  %v526_v31 = vsel %vm274_vm1, %v262_v28, 0.0  ;;  %v263_v34 = vld [vmem:[%s1062_s15 + $0x3f8] sm:$0xff] }
  0xf0   : > { %v685_v4 = vmul.f32 %v263_v34, %v263_v34 }
  0xf1   : > { %v497_v15 = vadd.f32 %v496_v5, %v495_v9  ;;  %v913_v46 = vadd.f32 %v912_v37, %v911_v40  ;;  %v924_v9 = vsel %vm274_vm1, %v673_v60, 0.0  ;;  %v528_v37 = vsel %vm274_vm1, %v263_v34, 0.0  ;;  %v264_v40 = vld [vmem:[%s1062_s15 + $0x400] sm:$0xff] }
  0xf2   : > { %v686_v10 = vmul.f32 %v264_v40, %v264_v40 }
  0xf3   : > { %v499_v21 = vadd.f32 %v498_v11, %v497_v15  ;;  %v915_v52 = vadd.f32 %v914_v43, %v913_v46  ;;  %v926_v15 = vsel %vm274_vm1, %v674_v2, 0.0  ;;  %v530_v43 = vsel %vm274_vm1, %v264_v40, 0.0  ;;  %v265_v46 = vld [vmem:[%s1062_s15 + $0x408] sm:$0xff] }
  0xf4   : > { %v687_v16 = vmul.f32 %v265_v46, %v265_v46 }
  0xf5   : > { %v501_v27 = vadd.f32 %v500_v17, %v499_v21  ;;  %v917_v58 = vadd.f32 %v916_v49, %v915_v52  ;;  %v928_v21 = vsel %vm274_vm1, %v675_v8, 0.0  ;;  %v532_v49 = vsel %vm274_vm1, %v265_v46, 0.0  ;;  %v266_v52 = vld [vmem:[%s1062_s15 + $0x410] sm:$0xff] }
  0xf6   : > { %v688_v22 = vmul.f32 %v266_v52, %v266_v52 }
  0xf7   : > { %v503_v33 = vadd.f32 %v502_v23, %v501_v27  ;;  %v919_v0 = vadd.f32 %v918_v55, %v917_v58  ;;  %v930_v27 = vsel %vm274_vm1, %v676_v14, 0.0  ;;  %v534_v55 = vsel %vm274_vm1, %v266_v52, 0.0  ;;  %v267_v58 = vld [vmem:[%s1062_s15 + $0x418] sm:$0xff] }
  0xf8   : > { %v689_v28 = vmul.f32 %v267_v58, %v267_v58 }
  0xf9   : > { %v505_v39 = vadd.f32 %v504_v29, %v503_v33  ;;  %v921_v6 = vadd.f32 %v920_v61, %v919_v0  ;;  %v932_v33 = vsel %vm274_vm1, %v677_v20, 0.0  ;;  %v536_v61 = vsel %vm274_vm1, %v267_v58, 0.0  ;;  %v268_v0 = vld [vmem:[%s1062_s15 + $0x420] sm:$0xff] }
  0xfb   : > { %v507_v45 = vadd.f32 %v506_v35, %v505_v39  ;;  %v923_v12 = vadd.f32 %v922_v3, %v921_v6  ;;  %v934_v39 = vsel %vm274_vm1, %v678_v26, 0.0  ;;  %v538_v3 = vsel %vm274_vm1, %v268_v0, 0.0  ;;  %v269_v6 = vld [vmem:[%s1062_s15 + $0x428] sm:$0xff] }
  0xfd   : > { %v509_v51 = vadd.f32 %v508_v41, %v507_v45  ;;  %v925_v18 = vadd.f32 %v924_v9, %v923_v12  ;;  %v936_v45 = vsel %vm274_vm1, %v679_v32, 0.0  ;;  %v540_v9 = vsel %vm274_vm1, %v269_v6, 0.0  ;;  %v270_v12 = vld [vmem:[%s1062_s15 + $0x430] sm:$0xff] }
  0xfe   : > { %v690_v32 = vmul.f32 %v268_v0, %v268_v0  ;;  %v692_v40 = vmul.f32 %v270_v12, %v270_v12 }
  0xff   : > { %v511_v57 = vadd.f32 %v510_v47, %v509_v51  ;;  %v927_v24 = vadd.f32 %v926_v15, %v925_v18  ;;  %v938_v51 = vsel %vm274_vm1, %v680_v38, 0.0  ;;  %v542_v15 = vsel %vm274_vm1, %v270_v12, 0.0  ;;  %v271_v18 = vld [vmem:[%s1062_s15 + $0x438] sm:$0xff] }
 0x101   : > { %v513_v63 = vadd.f32 %v512_v53, %v511_v57  ;;  %v929_v30 = vadd.f32 %v928_v21, %v927_v24  ;;  %v940_v57 = vsel %vm274_vm1, %v681_v44, 0.0  ;;  %v544_v21 = vsel %vm274_vm1, %v271_v18, 0.0  ;;  %v272_v24 = vld [vmem:[%s1062_s15 + $0x440] sm:$0xff] }
 0x102   : > { %v693_v44 = vmul.f32 %v271_v18, %v271_v18 }
 0x103   : > { %v515_v5 = vadd.f32 %v514_v59, %v513_v63  ;;  %v931_v36 = vadd.f32 %v930_v27, %v929_v30  ;;  %v942_v63 = vsel %vm274_vm1, %v682_v50, 0.0  ;;  %v546_v27 = vsel %vm274_vm1, %v272_v24, 0.0 }
 0x104   : > { %v964_v52 = vsel %vm274_vm1, %v693_v44, 0.0 }
 0x105   : > { %v517_v11 = vadd.f32 %v516_v1, %v515_v5  ;;  %v933_v42 = vadd.f32 %v932_v33, %v931_v36  ;;  %v944_v5 = vsel %vm274_vm1, %v683_v56, 0.0  ;;  %v954_v33 = vsel %vm274_vm1, %v688_v22, 0.0 }
 0x106   : > { %v691_v36 = vmul.f32 %v269_v6, %v269_v6 }
 0x107   : > { %v519_v17 = vadd.f32 %v518_v7, %v517_v11  ;;  %v935_v48 = vadd.f32 %v934_v39, %v933_v42  ;;  %v946_v11 = vsel %vm274_vm1, %v684_v62, 0.0 }
 0x109   : > { %v521_v23 = vadd.f32 %v520_v13, %v519_v17  ;;  %v937_v54 = vadd.f32 %v936_v45, %v935_v48  ;;  %v948_v17 = vsel %vm274_vm1, %v685_v4, 0.0  ;;  %v960_v45 = vsel %vm274_vm1, %v691_v36, 0.0 }
 0x10a   : > { %v694_v48 = vmul.f32 %v272_v24, %v272_v24 }
 0x10b   : > { %v523_v29 = vadd.f32 %v522_v19, %v521_v23  ;;  %v939_v60 = vadd.f32 %v938_v51, %v937_v54  ;;  %v950_v23 = vsel %vm274_vm1, %v686_v10, 0.0 }
 0x10c   : > { %v966_v56 = vsel %vm274_vm1, %v694_v48, 0.0 }
 0x10d   : > { %v525_v35 = vadd.f32 %v524_v25, %v523_v29  ;;  %v941_v2 = vadd.f32 %v940_v57, %v939_v60  ;;  %v952_v29 = vsel %vm274_vm1, %v687_v16, 0.0 }
 0x10f   : > { %v527_v41 = vadd.f32 %v526_v31, %v525_v35  ;;  %v943_v8 = vadd.f32 %v942_v63, %v941_v2  ;;  %v557_v2 = vld [vmem:[%s1498_s2] sm:$0x1] }
 0x111   : > { %v529_v47 = vadd.f32 %v528_v37, %v527_v41  ;;  %v945_v14 = vadd.f32 %v944_v5, %v943_v8  ;;  %v956_v37 = vsel %vm274_vm1, %v689_v28, 0.0  ;;  %v958_v41 = vsel %vm274_vm1, %v690_v32, 0.0 }
 0x113   : > { %v531_v53 = vadd.f32 %v530_v43, %v529_v47  ;;  %v947_v20 = vadd.f32 %v946_v11, %v945_v14 }
 0x115   : > { %v533_v59 = vadd.f32 %v532_v49, %v531_v53  ;;  %v949_v26 = vadd.f32 %v948_v17, %v947_v20  ;;  %v962_v49 = vsel %vm274_vm1, %v692_v40, 0.0 }
 0x117   : > { %v535_v1 = vadd.f32 %v534_v55, %v533_v59  ;;  %v951_v31 = vadd.f32 %v950_v23, %v949_v26  ;;  %v273_v55 = vld [vmem:[%s1497_s1] sm:$0x1] }
 0x119   : > { %v537_v7 = vadd.f32 %v536_v61, %v535_v1  ;;  %v953_v35 = vadd.f32 %v952_v29, %v951_v31 }
 0x11b   : > { %v539_v13 = vadd.f32 %v538_v3, %v537_v7  ;;  %v955_v39 = vadd.f32 %v954_v33, %v953_v35 }
 0x11d   : > { %v541_v19 = vadd.f32 %v540_v9, %v539_v13  ;;  %v957_v43 = vadd.f32 %v956_v37, %v955_v39 }
 0x11f   : > { %v543_v25 = vadd.f32 %v542_v15, %v541_v19  ;;  %v959_v47 = vadd.f32 %v958_v41, %v957_v43 }
 0x121   : > { %v545_v30 = vadd.f32 %v544_v21, %v543_v25  ;;  %v961_v51 = vadd.f32 %v960_v45, %v959_v47 }
 0x123   : > { %v547_v34 = vadd.f32 %v546_v27, %v545_v30  ;;  %v963_v54 = vadd.f32 %v962_v49, %v961_v51 }
 0x125   : > { %v548_v38 = vrot.slane %v547_v34, 4  ;;  %v965_v58 = vadd.f32 %v964_v52, %v963_v54 }
 0x127   : > { %v549_v42 = vadd.f32 %v548_v38, %v547_v34  ;;  %v967_v60 = vadd.f32 %v966_v56, %v965_v58 }
 0x129   : > { %v550_v46 = vrot.slane %v549_v42, 2  ;;  %v968_v61 = vrot.slane %v967_v60, 4 }
 0x12b   : > { %v551_v50 = vadd.f32 %v550_v46, %v549_v42  ;;  %v969_v62 = vadd.f32 %v968_v61, %v967_v60 }
 0x12d   : > { %v552_v53 = vrot.slane %v551_v50, 1  ;;  %v970_v63 = vrot.slane %v969_v62, 2 }
 0x12f   : > { %v553_v57 = vadd.f32 %v552_v53, %v551_v50  ;;  %v971_v0 = vadd.f32 %v970_v63, %v969_v62 }
 0x131   : > { %v554_v59 = vadd.f32 %v553_v57, %v273_v55  ;;  %v972_v1 = vrot.slane %v971_v0, 1 }
 0x133   : > { %556 = vst.msk [vmem:[%s1497_s1] sm:$0x1] %vm555_vm2, %v554_v59  ;;  %v973_v3 = vadd.f32 %v972_v1, %v971_v0 }
 0x135   : > { %v974_v4 = vadd.f32 %v973_v3, %v557_v2 }
 0x137   : > { %975 = vst.msk [vmem:[%s1498_s2] sm:$0x1] %vm555_vm2, %v974_v4 }
 0x138 PF: > { %s13_s9 = sadd.s32 1, %s1033_s9  }
 0x139   : > { %p10_p5 = scmp.ge.s32.totalorder %s13_s9, 4  }
 0x13b   :  { %12 = sbr.rel (!%p10_p5) target bundleno = 1 (0x1), region = 62 }

</bundles_post_ra>
